<compile_context>
chip_gen: v7x
topology: tpu7x:2x2x1
jax: 0.10.0
libtpu: 0.0.40
codegen_flags: <defaults>
</compile_context>

<pallas_src>
import functools

import jax
import jax.numpy as jnp
from jax.experimental import pallas as pl
from jax.experimental.pallas import tpu as pltpu


def _round_up(x, m):
    return (x + m - 1) // m * m


# --------------------------------------------------------------------------- kernel
def _resblock_kernel(xp_ref, w1_ref, b1_ref, w2_ref, b2_ref, o_ref, hp_ref,
                     *, H, W, fold):
    """Fused ResBlock body (residual add is done in f32 in the wrapper).

    xp_ref : (Lp, C)    bf16  row-major flattened zero-padded relu(x) (+ zero tail)
    w*_ref : (3, 3C, C) bf16  3x3 weights with the 3 kw taps fused along K
    b*_ref : (1, C)     f32
    o_ref  : (P//fold, fold*C) f32  lane-folded "wide"-layout conv2 output
    hp_ref : (L2, C)    bf16  scratch: zero-padded intermediate relu(conv1 + b1)
    """
    Wp = W + 2
    P = H * Wp
    S = _round_up(Wp + 1, 8)          # aligned row offset of the intermediate
    L2 = hp_ref.shape[0]
    planes = w2_ref.shape[-1]

    # Zero only the borders of the scratch; the interior [S, S+P) is fully overwritten
    # below.  Unconditional (tiny: ~2*S rows) so it is safe under megacore splitting.
    hp_ref[pl.ds(0, S), :] = jnp.zeros((S, planes), hp_ref.dtype)
    hp_ref[pl.ds(S + P, L2 - S - P), :] = jnp.zeros((L2 - S - P, planes), hp_ref.dtype)

    def conv3x3(src_ref, base, w_ref):
        # 3 fused-K dots: LHS = concat of the 3 kw taps along channels (K = 3C).
        # TODO(synk): if the bundle dump shows f32-acc spills at large P, chunk P into
        #             ~256-row tiles with lax.fori_loop(unroll=True).
        acc = jnp.zeros((P, planes), jnp.float32)
        for kh in range(3):
            off = base + kh * Wp
            lhs = jnp.concatenate(
                [src_ref[pl.ds(off + kw, P), :] for kw in range(3)], axis=-1)
            acc = acc + jnp.dot(lhs, w_ref[kh], preferred_element_type=jnp.float32)
        return acc

    # ---- conv1 (the input ReLU was already applied in the wrapper) ----
    acc = conv3x3(xp_ref, 0, w1_ref)

    # h = relu(conv1 + b1); zero the 2 junk (padding) columns of every image row so
    # that conv2 sees a correctly zero-padded intermediate.  Mask built from an iota
    # (robust f32 floored division; no division by zero / no mask input stream).
    pos = jax.lax.broadcasted_iota(jnp.int32, (P, planes), 0).astype(jnp.float32)
    row = jnp.floor((pos + 0.5) / Wp)            # exact for these integer magnitudes
    col = pos - row * Wp
    h = jnp.maximum(acc + b1_ref[...], 0.0)
    h = jnp.where(col < W, h, 0.0)
    hp_ref[pl.ds(S, P), :] = h.astype(hp_ref.dtype)

    # ---- conv2 on the VMEM-resident intermediate (same fused-K pattern) ----
    acc = conv3x3(hp_ref, S - Wp - 1, w2_ref)
    res = acc + b2_ref[...]

    # Lane-dense store: fold `fold` consecutive row-quarters into the lane dim
    # (C -> fold*C = 128 lanes) so the store is an unmasked full-width vst.
    if fold > 1:
        Q = P // fold
        res = jnp.concatenate([res[j * Q:(j + 1) * Q, :] for j in range(fold)], axis=-1)
    o_ref[...] = res


# --------------------------------------------------------------------------- wrapper
@jax.jit
def resblock_forward(x_nchw, w1, b1, w2, b2):
    """x_nchw: (N, C, H, W) f32; w1/w2: (3, 3, C, C) HWIO f32; b1/b2: (C,) f32."""
    N, Cin, H, W = x_nchw.shape
    planes = w1.shape[-1]
    assert w1.shape == (3, 3, Cin, planes) and w2.shape == (3, 3, planes, planes)
    assert Cin == planes, "ResBlock residual add requires inplanes == planes"

    Wp = W + 2
    P = H * Wp
    Lp = _round_up((H + 2) * Wp + 2, 8)        # flat padded length incl. tap overrun
    S = _round_up(Wp + 1, 8)
    L2 = _round_up(S + P + Wp + 1, 8)          # scratch length for the intermediate

    # Output lane-folding factor: pack 128//C spatial positions into the lane dim.
    fold = 128 // planes if (planes <= 128 and 128 % planes == 0) else 1
    if fold > 1 and (P % fold != 0 or (P // fold) % 8 != 0):
        fold = 1
    Q = P // fold

    x_nhwc = jnp.transpose(x_nchw, (0, 2, 3, 1))
    # ReLU hoisted out of the kernel (applied once; commutes with pad / bf16 cast).
    xr = jnp.maximum(x_nhwc, 0.0)
    xp = jnp.pad(xr, ((0, 0), (1, 1), (1, 1), (0, 0)))
    xp = xp.reshape(N, (H + 2) * Wp, Cin)
    xp = jnp.pad(xp, ((0, 0), (0, Lp - (H + 2) * Wp), (0, 0))).astype(jnp.bfloat16)

    # Fuse the 3 kw taps along K: (3, 3, C, O) -> (3, 3C, O).
    w1m = w1.reshape(3, 3 * Cin, planes).astype(jnp.bfloat16)
    w2m = w2.reshape(3, 3 * planes, planes).astype(jnp.bfloat16)
    b1m = b1.reshape(1, planes).astype(jnp.float32)
    b2m = b2.reshape(1, planes).astype(jnp.float32)

    kernel = functools.partial(_resblock_kernel, H=H, W=W, fold=fold)
    out_folded = pl.pallas_call(
        kernel,
        out_shape=jax.ShapeDtypeStruct((N, Q, fold * planes), jnp.float32),
        grid_spec=pltpu.PrefetchScalarGridSpec(
            num_scalar_prefetch=0,
            grid=(N,),
            in_specs=[
                pl.BlockSpec((None, Lp, Cin), lambda n: (n, 0, 0)),          # relu(x) padded
                pl.BlockSpec((3, 3 * Cin, planes), lambda n: (0, 0, 0)),      # w1 (kw-fused)
                pl.BlockSpec((1, planes), lambda n: (0, 0)),                  # b1
                pl.BlockSpec((3, 3 * planes, planes), lambda n: (0, 0, 0)),   # w2 (kw-fused)
                pl.BlockSpec((1, planes), lambda n: (0, 0)),                  # b2
            ],
            out_specs=pl.BlockSpec((None, Q, fold * planes), lambda n: (n, 0, 0)),
            scratch_shapes=[pltpu.VMEM((L2, planes), jnp.bfloat16)],
        ),
        compiler_params=pltpu.CompilerParams(
            dimension_semantics=("parallel",)),
    )(xp, w1m, b1m, w2m, b2m)

    # Un-fold (cheap XLA glue), strip the junk columns, add the f32 residual.
    if fold > 1:
        out_wide = out_folded.reshape(N, Q, fold, planes)
        out_wide = jnp.transpose(out_wide, (0, 2, 1, 3)).reshape(N, P, planes)
    else:
        out_wide = out_folded
    out = out_wide.reshape(N, H, Wp, planes)[:, :, :W, :] + x_nhwc
    return jnp.transpose(out, (0, 3, 1, 2))


# --------------------------------------------------------------------------- reference
def resblock_reference(x_nchw, w1, b1, w2, b2):
    """Pure-JAX f32 reference matching the PyTorch ResBlock forward."""
    dn = ("NHWC", "HWIO", "NHWC")
    x = jnp.transpose(x_nchw, (0, 2, 3, 1))
    h = jax.lax.conv_general_dilated(jnp.maximum(x, 0.0), w1, (1, 1),
                                     [(1, 1), (1, 1)], dimension_numbers=dn) + b1
    y = jax.lax.conv_general_dilated(jnp.maximum(h, 0.0), w2, (1, 1),
                                     [(1, 1), (1, 1)], dimension_numbers=dn) + b2
    return jnp.transpose(y + x, (0, 3, 1, 2))


# --------------------------------------------------------------------------- main
if __name__ == "__main__":
    B, C, H, W = 2, 32, 16, 16            # ResBlock(inplanes=32, planes=32)

    key = jax.random.PRNGKey(0)
    kx, kw1, kb1, kw2, kb2 = jax.random.split(key, 5)
    x = jax.random.normal(kx, (B, C, H, W), jnp.float32)
    fan = 9 * C
    w1 = jax.random.normal(kw1, (3, 3, C, C), jnp.float32) / jnp.sqrt(fan)
    b1 = jax.random.normal(kb1, (C,), jnp.float32) * 0.1
    w2 = jax.random.normal(kw2, (3, 3, C, C), jnp.float32) / jnp.sqrt(fan)
    b2 = jax.random.normal(kb2, (C,), jnp.float32) * 0.1

    out = jax.block_until_ready(resblock_forward(x, w1, b1, w2, b2))
    assert out.shape == (B, C, H, W), out.shape

    ref = resblock_reference(x, w1, b1, w2, b2)
    # bf16 matmul operands / f32 accumulation => small deviations vs the f32 reference.
    assert jnp.allclose(out, ref, atol=5e-2, rtol=5e-2), \
        float(jnp.max(jnp.abs(out - ref)))

    print("KERNEL_OK")
</pallas_src>

<mosaic_0001>
module attributes {stable_mosaic.version = 11 : i64} {
  func.func @_resblock_kernel(%arg0: i32, %arg1: memref<1x328x32xbf16, #tpu.memory_space<vmem>>, %arg2: memref<3x96x32xbf16, #tpu.memory_space<vmem>>, %arg3: memref<1x32xf32, #tpu.memory_space<vmem>>, %arg4: memref<3x96x32xbf16, #tpu.memory_space<vmem>>, %arg5: memref<1x32xf32, #tpu.memory_space<vmem>>, %arg6: memref<1x72x128xf32, #tpu.memory_space<vmem>>, %arg7: memref<336x32xbf16, #tpu.memory_space<vmem>>) attributes {dimension_semantics = [#tpu.dimension_semantics<parallel>], iteration_bounds = array<i64: 2>, scalar_prefetch = 0 : i64, scratch_operands = 1 : i64, tpu.core_type = #tpu.core_type<tc>, window_params = [{transform_indices = @transform_0, window_bounds = array<i64: 1, 328, 32>}, {pipeline_mode = #tpu.pipeline_mode<synchronous>, transform_indices = @transform_1, window_bounds = array<i64: 3, 96, 32>}, {pipeline_mode = #tpu.pipeline_mode<synchronous>, transform_indices = @transform_2, window_bounds = array<i64: 1, 32>}, {pipeline_mode = #tpu.pipeline_mode<synchronous>, transform_indices = @transform_3, window_bounds = array<i64: 3, 96, 32>}, {pipeline_mode = #tpu.pipeline_mode<synchronous>, transform_indices = @transform_4, window_bounds = array<i64: 1, 32>}, {transform_indices = @transform_5, window_bounds = array<i64: 1, 72, 128>}]} {
    %cst = arith.constant 0.000000e+00 : bf16
    %0 = vector.broadcast %cst : bf16 to vector<24x32xbf16>
    %c0 = arith.constant 0 : index
    %c0_0 = arith.constant 0 : index
    %1 = vector.load %arg7[%c0, %c0_0] : memref<336x32xbf16, #tpu.memory_space<vmem>>, vector<24x32xbf16>
    tpu.vector_store %arg7[%c0, %c0_0], %0 {strides = array<i32>} : memref<336x32xbf16, #tpu.memory_space<vmem>>, vector<24x32xbf16>,
    %cst_1 = arith.constant 0.000000e+00 : bf16
    %2 = vector.broadcast %cst_1 : bf16 to vector<24x32xbf16>
    %c312 = arith.constant 312 : index
    %c0_2 = arith.constant 0 : index
    %3 = vector.load %arg7[%c312, %c0_2] : memref<336x32xbf16, #tpu.memory_space<vmem>>, vector<24x32xbf16>
    tpu.vector_store %arg7[%c312, %c0_2], %2 {strides = array<i32>} : memref<336x32xbf16, #tpu.memory_space<vmem>>, vector<24x32xbf16>,
    %cst_3 = arith.constant 0.000000e+00 : f32
    %4 = vector.broadcast %cst_3 : f32 to vector<288x32xf32>
    %c0_4 = arith.constant 0 : index
    %c0_5 = arith.constant 0 : index
    %c0_6 = arith.constant 0 : index
    %5 = vector.load %arg1[%c0_4, %c0_5, %c0_6] : memref<1x328x32xbf16, #tpu.memory_space<vmem>>, vector<1x288x32xbf16>
    %6 = vector.shape_cast %5 : vector<1x288x32xbf16> to vector<288x32xbf16>
    %c0_7 = arith.constant 0 : index
    %c1 = arith.constant 1 : index
    %c0_8 = arith.constant 0 : index
    %7 = vector.load %arg1[%c0_7, %c1, %c0_8] : memref<1x328x32xbf16, #tpu.memory_space<vmem>>, vector<1x288x32xbf16>
    %8 = vector.shape_cast %7 : vector<1x288x32xbf16> to vector<288x32xbf16>
    %c0_9 = arith.constant 0 : index
    %c2 = arith.constant 2 : index
    %c0_10 = arith.constant 0 : index
    %9 = vector.load %arg1[%c0_9, %c2, %c0_10] : memref<1x328x32xbf16, #tpu.memory_space<vmem>>, vector<1x288x32xbf16>
    %10 = vector.shape_cast %9 : vector<1x288x32xbf16> to vector<288x32xbf16>
    %11 = tpu.concatenate %6, %8, %10 in 1 : vector<288x32xbf16>, vector<288x32xbf16>, vector<288x32xbf16> -> vector<288x96xbf16>
    %c0_11 = arith.constant 0 : index
    %c0_12 = arith.constant 0 : index
    %c0_13 = arith.constant 0 : index
    %12 = vector.load %arg2[%c0_11, %c0_12, %c0_13] : memref<3x96x32xbf16, #tpu.memory_space<vmem>>, vector<1x96x32xbf16>
    %13 = vector.shape_cast %12 : vector<1x96x32xbf16> to vector<96x32xbf16>
    %cst_14 = arith.constant dense<0.000000e+00> : vector<288x32xf32>
    %14 = tpu.matmul %11, %13, %cst_14 {dimension_numbers = #tpu.dot_dimension_numbers<[1], [0], [0], [1], [0, 0, 1, 1], [], []>} : vector<288x96xbf16>, vector<96x32xbf16>, vector<288x32xf32> -> vector<288x32xf32>
    %15 = arith.addf %4, %14 : vector<288x32xf32>
    %c0_15 = arith.constant 0 : index
    %c18 = arith.constant 18 : index
    %c0_16 = arith.constant 0 : index
    %16 = vector.load %arg1[%c0_15, %c18, %c0_16] : memref<1x328x32xbf16, #tpu.memory_space<vmem>>, vector<1x288x32xbf16>
    %17 = vector.shape_cast %16 : vector<1x288x32xbf16> to vector<288x32xbf16>
    %c0_17 = arith.constant 0 : index
    %c19 = arith.constant 19 : index
    %c0_18 = arith.constant 0 : index
    %18 = vector.load %arg1[%c0_17, %c19, %c0_18] : memref<1x328x32xbf16, #tpu.memory_space<vmem>>, vector<1x288x32xbf16>
    %19 = vector.shape_cast %18 : vector<1x288x32xbf16> to vector<288x32xbf16>
    %c0_19 = arith.constant 0 : index
    %c20 = arith.constant 20 : index
    %c0_20 = arith.constant 0 : index
    %20 = vector.load %arg1[%c0_19, %c20, %c0_20] : memref<1x328x32xbf16, #tpu.memory_space<vmem>>, vector<1x288x32xbf16>
    %21 = vector.shape_cast %20 : vector<1x288x32xbf16> to vector<288x32xbf16>
    %22 = tpu.concatenate %17, %19, %21 in 1 : vector<288x32xbf16>, vector<288x32xbf16>, vector<288x32xbf16> -> vector<288x96xbf16>
    %c1_21 = arith.constant 1 : index
    %c0_22 = arith.constant 0 : index
    %c0_23 = arith.constant 0 : index
    %23 = vector.load %arg2[%c1_21, %c0_22, %c0_23] : memref<3x96x32xbf16, #tpu.memory_space<vmem>>, vector<1x96x32xbf16>
    %24 = vector.shape_cast %23 : vector<1x96x32xbf16> to vector<96x32xbf16>
    %cst_24 = arith.constant dense<0.000000e+00> : vector<288x32xf32>
    %25 = tpu.matmul %22, %24, %cst_24 {dimension_numbers = #tpu.dot_dimension_numbers<[1], [0], [0], [1], [0, 0, 1, 1], [], []>} : vector<288x96xbf16>, vector<96x32xbf16>, vector<288x32xf32> -> vector<288x32xf32>
    %26 = arith.addf %15, %25 : vector<288x32xf32>
    %c0_25 = arith.constant 0 : index
    %c36 = arith.constant 36 : index
    %c0_26 = arith.constant 0 : index
    %27 = vector.load %arg1[%c0_25, %c36, %c0_26] : memref<1x328x32xbf16, #tpu.memory_space<vmem>>, vector<1x288x32xbf16>
    %28 = vector.shape_cast %27 : vector<1x288x32xbf16> to vector<288x32xbf16>
    %c0_27 = arith.constant 0 : index
    %c37 = arith.constant 37 : index
    %c0_28 = arith.constant 0 : index
    %29 = vector.load %arg1[%c0_27, %c37, %c0_28] : memref<1x328x32xbf16, #tpu.memory_space<vmem>>, vector<1x288x32xbf16>
    %30 = vector.shape_cast %29 : vector<1x288x32xbf16> to vector<288x32xbf16>
    %c0_29 = arith.constant 0 : index
    %c38 = arith.constant 38 : index
    %c0_30 = arith.constant 0 : index
    %31 = vector.load %arg1[%c0_29, %c38, %c0_30] : memref<1x328x32xbf16, #tpu.memory_space<vmem>>, vector<1x288x32xbf16>
    %32 = vector.shape_cast %31 : vector<1x288x32xbf16> to vector<288x32xbf16>
    %33 = tpu.concatenate %28, %30, %32 in 1 : vector<288x32xbf16>, vector<288x32xbf16>, vector<288x32xbf16> -> vector<288x96xbf16>
    %c2_31 = arith.constant 2 : index
    %c0_32 = arith.constant 0 : index
    %c0_33 = arith.constant 0 : index
    %34 = vector.load %arg2[%c2_31, %c0_32, %c0_33] : memref<3x96x32xbf16, #tpu.memory_space<vmem>>, vector<1x96x32xbf16>
    %35 = vector.shape_cast %34 : vector<1x96x32xbf16> to vector<96x32xbf16>
    %cst_34 = arith.constant dense<0.000000e+00> : vector<288x32xf32>
    %36 = tpu.matmul %33, %35, %cst_34 {dimension_numbers = #tpu.dot_dimension_numbers<[1], [0], [0], [1], [0, 0, 1, 1], [], []>} : vector<288x96xbf16>, vector<96x32xbf16>, vector<288x32xf32> -> vector<288x32xf32>
    %37 = arith.addf %26, %36 : vector<288x32xf32>
    %38 = tpu.iota {dimensions = array<i32: 0>} : vector<288x32xi32>
    %39 = arith.sitofp %38 : vector<288x32xi32> to vector<288x32xf32>
    %cst_35 = arith.constant 5.000000e-01 : f32
    %40 = vector.broadcast %cst_35 : f32 to vector<288x32xf32>
    %41 = arith.addf %39, %40 : vector<288x32xf32>
    %cst_36 = arith.constant 1.800000e+01 : f32
    %42 = vector.broadcast %cst_36 : f32 to vector<288x32xf32>
    %43 = arith.divf %41, %42 : vector<288x32xf32>
    %44 = math.floor %43 : vector<288x32xf32>
    %cst_37 = arith.constant 1.800000e+01 : f32
    %45 = vector.broadcast %cst_37 : f32 to vector<288x32xf32>
    %46 = arith.mulf %44, %45 : vector<288x32xf32>
    %47 = arith.subf %39, %46 : vector<288x32xf32>
    %c0_38 = arith.constant 0 : index
    %c0_39 = arith.constant 0 : index
    %48 = vector.load %arg3[%c0_38, %c0_39] : memref<1x32xf32, #tpu.memory_space<vmem>>, vector<1x32xf32>
    %49 = vector.broadcast %48 : vector<1x32xf32> to vector<288x32xf32>
    %50 = arith.addf %37, %49 : vector<288x32xf32>
    %cst_40 = arith.constant 0.000000e+00 : f32
    %51 = vector.broadcast %cst_40 : f32 to vector<288x32xf32>
    %52 = arith.maximumf %50, %51 : vector<288x32xf32>
    %cst_41 = arith.constant 1.600000e+01 : f32
    %53 = vector.broadcast %cst_41 : f32 to vector<288x32xf32>
    %54 = arith.cmpf olt, %47, %53 : vector<288x32xf32>
    %cst_42 = arith.constant 0.000000e+00 : f32
    %55 = vector.broadcast %cst_42 : f32 to vector<288x32xf32>
    %56 = arith.select %54, %52, %55 : vector<288x32xi1>, vector<288x32xf32>
    %57 = arith.truncf %56 : vector<288x32xf32> to vector<288x32xbf16>
    %c24 = arith.constant 24 : index
    %c0_43 = arith.constant 0 : index
    %58 = vector.load %arg7[%c24, %c0_43] : memref<336x32xbf16, #tpu.memory_space<vmem>>, vector<288x32xbf16>
    tpu.vector_store %arg7[%c24, %c0_43], %57 {strides = array<i32>} : memref<336x32xbf16, #tpu.memory_space<vmem>>, vector<288x32xbf16>,
    %cst_44 = arith.constant 0.000000e+00 : f32
    %59 = vector.broadcast %cst_44 : f32 to vector<288x32xf32>
    %c5 = arith.constant 5 : index
    %c0_45 = arith.constant 0 : index
    %60 = vector.load %arg7[%c5, %c0_45] : memref<336x32xbf16, #tpu.memory_space<vmem>>, vector<288x32xbf16>
    %c6 = arith.constant 6 : index
    %c0_46 = arith.constant 0 : index
    %61 = vector.load %arg7[%c6, %c0_46] : memref<336x32xbf16, #tpu.memory_space<vmem>>, vector<288x32xbf16>
    %c7 = arith.constant 7 : index
    %c0_47 = arith.constant 0 : index
    %62 = vector.load %arg7[%c7, %c0_47] : memref<336x32xbf16, #tpu.memory_space<vmem>>, vector<288x32xbf16>
    %63 = tpu.concatenate %60, %61, %62 in 1 : vector<288x32xbf16>, vector<288x32xbf16>, vector<288x32xbf16> -> vector<288x96xbf16>
    %c0_48 = arith.constant 0 : index
    %c0_49 = arith.constant 0 : index
    %c0_50 = arith.constant 0 : index
    %64 = vector.load %arg4[%c0_48, %c0_49, %c0_50] : memref<3x96x32xbf16, #tpu.memory_space<vmem>>, vector<1x96x32xbf16>
    %65 = vector.shape_cast %64 : vector<1x96x32xbf16> to vector<96x32xbf16>
    %cst_51 = arith.constant dense<0.000000e+00> : vector<288x32xf32>
    %66 = tpu.matmul %63, %65, %cst_51 {dimension_numbers = #tpu.dot_dimension_numbers<[1], [0], [0], [1], [0, 0, 1, 1], [], []>} : vector<288x96xbf16>, vector<96x32xbf16>, vector<288x32xf32> -> vector<288x32xf32>
    %67 = arith.addf %59, %66 : vector<288x32xf32>
    %c23 = arith.constant 23 : index
    %c0_52 = arith.constant 0 : index
    %68 = vector.load %arg7[%c23, %c0_52] : memref<336x32xbf16, #tpu.memory_space<vmem>>, vector<288x32xbf16>
    %c24_53 = arith.constant 24 : index
    %c0_54 = arith.constant 0 : index
    %69 = vector.load %arg7[%c24_53, %c0_54] : memref<336x32xbf16, #tpu.memory_space<vmem>>, vector<288x32xbf16>
    %c25 = arith.constant 25 : index
    %c0_55 = arith.constant 0 : index
    %70 = vector.load %arg7[%c25, %c0_55] : memref<336x32xbf16, #tpu.memory_space<vmem>>, vector<288x32xbf16>
    %71 = tpu.concatenate %68, %69, %70 in 1 : vector<288x32xbf16>, vector<288x32xbf16>, vector<288x32xbf16> -> vector<288x96xbf16>
    %c1_56 = arith.constant 1 : index
    %c0_57 = arith.constant 0 : index
    %c0_58 = arith.constant 0 : index
    %72 = vector.load %arg4[%c1_56, %c0_57, %c0_58] : memref<3x96x32xbf16, #tpu.memory_space<vmem>>, vector<1x96x32xbf16>
    %73 = vector.shape_cast %72 : vector<1x96x32xbf16> to vector<96x32xbf16>
    %cst_59 = arith.constant dense<0.000000e+00> : vector<288x32xf32>
    %74 = tpu.matmul %71, %73, %cst_59 {dimension_numbers = #tpu.dot_dimension_numbers<[1], [0], [0], [1], [0, 0, 1, 1], [], []>} : vector<288x96xbf16>, vector<96x32xbf16>, vector<288x32xf32> -> vector<288x32xf32>
    %75 = arith.addf %67, %74 : vector<288x32xf32>
    %c41 = arith.constant 41 : index
    %c0_60 = arith.constant 0 : index
    %76 = vector.load %arg7[%c41, %c0_60] : memref<336x32xbf16, #tpu.memory_space<vmem>>, vector<288x32xbf16>
    %c42 = arith.constant 42 : index
    %c0_61 = arith.constant 0 : index
    %77 = vector.load %arg7[%c42, %c0_61] : memref<336x32xbf16, #tpu.memory_space<vmem>>, vector<288x32xbf16>
    %c43 = arith.constant 43 : index
    %c0_62 = arith.constant 0 : index
    %78 = vector.load %arg7[%c43, %c0_62] : memref<336x32xbf16, #tpu.memory_space<vmem>>, vector<288x32xbf16>
    %79 = tpu.concatenate %76, %77, %78 in 1 : vector<288x32xbf16>, vector<288x32xbf16>, vector<288x32xbf16> -> vector<288x96xbf16>
    %c2_63 = arith.constant 2 : index
    %c0_64 = arith.constant 0 : index
    %c0_65 = arith.constant 0 : index
    %80 = vector.load %arg4[%c2_63, %c0_64, %c0_65] : memref<3x96x32xbf16, #tpu.memory_space<vmem>>, vector<1x96x32xbf16>
    %81 = vector.shape_cast %80 : vector<1x96x32xbf16> to vector<96x32xbf16>
    %cst_66 = arith.constant dense<0.000000e+00> : vector<288x32xf32>
    %82 = tpu.matmul %79, %81, %cst_66 {dimension_numbers = #tpu.dot_dimension_numbers<[1], [0], [0], [1], [0, 0, 1, 1], [], []>} : vector<288x96xbf16>, vector<96x32xbf16>, vector<288x32xf32> -> vector<288x32xf32>
    %83 = arith.addf %75, %82 : vector<288x32xf32>
    %c0_67 = arith.constant 0 : index
    %c0_68 = arith.constant 0 : index
    %84 = vector.load %arg5[%c0_67, %c0_68] : memref<1x32xf32, #tpu.memory_space<vmem>>, vector<1x32xf32>
    %85 = vector.broadcast %84 : vector<1x32xf32> to vector<288x32xf32>
    %86 = arith.addf %83, %85 : vector<288x32xf32>
    %87 = vector.extract_strided_slice %86 {offsets = [0, 0], sizes = [72, 32], strides = [1, 1]} : vector<288x32xf32> to vector<72x32xf32>
    %88 = vector.extract_strided_slice %86 {offsets = [72, 0], sizes = [72, 32], strides = [1, 1]} : vector<288x32xf32> to vector<72x32xf32>
    %89 = vector.extract_strided_slice %86 {offsets = [144, 0], sizes = [72, 32], strides = [1, 1]} : vector<288x32xf32> to vector<72x32xf32>
    %90 = vector.extract_strided_slice %86 {offsets = [216, 0], sizes = [72, 32], strides = [1, 1]} : vector<288x32xf32> to vector<72x32xf32>
    %91 = tpu.concatenate %87, %88, %89, %90 in 1 : vector<72x32xf32>, vector<72x32xf32>, vector<72x32xf32>, vector<72x32xf32> -> vector<72x128xf32>
    %c0_69 = arith.constant 0 : index
    %c0_70 = arith.constant 0 : index
    %c0_71 = arith.constant 0 : index
    %92 = vector.load %arg6[%c0_69, %c0_70, %c0_71] : memref<1x72x128xf32, #tpu.memory_space<vmem>>, vector<1x72x128xf32>
    %93 = vector.shape_cast %92 : vector<1x72x128xf32> to vector<72x128xf32>
    %94 = vector.shape_cast %91 : vector<72x128xf32> to vector<1x72x128xf32>
    tpu.vector_store %arg6[%c0_69, %c0_70, %c0_71], %94 {strides = array<i32>} : memref<1x72x128xf32, #tpu.memory_space<vmem>>, vector<1x72x128xf32>,
    return
  }
  func.func @transform_0(%arg0: i32) -> (i32, i32, i32) {
    %c0_i32 = arith.constant 0 : i32
    %c0_i32_0 = arith.constant 0 : i32
    %c0_i32_1 = arith.constant 0 : i32
    return %arg0, %c0_i32, %c0_i32_0 : i32, i32, i32
  }
  func.func @transform_1(%arg0: i32) -> (i32, i32, i32) {
    %c0_i32 = arith.constant 0 : i32
    %c0_i32_0 = arith.constant 0 : i32
    %c0_i32_1 = arith.constant 0 : i32
    %c0_i32_2 = arith.constant 0 : i32
    return %c0_i32, %c0_i32_0, %c0_i32_1 : i32, i32, i32
  }
  func.func @transform_2(%arg0: i32) -> (i32, i32) {
    %c0_i32 = arith.constant 0 : i32
    %c0_i32_0 = arith.constant 0 : i32
    %c0_i32_1 = arith.constant 0 : i32
    return %c0_i32, %c0_i32_0 : i32, i32
  }
  func.func @transform_3(%arg0: i32) -> (i32, i32, i32) {
    %c0_i32 = arith.constant 0 : i32
    %c0_i32_0 = arith.constant 0 : i32
    %c0_i32_1 = arith.constant 0 : i32
    %c0_i32_2 = arith.constant 0 : i32
    return %c0_i32, %c0_i32_0, %c0_i32_1 : i32, i32, i32
  }
  func.func @transform_4(%arg0: i32) -> (i32, i32) {
    %c0_i32 = arith.constant 0 : i32
    %c0_i32_0 = arith.constant 0 : i32
    %c0_i32_1 = arith.constant 0 : i32
    return %c0_i32, %c0_i32_0 : i32, i32
  }
  func.func @transform_5(%arg0: i32) -> (i32, i32, i32) {
    %c0_i32 = arith.constant 0 : i32
    %c0_i32_0 = arith.constant 0 : i32
    %c0_i32_1 = arith.constant 0 : i32
    return %arg0, %c0_i32, %c0_i32_0 : i32, i32, i32
  }
}

</mosaic_0001>

<bundles_post_ra>
// kernel: resblock_forward.1
= control target key start
LH: loop header
LB: loop body
LE: loop exit
PB: predicated region body
PF: predicated region fallthrough
CT: control target
= control target key end

     0   :  { %s6086_s18 = smov 0   ;;  %s8375_s0 = inlined_call_operand.vmem [shape: bf16[2,328,32], index: 0, kind: input, shape index: {}]   ;;  %s8376_s1 = inlined_call_operand.vmem [shape: bf16[3,96,32], index: 1, kind: input, shape index: {}]   ;;  %s8377_s2 = inlined_call_operand.vmem [shape: f32[1,32], index: 2, kind: input, shape index: {}]   ;;  %s8378_s3 = inlined_call_operand.vmem [shape: bf16[3,96,32], index: 3, kind: input, shape index: {}]   ;;  %s8379_s4 = inlined_call_operand.vmem [shape: f32[1,32], index: 4, kind: input, shape index: {}]   ;;  %s8380_s5 = inlined_call_operand.vmem [shape: f32[2,72,128], index: 5, kind: output, shape index: {}]  }
   0x1 LB: > { %s5096_s19 = sadd.s32 4294967295, %s6050_s18   ;;  %p5100_p0 = scmp.ge.s32.totalorder %s6050_s18, 1  ;;  %s6050_s18 = sphi %s6086_s18, %s15_s18  }
   0x2   : > { %p187_p1 = scmp.lt.s32.totalorder %s6050_s18, 3 }
   0x4   : > { %p188_p2 = pnand %p5100_p0, %p187_p1 }
   0x6   : > { %191 = sbr.rel (%p188_p2) target bundleno = 1227 (0x4cb), region = 40 }
   0xd   : > { %p215_p3 = scmp.lt.s32.totalorder %s5096_s19, 1  ;;  %v5958_v0 = vld [vmem:[%s8376_s1 + $0x30] sm:$0xff]   ;;  %v5959_v1 = vld [vmem:[%s8376_s1 + $0x38] sm:$0xff]   ;;  %v5960_v2 = vld [vmem:[%s8376_s1 + $0x40] sm:$0xff]   ;;  %vm552_vm0 = vcmask 1046528   ;;  %s6052_s7 = smov 64  }
   0xe   : > { %5489 = vmatprep.subr.bf16.mxu0 %v5958_v0  ;;  %v5961_v3 = vld [vmem:[%s8376_s1 + $0x48] sm:$0xff]   ;;  %vm364_vm1 = vsmask.f32 7424  ;;  %s6053_s8 = smov 32   ;;  %vm226_vm2 = vcmask 261120   ;;  %vm662_vm3 = vcmask 523264  }
   0xf   : > { %s8429_s19 = smov (!%p215_p3, %s5096_s19), 1  ;;  %5490 = vmatpush3.bf16.msra.mxu0 %v5958_v0  ;;  %vm902_vm4 = vcmask 785408   ;;  %vm1894_vm5 = vcmask 1045504   ;;  %vm230_vm6 = vcmask 261124   ;;  %vm228_vm7 = vcmask 257024  }
  0x10   : > { %s5921_s24 = smul.u32 164, %s8429_s19  ;;  %5491 = vmatprep.subr.bf16.mxu0 %v5959_v1  ;;  %vm2676_vm12 = vcmask 1043456  }
  0x12   : > { %s6109_s29 = scalar_lea.vmem %s8375_s0, %s5921_s24 }
  0x13   : > { %5492 = vmatpush3.bf16.msra.mxu0 %v5959_v1  ;;  %v6115_v4 = vld [vmem:[%s6109_s29 + $0x10] sm:$0xff]   ;;  %v6118_v5 = vld [vmem:[%s6109_s29 + $0x18] sm:$0xff]   ;;  %v6121_v6 = vld [vmem:[%s6109_s29 + $0x20] sm:$0xff]  }
  0x14   : > { %5493 = vmatprep.subr.bf16.mxu0 %v5960_v2  ;;  %v6124_v7 = vrot.slane %v6115_v4, 1  ;;  %v558_v8 = vrot.slane %v6118_v5, 1  ;;  %v389_v9 = vshll.u32 %v6118_v5, 16  ;;  %v393_v10 = vshrl.u32 %v6118_v5, 16  ;;  %v6130_v11 = vld [vmem:[%s6109_s29 + $0xc] sm:$0xf] }
  0x15   : > { %v397_v12 = vshll.u32 %v6121_v6, 16  ;;  %v381_v13 = vshll.u32 %v6115_v4, 16  ;;  %v385_v14 = vshrl.u32 %v6115_v4, 16  ;;  %v560_v15 = vrot.slane %v6121_v6, 1  ;;  %v711_v16 = vld [vmem:[%s6109_s29 + $0x8] sm:$0xe] }
  0x16   : > { %v559_v17 = vsel %vm552_vm0, %v6124_v7, %v558_v8  ;;  %v391_v18 = vrot.slane %v389_v9, 1  ;;  %v6140_v19 = vcombine.low %v711_v16, %v6130_v11  ;;  %v716_v20 = vld [vmem:[%s6109_s29 + $0x8] sm:$0xc]  ;;  %v6153_v28 = vld [vmem:[%s6109_s29 + $0x30] sm:$0xff]   ;;  %v6159_v32 = vld [vmem:[%s6109_s29 + $0x38] sm:$0xff]   ;;  %v401_v44 = vshrl.u32 %v6121_v6, 16 }
  0x17   : > { %5494 = vmatpush3.bf16.msra.mxu0 %v5960_v2  ;;  %v6144_v21 = vld [vmem:[%s6109_s29 + $0x28] sm:$0xff]   ;;  %594 = vrot.lane.b32.xlu1 %v559_v17, %s6052_s7  ;;  %v399_v22 = vrot.slane %v397_v12, 1  ;;  %v6147_v23 = vrot.slane %v381_v13, 1  ;;  %v5127_v24 = vcombine.low %v716_v20, %v6130_v11  ;;  %v413_v36 = vshll.u32 %v6153_v28, 16  ;;  %v6170_v43 = vld [vmem:[%s6109_s29 + $0x40] sm:$0xff]   ;;  %v6190_v56 = vld [vmem:[%s6109_s29 + $0x50] sm:$0xff]  }
  0x18   : > { %5495 = vmatprep.subr.bf16.mxu0 %v5961_v3  ;;  %v395_v25 = vor.u32 %v393_v10, %v391_v18  ;;  %v732_v26 = vshrl.u32 %v6140_v19, 16  ;;  %v734_v27 = vshll.u32 %v6140_v19, 16  ;;  %v405_v29 = vshll.u32 %v6144_v21, 16  ;;  %v6184_v53 = vld [vmem:[%s6109_s29 + $0x48] sm:$0xff]   ;;  %v6205_v9 = vld [vmem:[%s6109_s29 + $0x58] sm:$0xff]   ;;  %v5962_v13 = vld [vmem:[%s8376_s1 + $0x50] sm:$0xff]  }
  0x19   : > { %v387_v30 = vor.u32 %v385_v14, %v6147_v23  ;;  %v409_v31 = vshrl.u32 %v6144_v21, 16  ;;  %v766_v38 = vrot.slane %v5127_v24, 1  ;;  %v561_v39 = vsel %vm552_vm0, %v558_v8, %v560_v15  ;;  %v5963_v14 = vld [vmem:[%s8376_s1 + $0x58] sm:$0xff]   ;;  %v6228_v24 = vld [vmem:[%s8376_s1] sm:$0xff]  }
  0x1a   : > { %v400_v33 = vsel %vm364_vm1, %v395_v25, %v399_v22  ;;  %v736_v34 = vrot.slane %v734_v27, 1  ;;  %v407_v35 = vrot.slane %v405_v29, 1  ;;  %v415_v42 = vrot.slane %v413_v36, 1 }
  0x1b   : > { %5496 = vmatpush3.bf16.msra.mxu0 %v5961_v3  ;;  %519 = vrot.lane.b32.xlu1 %v400_v33, %s6053_s8  ;;  %v392_v37 = vsel %vm364_vm1, %v387_v30, %v391_v18  ;;  %v421_v45 = vshll.u32 %v6159_v32, 16  ;;  %v562_v47 = vrot.slane %v6144_v21, 1  ;;  %v564_v48 = vrot.slane %v6153_v28, 1 }
  0x1c   : > { %517 = vrot.lane.b32.xlu0 %v392_v37, %s6053_s8  ;;  %v737_v40 = vor.u32 %v736_v34, %v732_v26  ;;  %v411_v41 = vor.u32 %v409_v31, %v407_v35  ;;  %v425_v51 = vshrl.u32 %v6159_v32, 16  ;;  %v429_v52 = vshll.u32 %v6170_v43, 16  ;;  %5497 = vmatprep.subr.bf16.mxu0 %v5962_v13  ;;  %v5948_v31 = vld [vmem:[%s6109_s29 + $0x68] sm:$0xff]   ;;  %v6242_v34 = vld [vmem:[%s6109_s29 + $0x70] sm:$0xff]  }
  0x1d   : > { %v423_v50 = vrot.slane %v421_v45, 1  ;;  %v767_v54 = vsel %vm552_vm0, %v766_v38, %v6124_v7  ;;  %v403_v55 = vor.u32 %v401_v44, %v399_v22  ;;  %v565_v57 = vsel %vm552_vm0, %v562_v47, %v564_v48  ;;  %v6252_v44 = vld [vmem:[%s6109_s29 + $0x78] sm:$0xff]  }
  0x1e   : > { %v738_v46 = vsel %vm364_vm1, %v737_v40, %v6147_v23  ;;  %v416_v49 = vsel %vm364_vm1, %v411_v41, %v415_v42  ;;  %v431_v59 = vrot.slane %v429_v52, 1  ;;  %v437_v60 = vshll.u32 %v6184_v53, 16 }
  0x1f   : > { %596 = vrot.lane.b32.xlu1 %v561_v39, %s6052_s7  ;;  %v427_v58 = vor.u32 %v425_v51, %v423_v50  ;;  %v408_v61 = vsel %vm364_vm1, %v403_v55, %v407_v35  ;;  %v417_v62 = vshrl.u32 %v6153_v28, 16  ;;  %v566_v63 = vrot.slane %v6159_v32, 1  ;;  %5498 = vmatpush3.bf16.msra.mxu0 %v5962_v13 }
  0x20   : > { %755 = vrot.lane.b32.xlu0 %v738_v46, %s6053_s8  ;;  %v568_v0 = vrot.slane %v6170_v43, 1  ;;  %v441_v1 = vshrl.u32 %v6184_v53, 16  ;;  %v445_v2 = vshll.u32 %v6190_v56, 16  ;;  %v439_v8 = vrot.slane %v437_v60, 1  ;;  %5499 = vmatprep.subr.bf16.mxu0 %v5963_v14 }
  0x21   : > { %v432_v3 = vsel %vm364_vm1, %v427_v58, %v431_v59  ;;  %v563_v10 = vsel %vm552_vm0, %v560_v15, %v562_v47  ;;  %v419_v12 = vor.u32 %v417_v62, %v415_v42  ;;  %v6220_v15 = vld [vmem:[%s6109_s29 + $0x60] sm:$0xff]   ;;  %v453_v18 = vshll.u32 %v6205_v9, 16 }
  0x22   : > { %v569_v16 = vsel %vm552_vm0, %v566_v63, %v568_v0  ;;  %v443_v17 = vor.u32 %v441_v1, %v439_v8  ;;  %v447_v6 = vrot.slane %v445_v2, 1  ;;  %v433_v22 = vshrl.u32 %v6170_v43, 16 }
  0x23   : > { %523 = vrot.lane.b32.xlu1 %v416_v49, %s6053_s8  ;;  %v424_v20 = vsel %vm364_vm1, %v419_v12, %v423_v50  ;;  %v570_v25 = vrot.slane %v6184_v53, 1  ;;  %v572_v26 = vrot.slane %v6190_v56, 1  ;;  %v455_v28 = vrot.slane %v453_v18, 1  ;;  %5500 = vmatpush3.bf16.msra.mxu0 %v5963_v14  ;;  %v6260_v50 = vld [vmem:[%s6109_s29 + $0x80] sm:$0xff]   ;;  %v6285_v14 = vld [vmem:[%s6109_s29 + $0x88] sm:$0xff]  }
  0x24   : > { %772 = vrot.lane.b32.xlu0 %v767_v54, %s6052_s7  ;;  %v448_v27 = vsel %vm364_vm1, %v443_v17, %v447_v6  ;;  %v457_v29 = vshrl.u32 %v6205_v9, 16  ;;  %v461_v30 = vshll.u32 %v6220_v15, 16  ;;  %v567_v32 = vsel %vm552_vm0, %v564_v48, %v566_v63  ;;  %5537 = vmatprep.subr.bf16.mxu0 %v6228_v24 }
  0x25   : > { %v435_v33 = vor.u32 %v433_v22, %v431_v59  ;;  %v573_v35 = vsel %vm552_vm0, %v570_v25, %v572_v26  ;;  %v469_v38 = vshll.u32 %v5948_v31, 16  ;;  %v449_v40 = vshrl.u32 %v6190_v56, 16 }
  0x26   : > { %v459_v36 = vor.u32 %v457_v29, %v455_v28  ;;  %v463_v37 = vrot.slane %v461_v30, 1  ;;  %v574_v41 = vrot.slane %v6205_v9, 1  ;;  %v576_v42 = vrot.slane %v6220_v15, 1 }
  0x27   : > { %600 = vrot.lane.b32.xlu1 %v565_v57, %s6052_s7  ;;  %v440_v39 = vsel %vm364_vm1, %v435_v33, %v439_v8  ;;  %v473_v43 = vshrl.u32 %v5948_v31, 16  ;;  %v471_v46 = vrot.slane %v469_v38, 1  ;;  %v477_v47 = vshll.u32 %v6242_v34, 16  ;;  %v234_v33 = vld [vmem:[%s6109_s29 + $0x4] sm:$0xf] }
  0x28   : > { %521 = vrot.lane.b32.xlu0 %v408_v61, %s6053_s8  ;;  %v464_v45 = vsel %vm364_vm1, %v459_v36, %v463_v37  ;;  %v571_v48 = vsel %vm552_vm0, %v568_v0, %v570_v25  ;;  %v451_v49 = vor.u32 %v449_v40, %v447_v6  ;;  %v577_v51 = vsel %vm552_vm0, %v574_v41, %v576_v42  ;;  %v5954_v6 = vld [vmem:[%s6109_s29 + $0x98] ss:$0 sps:$4 sm:$0x33]  }
  0x29   : > { %v475_v52 = vor.u32 %v473_v43, %v471_v46  ;;  %v479_v53 = vrot.slane %v477_v47, 1  ;;  %v485_v54 = vshll.u32 %v6252_v44, 16  ;;  %v465_v56 = vshrl.u32 %v6220_v15, 16 }
  0x2a   : > { %v456_v55 = vsel %vm364_vm1, %v451_v49, %v455_v28  ;;  %v578_v57 = vrot.slane %v5948_v31, 1  ;;  %v580_v58 = vrot.slane %v6242_v34, 1  ;;  %v489_v61 = vshrl.u32 %v6252_v44, 16  ;;  %v270_v49 = vld [vmem:[%s6109_s29] sm:$0xe] }
  0x2b   : > { %527 = vrot.lane.b32.xlu1 %v432_v3, %s6053_s8  ;;  %v480_v59 = vsel %vm364_vm1, %v475_v52, %v479_v53  ;;  %v487_v60 = vrot.slane %v485_v54, 1  ;;  %v493_v62 = vshll.u32 %v6260_v50, 16  ;;  %v575_v63 = vsel %vm552_vm0, %v572_v26, %v574_v41 }
  0x2c   : > { %598 = vrot.lane.b32.xlu0 %v563_v10, %s6052_s7  ;;  %v467_v0 = vor.u32 %v465_v56, %v463_v37  ;;  %v581_v1 = vsel %vm552_vm0, %v578_v57, %v580_v58  ;;  %v481_v9 = vshrl.u32 %v6242_v34, 16  ;;  %v582_v12 = vrot.slane %v6252_v44, 1 }
  0x2d   : > { %v491_v2 = vor.u32 %v489_v61, %v487_v60  ;;  %v495_v3 = vrot.slane %v493_v62, 1  ;;  %v584_v13 = vrot.slane %v6260_v50, 1  ;;  %v6293_v18 = vrot.slane %v6285_v14, 1 }
  0x2e   : > { %v472_v8 = vsel %vm364_vm1, %v467_v0, %v471_v46  ;;  %v483_v17 = vor.u32 %v481_v9, %v479_v53  ;;  %v497_v25 = vshrl.u32 %v6260_v50, 16  ;;  %v501_v26 = vshll.u32 %v6285_v14, 16  ;;  %v1383_v53 = vld [vmem:[%s6109_s29 + $0x10] sm:$0xc] }
  0x2f   : > { %604 = vrot.lane.b32.xlu1 %v569_v16, %s6052_s7  ;;  %v496_v10 = vsel %vm364_vm1, %v491_v2, %v495_v3  ;;  %v579_v16 = vsel %vm552_vm0, %v576_v42, %v578_v57  ;;  %v585_v15 = vsel %vm552_vm0, %v582_v12, %v584_v13  ;;  %v748_v28 = vshll.u32 %v5954_v6, 16  ;;  %v1384_v57 = vld [vmem:[%s6109_s29 + $0x14] sm:$0xf] }
  0x30   : > { %525 = vrot.lane.b32.xlu0 %v424_v20, %s6053_s8  ;;  %v6296_v20 = vld [vmem:[%s6109_s29 + $0x90] sm:$0xff]   ;;  %v488_v22 = vsel %vm364_vm1, %v483_v17, %v487_v60  ;;  %v583_v29 = vsel %vm552_vm0, %v580_v58, %v582_v12  ;;  %v587_v30 = vsel %vm552_vm0, %v584_v13, %v6293_v18  ;;  %v503_v36 = vrot.slane %v501_v26, 1  ;;  %v6338_v60 = vld [vmem:[%s6109_s29 + $0x18] sm:$0xff]  }
  0x31   : > { %v768_v31 = vrot.slane %v6296_v20, 1  ;;  %v505_v37 = vshrl.u32 %v6285_v14, 16  ;;  %v740_v38 = vshll.u32 %v6296_v20, 16  ;;  %v752_v40 = vshrl.u32 %v5954_v6, 16 }
  0x32   : > { %v770_v58 = vrot.slane %v5954_v6, 1  ;;  %v5122_v62 = vcombine.low %v270_v49, %v234_v33  ;;  %v6343_v2 = vcombine.low %v1383_v53, %v1384_v57  ;;  %v1526_v17 = vshll.u32 %v6338_v60, 16  ;;  %v6354_v6 = vld [vmem:[%s6109_s29 + $0x20] sm:$0xff]  }
  0x33   : > { %531 = vrot.lane.b32.xlu1 %v448_v27, %s6053_s8  ;;  %v235_v27 = vld [vmem:[%s6109_s29 + $0x8] sm:$0xf]  ;;  %v769_v41 = vsel %vm552_vm0, %v6293_v18, %v768_v31  ;;  %v742_v46 = vrot.slane %v740_v38, 1  ;;  %v6374_v38 = vld [vmem:[%s6109_s29 + $0x30] sm:$0xff]  }
  0x34   : > { %602 = vrot.lane.b32.xlu0 %v567_v32, %s6052_s7  ;;  %v233_v32 = vld [vmem:[%s6109_s29] sm:$0xf]  ;;  %v6311_v34 = vcombine.low %v235_v27, %v6130_v11  ;;  %v744_v11 = vshrl.u32 %v6296_v20, 16  ;;  %v553_v9 = vrot.slane %v5122_v62, 1  ;;  %v1528_v27 = vrot.slane %v1526_v17, 1 }
  0x35   : > { %v6324_v47 = vcombine.low %v233_v32, %v234_v33  ;;  %v1717_v17 = vrot.slane %v6374_v38, 1 }
  0x36   : > { %v373_v42 = vshll.u32 %v6311_v34, 16  ;;  %v377_v52 = vshrl.u32 %v6311_v34, 16 }
  0x37   : > { %608 = vrot.lane.b32.xlu1 %v573_v35, %s6052_s7  ;;  %v499_v35 = vor.u32 %v497_v25, %v495_v3  ;;  %v368_v56 = vshll.u32 %v6324_v47, 16  ;;  %v366_v0 = vshrl.u32 %v6324_v47, 16  ;;  %v771_v3 = vsel %vm552_vm0, %v768_v31, %v770_v58  ;;  %v1421_v25 = vld [vmem:[%s6109_s29 + $0x10] sm:$0x8] }
  0x38   : > { %529 = vrot.lane.b32.xlu0 %v440_v39, %s6053_s8  ;;  %v750_v39 = vrot.slane %v748_v28, 1  ;;  %v1534_v28 = vshll.u32 %v6354_v6, 16  ;;  %v5208_v31 = vcombine.low %v1421_v25, %v1384_v57 }
  0x39   : > { %v504_v43 = vsel %vm364_vm1, %v499_v35, %v503_v36 }
  0x3b   : > { %535 = vrot.lane.b32.xlu1 %v464_v45, %s6053_s8  ;;  %v6322_v45 = vor.u32 %v505_v37, %v503_v36  ;;  %v6371_v36 = vld [vmem:[%s6109_s29 + $0x28] sm:$0xff]   ;;  %v1536_v37 = vrot.slane %v1534_v28, 1 }
  0x3c   : > { %606 = vrot.lane.b32.xlu0 %v571_v48, %s6052_s7  ;;  %v754_v48 = vor.u32 %v752_v40, %v750_v39  ;;  %v1710_v40 = vrot.slane %v5208_v31, 1 }
  0x3d   : > { %v743_v54 = vsel %vm364_vm1, %v6322_v45, %v742_v46 }
  0x3f   : > { %612 = vrot.lane.b32.xlu1 %v577_v51, %s6052_s7  ;;  %v375_v51 = vrot.slane %v373_v42, 1 }
  0x40   : > { %533 = vrot.lane.b32.xlu0 %v456_v55, %s6053_s8  ;;  %v746_v55 = vor.u32 %v744_v11, %v742_v46  ;;  %v1542_v46 = vshll.u32 %v6371_v36, 16 }
  0x41   : > { %v379_v61 = vor.u32 %v377_v52, %v375_v51  ;;  %v1554_v52 = vshrl.u32 %v6374_v38, 16 }
  0x43   : > { %539 = vrot.lane.b32.xlu1 %v480_v59, %s6053_s8  ;;  %v5965_v59 = vld [vmem:[%s6109_s29 + $0x90] ss:$0 sps:$4 sm:$0x11]  }
  0x44   : > { %610 = vrot.lane.b32.xlu0 %v575_v63, %s6052_s7  ;;  %v751_v63 = vsel %vm364_vm1, %v746_v55, %v750_v39  ;;  %v509_v13 = vshll.u32 %v5965_v59, 16  ;;  %v1544_v55 = vrot.slane %v1542_v46, 1  ;;  %v6443_v46 = vld [vmem:[%s6109_s29 + $0x68] sm:$0xff]  }
  0x46   : > { %v511_v33 = vrot.slane %v509_v13, 1 }
  0x47   : > { %616 = vrot.lane.b32.xlu1 %v581_v1, %s6052_s7  ;;  %v370_v1 = vrot.slane %v368_v56, 1  ;;  %v1713_v56 = vrot.slane %v6354_v6, 1 }
  0x48   : > { %537 = vrot.lane.b32.xlu0 %v472_v8, %s6053_s8  ;;  %v384_v8 = vsel %vm364_vm1, %v379_v61, %v6147_v23  ;;  %v512_v11 = vsel %vm364_vm1, %v6322_v45, %v511_v33 }
  0x49   : > { %v371_v12 = vor.u32 %v370_v1, %v366_v0  ;;  %v1546_v1 = vshrl.u32 %v6371_v36, 16 }
  0x4b   : > { %543 = vrot.lane.b32.xlu1 %v496_v10, %s6053_s8  ;;  %v554_v10 = vrot.slane %v6311_v34, 1  ;;  %v376_v26 = vsel %vm364_vm1, %v371_v12, %v375_v51  ;;  %v1715_v51 = vrot.slane %v6371_v36, 1 }
  0x4c   : > { %614 = vrot.lane.b32.xlu0 %v579_v16, %s6052_s7  ;;  %v1521_v16 = vshll.u32 %v6343_v2, 16 }
  0x4d   : > { %v557_v23 = vsel %vm552_vm0, %v554_v10, %v6124_v7  ;;  %v555_v32 = vsel %vm552_vm0, %v553_v9, %v554_v10  ;;  %v1519_v7 = vshrl.u32 %v6343_v2, 16 }
  0x4e   : > { %v1523_v35 = vrot.slane %v1521_v16, 1  ;;  %v1548_v16 = vor.u32 %v1546_v1, %v1544_v55 }
  0x4f   : > { %620 = vrot.lane.b32.xlu1 %v585_v15, %s6052_s7  ;;  %v588_v15 = vrot.slane %v5965_v59, 1  ;;  %v1716_v59 = vsel %vm552_vm0, %v1713_v56, %v1715_v51 }
  0x50   : > { %541 = vrot.lane.b32.xlu0 %v488_v22, %s6053_s8  ;;  %v1530_v22 = vshrl.u32 %v6338_v60, 16  ;;  %v1524_v42 = vor.u32 %v1523_v35, %v1519_v7  ;;  %v1718_v35 = vsel %vm552_vm0, %v1715_v51, %v1717_v17 }
  0x52   : > { %v1529_v53 = vsel %vm364_vm1, %v1524_v42, %v1528_v27 }
  0x53   : > { %622 = vrot.lane.b32.xlu1 %v587_v30, %s6052_s7  ;;  %v1532_v30 = vor.u32 %v1530_v22, %v1528_v27  ;;  %v6417_v22 = vld [vmem:[%s6109_s29 + $0x50] sm:$0xff]   ;;  %v6423_v27 = vld [vmem:[%s6109_s29 + $0x58] sm:$0xff]  }
  0x54   : > { %618 = vrot.lane.b32.xlu0 %v583_v29, %s6052_s7  ;;  %v589_v29 = vsel %vm552_vm0, %v6293_v18, %v588_v15  ;;  %v1711_v18 = vrot.slane %v6338_v60, 1  ;;  %v1586_v33 = vshrl.u32 %v6417_v22, 16  ;;  %v1590_v7 = vshll.u32 %v6423_v27, 16 }
  0x55   : > { %v1537_v39 = vsel %vm364_vm1, %v1532_v30, %v1536_v37  ;;  %v1582_v30 = vshll.u32 %v6417_v22, 16 }
  0x56   : > { %v1712_v49 = vsel %vm552_vm0, %v1710_v40, %v1711_v18  ;;  %v1714_v13 = vsel %vm552_vm0, %v1711_v18, %v1713_v56  ;;  %v6437_v40 = vld [vmem:[%s6109_s29 + $0x60] sm:$0xff]  }
  0x57   : > { %774 = vrot.lane.b32.xlu1 %v769_v41, %s6052_s7  ;;  %v6381_v41 = vld [vmem:[%s6109_s29 + $0x38] sm:$0xff]   ;;  %v1584_v18 = vrot.slane %v1582_v30, 1  ;;  %v1598_v51 = vshll.u32 %v6437_v40, 16 }
  0x58   : > { %545 = vrot.lane.b32.xlu0 %v504_v43, %s6053_s8  ;;  %v1538_v43 = vshrl.u32 %v6354_v6, 16  ;;  %v1558_v45 = vshll.u32 %v6381_v41, 16  ;;  %v1719_v9 = vrot.slane %v6381_v41, 1 }
  0x59   : > { %v1588_v42 = vor.u32 %v1586_v33, %v1584_v18 }
  0x5a   : > { %v1560_v62 = vrot.slane %v1558_v45, 1  ;;  %v1720_v25 = vsel %vm552_vm0, %v1717_v17, %v1719_v9  ;;  %v1727_v45 = vrot.slane %v6423_v27, 1 }
  0x5b   : > { %761 = vrot.lane.b32.xlu1 %v754_v48, %s6053_s8  ;;  %v1550_v48 = vshll.u32 %v6374_v38, 16 }
  0x5c   : > { %757 = vrot.lane.b32.xlu0 %v743_v54, %s6053_s8  ;;  %v1540_v54 = vor.u32 %v1538_v43, %v1536_v37  ;;  %v1592_v43 = vrot.slane %v1590_v7, 1 }
  0x5d   : > { %v1552_v57 = vrot.slane %v1550_v48, 1 }
  0x5e   : > { %v1545_v0 = vsel %vm364_vm1, %v1540_v54, %v1544_v55  ;;  %v1606_v54 = vshll.u32 %v6443_v46, 16 }
  0x5f   : > { %778 = vrot.lane.b32.xlu1 %v770_v58, %s6052_s7  ;;  %v6397_v58 = vld [vmem:[%s6109_s29 + $0x40] sm:$0xff]   ;;  %v1556_v61 = vor.u32 %v1554_v52, %v1552_v57  ;;  %v1553_v28 = vsel %vm364_vm1, %v1548_v16, %v1552_v57  ;;  %v1593_v52 = vsel %vm364_vm1, %v1588_v42, %v1592_v43 }
  0x60   : > { %759 = vrot.lane.b32.xlu0 %v751_v63, %s6053_s8  ;;  %v6403_v63 = vld [vmem:[%s6109_s29 + $0x48] sm:$0xff]   ;;  %v1570_v10 = vshrl.u32 %v6397_v58, 16 }
  0x61   : > { %v1574_v12 = vshll.u32 %v6403_v63, 16 }
  0x63   : > { %515 = vrot.lane.b32.xlu1 %v384_v8, %s6053_s8  ;;  %v1561_v8 = vsel %vm364_vm1, %v1556_v61, %v1560_v62  ;;  %v1600_v61 = vrot.slane %v1598_v51, 1 }
  0x64   : > { %776 = vrot.lane.b32.xlu0 %v771_v3, %s6052_s7  ;;  %v1566_v3 = vshll.u32 %v6397_v58, 16 }
  0x66   : > { %v1568_v15 = vrot.slane %v1566_v3, 1  ;;  %v1608_v3 = vrot.slane %v1606_v54, 1 }
  0x67   : > { %592 = vrot.lane.b32.xlu1 %v557_v23, %s6052_s7 }
  0x68   : > { %513 = vrot.lane.b32.xlu0 %v376_v26, %s6053_s8  ;;  %v1572_v23 = vor.u32 %v1570_v10, %v1568_v15  ;;  %v1576_v26 = vrot.slane %v1574_v12, 1  ;;  %v1594_v12 = vshrl.u32 %v6423_v27, 16 }
  0x6a   : > { %v1577_v31 = vsel %vm364_vm1, %v1572_v23, %v1576_v26  ;;  %v1596_v30 = vor.u32 %v1594_v12, %v1592_v43 }
  0x6b   : > { %624 = vrot.lane.b32.xlu1 %v589_v29, %s6052_s7  ;;  %v1562_v29 = vshrl.u32 %v6381_v41, 16 }
  0x6c   : > { %590 = vrot.lane.b32.xlu0 %v555_v32, %s6052_s7  ;;  %v1723_v32 = vrot.slane %v6403_v63, 1  ;;  %v1601_v43 = vsel %vm364_vm1, %v1596_v30, %v1600_v61 }
  0x6d   : > { %v1564_v37 = vor.u32 %v1562_v29, %v1560_v62  ;;  %v6457_v62 = vld [vmem:[%s6109_s29 + $0x70] sm:$0xff]  }
  0x6e   : > { %v1614_v16 = vshll.u32 %v6457_v62, 16 }
  0x6f   : > { %1671 = vrot.lane.b32.xlu1 %v1537_v39, %s6053_s8  ;;  %v1721_v39 = vrot.slane %v6397_v58, 1  ;;  %v1569_v48 = vsel %vm364_vm1, %v1564_v37, %v1568_v15  ;;  %v1731_v15 = vrot.slane %v6443_v46, 1 }
  0x70   : > { %547 = vrot.lane.b32.xlu0 %v512_v11, %s6053_s8  ;;  %v1616_v37 = vrot.slane %v1614_v16, 1 }
  0x71   : > { %v1724_v11 = vsel %vm552_vm0, %v1721_v39, %v1723_v32  ;;  %v1722_v56 = vsel %vm552_vm0, %v1719_v9, %v1721_v39  ;;  %v6487_v39 = vld [vmem:[%s6109_s29 + $0x88] sm:$0xff]  }
  0x73   : > { %1747 = vrot.lane.b32.xlu1 %v1712_v49, %s6052_s7  ;;  %v1578_v49 = vshrl.u32 %v6403_v63, 16 }
  0x74   : > { %1669 = vrot.lane.b32.xlu0 %v1529_v53, %s6053_s8  ;;  %v1602_v53 = vshrl.u32 %v6437_v40, 16 }
  0x75   : > { %v1580_v57 = vor.u32 %v1578_v49, %v1576_v26 }
  0x76   : > { %v1604_v1 = vor.u32 %v1602_v53, %v1600_v61 }
  0x77   : > { %1751 = vrot.lane.b32.xlu1 %v1716_v59, %s6052_s7  ;;  %v1725_v59 = vrot.slane %v6417_v22, 1  ;;  %v1585_v9 = vsel %vm364_vm1, %v1580_v57, %v1584_v18 }
  0x78   : > { %1673 = vrot.lane.b32.xlu0 %v1545_v0, %s6053_s8  ;;  %v1609_v17 = vsel %vm364_vm1, %v1604_v1, %v1608_v3 }
  0x79   : > { %v1728_v0 = vsel %vm552_vm0, %v1725_v59, %v1727_v45  ;;  %v1726_v29 = vsel %vm552_vm0, %v1723_v32, %v1725_v59 }
  0x7b   : > { %1677 = vrot.lane.b32.xlu1 %v1561_v8, %s6053_s8  ;;  %v6465_v8 = vld [vmem:[%s6109_s29 + $0x78] sm:$0xff]  }
  0x7c   : > { %1749 = vrot.lane.b32.xlu0 %v1714_v13, %s6052_s7  ;;  %v1622_v23 = vshll.u32 %v6465_v8, 16  ;;  %v1735_v61 = vrot.slane %v6465_v8, 1 }
  0x7f   : > { %1755 = vrot.lane.b32.xlu1 %v1720_v25, %s6052_s7  ;;  %v1618_v25 = vshrl.u32 %v6457_v62, 16 }
  0x80   : > { %1675 = vrot.lane.b32.xlu0 %v1553_v28, %s6053_s8 }
  0x81   : > { %v1620_v18 = vor.u32 %v1618_v25, %v1616_v37  ;;  %v1733_v25 = vrot.slane %v6457_v62, 1 }
  0x83   : > { %1681 = vrot.lane.b32.xlu1 %v1577_v31, %s6053_s8  ;;  %v6480_v31 = vld [vmem:[%s6109_s29 + $0x80] sm:$0xff]  }
  0x84   : > { %1753 = vrot.lane.b32.xlu0 %v1718_v35, %s6052_s7  ;;  %v1729_v35 = vrot.slane %v6437_v40, 1  ;;  %v1630_v49 = vshll.u32 %v6480_v31, 16 }
  0x86   : > { %v1732_v32 = vsel %vm552_vm0, %v1729_v35, %v1731_v15  ;;  %v1730_v1 = vsel %vm552_vm0, %v1727_v45, %v1729_v35  ;;  %v6017_v35 = vld [vmem:[%s6109_s29 + $0x20] sm:$0xff]  }
  0x87   : > { %1759 = vrot.lane.b32.xlu1 %v1724_v11, %s6052_s7  ;;  %v1624_v11 = vrot.slane %v1622_v23, 1  ;;  %v6524_v23 = vld [vmem:[%s6109_s29 + $0x90] sm:$0xff]  }
  0x88   : > { %1679 = vrot.lane.b32.xlu0 %v1569_v48, %s6053_s8  ;;  %v1610_v48 = vshrl.u32 %v6443_v46, 16 }
  0x89   : > { %v595_v55 = vpop.permute.xlu1 %594 }
  0x8b   : > { %1685 = vrot.lane.b32.xlu1 %v1593_v52, %s6053_s8 }
  0x8c   : > { %1757 = vrot.lane.b32.xlu0 %v1722_v56, %s6052_s7  ;;  %v1638_v56 = vshll.u32 %v6487_v39, 16 }
  0x8d   : > { %v520_v10 = vpop.permute.xlu1 %519 }
  0x8e   : > { %v518_v13 = vpop.permute.xlu0 %517  ;;  %v633_v26 = vsel %vm226_vm2, %v6118_v5, %v520_v10  ;;  %v1612_v10 = vor.u32 %v1610_v48, %v1608_v3 }
  0x8f   : > { %1763 = vrot.lane.b32.xlu1 %v1728_v0, %s6052_s7  ;;  %v631_v33 = vsel %vm226_vm2, %v6115_v4, %v518_v13 }
  0x90   : > { %1683 = vrot.lane.b32.xlu0 %v1585_v9, %s6053_s8  ;;  %v6497_v4 = vsel %vm662_vm3, %v631_v33, %v595_v55  ;;  %v1634_v55 = vshrl.u32 %v6480_v31, 16  ;;  %v1632_v9 = vrot.slane %v1630_v49, 1  ;;  %v1617_v33 = vsel %vm364_vm1, %v1612_v10, %v1616_v37 }
  0x91   : > { %v597_v28 = vpop.permute.xlu1 %596  ;;  %v830_v59 = vrot.slane %v6497_v4, 1  ;;  %v1739_v37 = vrot.slane %v6487_v39, 1 }
  0x92   : > { %v756_v7 = vpop.permute.xlu0 %755  ;;  %v6490_v5 = vsel %vm662_vm3, %v633_v26, %v597_v28  ;;  %v1636_v3 = vor.u32 %v1634_v55, %v1632_v9  ;;  %v1736_v26 = vsel %vm552_vm0, %v1733_v25, %v1735_v61  ;;  %v6537_v28 = vld [vmem:[%s6109_s29 + $0x98] sm:$0xff]  }
  0x93   : > { %1689 = vrot.lane.b32.xlu1 %v1609_v17, %s6053_s8  ;;  %v781_v51 = vsel %vm226_vm2, %v6140_v19, %v756_v7  ;;  %v832_v53 = vrot.slane %v6490_v5, 1  ;;  %v1625_v19 = vsel %vm364_vm1, %v1620_v18, %v1624_v11  ;;  %v5970_v17 = vld [vmem:[%s8376_s1 + $0x8] sm:$0xff]   ;;  %v1626_v7 = vshrl.u32 %v6465_v8, 16 }
  0x94   : > { %1761 = vrot.lane.b32.xlu0 %v1726_v29, %s6052_s7 }
  0x95   : > { %v524_v42 = vpop.permute.xlu1 %523  ;;  %v833_v45 = vsel %vm552_vm0, %v830_v59, %v832_v53 }
  0x96   : > { %v773_v52 = vpop.permute.xlu0 %772  ;;  %v637_v12 = vsel %vm226_vm2, %v6144_v21, %v524_v42  ;;  %v6529_v21 = vrot.slane %v1638_v56, 1  ;;  %v5973_v42 = vld [vmem:[%s8376_s1 + $0x10] sm:$0xff]   ;;  %v1734_v56 = vsel %vm552_vm0, %v1731_v15, %v1733_v25 }
  0x97   : > { %v790_v54 = vsel %vm662_vm3, %v781_v51, %v773_v52  ;;  %1767 = vrot.lane.b32.xlu1 %v1732_v32, %s6052_s7  ;;  %v1650_v52 = vshrl.u32 %v6524_v23, 16 }
  0x98   : > { %v829_v57 = vrot.slane %v790_v54, 1  ;;  %1687 = vrot.lane.b32.xlu0 %v1601_v43, %s6053_s8  ;;  %v1646_v43 = vshll.u32 %v6524_v23, 16  ;;  %v1654_v54 = vshll.u32 %v6537_v28, 16 }
  0x99   : > { %v601_v0 = vpop.permute.xlu1 %600 }
  0x9a   : > { %v522_v13 = vpop.permute.xlu0 %521  ;;  %v831_v16 = vsel %vm552_vm0, %v829_v57, %v830_v59  ;;  %v6540_v29 = vsel %vm662_vm3, %v637_v12, %v601_v0  ;;  %v1628_v57 = vor.u32 %v1626_v7, %v1624_v11  ;;  %v1737_v59 = vrot.slane %v6480_v31, 1 }
  0x9b   : > { %5501 = vmatprep.mubr.msk.bf16.mxu0 %vm902_vm4, %v831_v16  ;;  %1693 = vrot.lane.b32.xlu1 %v1625_v19, %s6053_s8  ;;  %v635_v32 = vsel %vm226_vm2, %v6017_v35, %v522_v13  ;;  %v836_v49 = vrot.slane %v6540_v29, 1  ;;  %v6018_v19 = vld [vmem:[%s6109_s29 + $0x38] sm:$0xff]   ;;  %v1648_v16 = vrot.slane %v1646_v43, 1  ;;  %v5981_v35 = vld [vmem:[%s8376_s1 + $0x20] sm:$0xff]   ;;  %v1743_v43 = vrot.slane %v6537_v28, 1 }
  0x9c   : > { %5502 = vmatmul.mubr.msk.bf16.vlgmr.msra.gmra.mrb[0].mxu0 %vm902_vm4, %v833_v45  ;;  %1765 = vrot.lane.b32.xlu0 %v1730_v1, %s6052_s7  ;;  %v5978_v13 = vld [vmem:[%s8376_s1 + $0x18] sm:$0xff]   ;;  %v1740_v15 = vsel %vm552_vm0, %v1737_v59, %v1739_v37  ;;  %v1633_v45 = vsel %vm364_vm1, %v1628_v57, %v1632_v9 }
  0x9d   : > { %5538 = vmatpush3.bf16.msra.mxu0 %v6228_v24  ;;  %v528_v30 = vpop.permute.xlu1 %527  ;;  %v1641_v24 = vsel %vm364_vm1, %v1636_v3, %v6529_v21  ;;  %v1652_v11 = vor.u32 %v1650_v52, %v1648_v16  ;;  %v1642_v3 = vshrl.u32 %v6487_v39, 16 }
  0x9e   : > { %v599_v18 = vpop.permute.xlu0 %598  ;;  %5539 = vmatprep.subr.bf16.mxu0 %v5970_v17  ;;  %v641_v0 = vsel %vm226_vm2, %v6018_v19, %v528_v30  ;;  %v6019_v30 = vld [vmem:[%s6109_s29 + $0x30] sm:$0xff]  }
  0x9f   : > { %v6552_v48 = vsel %vm662_vm3, %v635_v32, %v599_v18  ;;  %1771 = vrot.lane.b32.xlu1 %v1736_v26, %s6052_s7  ;;  %v6587_v26 = vld [vmem:[%s6109_s29 + $0xa0] ss:$0 sps:$4 sm:$0x77]   ;;  %v1644_v52 = vor.u32 %v1642_v3, %v6529_v21 }
  0xa0   : > { %v834_v51 = vrot.slane %v6552_v48, 1  ;;  %1691 = vrot.lane.b32.xlu0 %v1617_v33, %s6053_s8  ;;  %v1666_v21 = vshrl.u32 %v6587_v26, 16  ;;  %v6634_v3 = vld [vmem:[%s8376_s1 + $0x60] sm:$0xff]  }
  0xa1   : > { %v605_v55 = vpop.permute.xlu1 %604  ;;  %5540 = vmatpush3.bf16.msra.mxu0 %v5970_v17 }
  0xa2   : > { %v526_v1 = vpop.permute.xlu0 %525  ;;  %v835_v10 = vsel %vm552_vm0, %v832_v53, %v834_v51  ;;  %v837_v12 = vsel %vm552_vm0, %v834_v51, %v836_v49  ;;  %5541 = vmatprep.subr.bf16.mxu0 %v5973_v42  ;;  %v1656_v53 = vrot.slane %v1654_v54, 1  ;;  %v6582_v17 = vsel %vm662_vm3, %v641_v0, %v605_v55  ;;  %v6020_v55 = vld [vmem:[%s6109_s29 + $0x48] sm:$0xff]  }
  0xa3   : > { %5505 = vmatprep.mubr.msk.bf16.mxu0 %vm902_vm4, %v835_v10  ;;  %1697 = vrot.lane.b32.xlu1 %v1641_v24, %s6053_s8  ;;  %v639_v33 = vsel %vm226_vm2, %v6019_v30, %v526_v1  ;;  %v840_v9 = vrot.slane %v6582_v17, 1  ;;  %v1738_v51 = vsel %vm552_vm0, %v1735_v61, %v1737_v59  ;;  %v1662_v54 = vshll.u32 %v6587_v26, 16  ;;  %v5987_v1 = vld [vmem:[%s8376_s1 + $0x28] sm:$0xff]  }
  0xa4   : > { %5506 = vmatmul.mubr.msk.bf16.gmra.mrb[4].mxu0 %vm902_vm4, %v837_v12  ;;  %1769 = vrot.lane.b32.xlu0 %v1734_v56, %s6052_s7  ;;  %v1741_v61 = vrot.slane %v6524_v23, 1  ;;  %v1649_v12 = vsel %vm364_vm1, %v1644_v52, %v1648_v16 }
  0xa5   : > { %v532_v25 = vpop.permute.xlu1 %531  ;;  %5542 = vmatpush3.bf16.msra.mxu0 %v5973_v42  ;;  %v1657_v42 = vsel %vm364_vm1, %v1652_v11, %v1656_v53  ;;  %v6021_v11 = vld [vmem:[%s6109_s29 + $0x40] sm:$0xff]  }
  0xa6   : > { %v603_v7 = vpop.permute.xlu0 %602  ;;  %5543 = vmatprep.subr.bf16.mxu0 %v5978_v13  ;;  %v645_v56 = vsel %vm226_vm2, %v6020_v55, %v532_v25 }
  0xa7   : > { %v6595_v32 = vsel %vm662_vm3, %v639_v33, %v603_v7  ;;  %1775 = vrot.lane.b32.xlu1 %v1740_v15, %s6052_s7  ;;  %v1664_v15 = vrot.slane %v1662_v54, 1 }
  0xa8   : > { %v838_v18 = vrot.slane %v6595_v32, 1  ;;  %1695 = vrot.lane.b32.xlu0 %v1633_v45, %s6053_s8 }
  0xa9   : > { %v609_v24 = vpop.permute.xlu1 %608  ;;  %5544 = vmatpush3.bf16.msra.mxu0 %v5978_v13  ;;  %v1658_v13 = vshrl.u32 %v6537_v28, 16  ;;  %v1668_v16 = vor.u32 %v1666_v21, %v1664_v15 }
  0xaa   : > { %v530_v57 = vpop.permute.xlu0 %529  ;;  %v839_v19 = vsel %vm552_vm0, %v836_v49, %v838_v18  ;;  %v841_v0 = vsel %vm552_vm0, %v838_v18, %v840_v9  ;;  %5545 = vmatprep.subr.bf16.mxu0 %v5981_v35  ;;  %v1744_v49 = vsel %vm552_vm0, %v1741_v61, %v1743_v43  ;;  %v6625_v59 = vsel %vm662_vm3, %v645_v56, %v609_v24  ;;  %v6022_v24 = vld [vmem:[%s6109_s29 + $0x58] sm:$0xff]  }
  0xab   : > { %5509 = vmatprep.mubr.msk.bf16.mxu0 %vm902_vm4, %v839_v19  ;;  %1701 = vrot.lane.b32.xlu1 %v1657_v42, %s6053_s8  ;;  %v643_v25 = vsel %vm226_vm2, %v6021_v11, %v530_v57  ;;  %v844_v33 = vrot.slane %v6625_v59, 1  ;;  %v1742_v18 = vsel %vm552_vm0, %v1739_v37, %v1741_v61  ;;  %v1660_v42 = vor.u32 %v1658_v13, %v1656_v53  ;;  %v6023_v57 = vld [vmem:[%s6109_s29 + $0x50] sm:$0xff]  }
  0xac   : > { %5510 = vmatmul.mubr.msk.bf16.gmra.mrb[8].mxu0 %vm902_vm4, %v841_v0  ;;  %1773 = vrot.lane.b32.xlu0 %v1738_v51, %s6052_s7 }
  0xad   : > { %v536_v10 = vpop.permute.xlu1 %535  ;;  %5546 = vmatpush3.bf16.msra.mxu0 %v5981_v35  ;;  %v1665_v56 = vsel %vm364_vm1, %v1660_v42, %v1664_v15 }
  0xae   : > { %v607_v45 = vpop.permute.xlu0 %606  ;;  %5547 = vmatprep.subr.bf16.mxu0 %v5987_v1  ;;  %v649_v51 = vsel %vm226_vm2, %v6022_v24, %v536_v10  ;;  %v6024_v10 = vld [vmem:[%s6109_s29 + $0x68] sm:$0xff]  }
  0xaf   : > { %v6637_v30 = vsel %vm662_vm3, %v643_v25, %v607_v45  ;;  %1779 = vrot.lane.b32.xlu1 %v1744_v49, %s6052_s7 }
  0xb0   : > { %v842_v7 = vrot.slane %v6637_v30, 1  ;;  %1699 = vrot.lane.b32.xlu0 %v1649_v12, %s6053_s8 }
  0xb1   : > { %v613_v35 = vpop.permute.xlu1 %612  ;;  %5548 = vmatpush3.bf16.msra.mxu0 %v5987_v1 }
  0xb2   : > { %v534_v52 = vpop.permute.xlu0 %533  ;;  %v843_v54 = vsel %vm552_vm0, %v840_v9, %v842_v7  ;;  %v845_v55 = vsel %vm552_vm0, %v842_v7, %v844_v33  ;;  %5585 = vmatprep.subr.bf16.mxu0 %v6634_v3  ;;  %v6656_v37 = vsel %vm662_vm3, %v649_v51, %v613_v35  ;;  %v1745_v9 = vrot.slane %v6587_v26, 1 }
  0xb3   : > { %5513 = vmatprep.mubr.msk.bf16.mxu0 %vm902_vm4, %v843_v54  ;;  %1705 = vrot.lane.b32.xlu1 %v1668_v16, %s6053_s8  ;;  %v647_v19 = vsel %vm226_vm2, %v6023_v57, %v534_v52  ;;  %v848_v61 = vrot.slane %v6656_v37, 1 }
  0xb4   : > { %5514 = vmatmul.mubr.msk.bf16.gmra.mrb[12].mxu0 %vm902_vm4, %v845_v55  ;;  %1777 = vrot.lane.b32.xlu0 %v1742_v18, %s6052_s7  ;;  %v1746_v26 = vsel %vm552_vm0, %v1743_v43, %v1745_v9  ;;  %v6025_v43 = vld [vmem:[%s6109_s29 + $0x60] sm:$0xff]  }
  0xb5   : > { %v540_v53 = vpop.permute.xlu1 %539 }
  0xb6   : > { %v611_v0 = vpop.permute.xlu0 %610  ;;  %v653_v12 = vsel %vm226_vm2, %v6024_v10, %v540_v53 }
  0xb7   : > { %v6663_v1 = vsel %vm662_vm3, %v647_v19, %v611_v0  ;;  %1783 = vrot.lane.b32.xlu1 %v1745_v9, %s6052_s7 }
  0xb8   : > { %v846_v21 = vrot.slane %v6663_v1, 1  ;;  %1703 = vrot.lane.b32.xlu0 %v1665_v56, %s6053_s8  ;;  %v6026_v56 = vld [vmem:[%s6109_s29 + $0x70] sm:$0xff]  }
  0xb9   : > { %v617_v49 = vpop.permute.xlu1 %616 }
  0xba   : > { %v538_v13 = vpop.permute.xlu0 %537  ;;  %v847_v15 = vsel %vm552_vm0, %v844_v33, %v846_v21  ;;  %v849_v11 = vsel %vm552_vm0, %v846_v21, %v848_v61  ;;  %v6680_v25 = vsel %vm662_vm3, %v653_v12, %v617_v49 }
  0xbb   : > { %5517 = vmatprep.mubr.msk.bf16.mxu0 %vm902_vm4, %v847_v15  ;;  %v651_v16 = vsel %vm226_vm2, %v6025_v43, %v538_v13  ;;  %v852_v33 = vrot.slane %v6680_v25, 1 }
  0xbc   : > { %5518 = vmatmul.mubr.msk.bf16.gmra.mrb[16].mxu0 %vm902_vm4, %v849_v11  ;;  %1781 = vrot.lane.b32.xlu0 %v1746_v26, %s6052_s7 }
  0xbd   : > { %v544_v45 = vpop.permute.xlu1 %543 }
  0xbe   : > { %v615_v7 = vpop.permute.xlu0 %614  ;;  %v657_v24 = vsel %vm226_vm2, %v6252_v44, %v544_v45  ;;  %v5984_v45 = vld [vmem:[%s6109_s29 + $0x98] ss:$0 sps:$4 sm:$0x11]  }
  0xbf   : > { %v6685_v35 = vsel %vm662_vm3, %v651_v16, %v615_v7 }
  0xc0   : > { %v850_v18 = vrot.slane %v6685_v35, 1 }
  0xc1   : > { %v621_v42 = vpop.permute.xlu1 %620 }
  0xc2   : > { %v542_v51 = vpop.permute.xlu0 %541  ;;  %v851_v52 = vsel %vm552_vm0, %v848_v61, %v850_v18  ;;  %v853_v54 = vsel %vm552_vm0, %v850_v18, %v852_v33  ;;  %v6696_v55 = vsel %vm662_vm3, %v657_v24, %v621_v42 }
  0xc3   : > { %5521 = vmatprep.mubr.msk.bf16.mxu0 %vm902_vm4, %v851_v52  ;;  %v655_v9 = vsel %vm226_vm2, %v6026_v56, %v542_v51  ;;  %v856_v19 = vrot.slane %v6696_v55, 1 }
  0xc4   : > { %5522 = vmatmul.mubr.msk.bf16.gmra.mrb[20].mxu0 %vm902_vm4, %v853_v54 }
  0xc5   : > { %v623_v53 = vpop.permute.xlu1 %622 }
  0xc6   : > { %v619_v57 = vpop.permute.xlu0 %618 }
  0xc7   : > { %v6701_v44 = vsel %vm662_vm3, %v655_v9, %v619_v57 }
  0xc8   : > { %v854_v0 = vrot.slane %v6701_v44, 1 }
  0xc9   : > { %v775_v61 = vpop.permute.xlu1 %774 }
  0xca   : > { %v546_v21 = vpop.permute.xlu0 %545  ;;  %v855_v49 = vsel %vm552_vm0, %v852_v33, %v854_v0  ;;  %v857_v26 = vsel %vm552_vm0, %v854_v0, %v856_v19 }
  0xcb   : > { %v659_v10 = vsel %vm226_vm2, %v6260_v50, %v546_v21  ;;  %5525 = vmatprep.mubr.msk.bf16.mxu0 %vm902_vm4, %v855_v49 }
  0xcc   : > { %v6711_v12 = vsel %vm662_vm3, %v659_v10, %v623_v53  ;;  %5526 = vmatmul.mubr.msk.bf16.gmra.mrb[24].mxu0 %vm902_vm4, %v857_v26  ;;  %v5993_v10 = vld [vmem:[%s8376_s1 + $0x68] sm:$0xff]  }
  0xcd   : > { %v858_v13 = vrot.slane %v6711_v12, 1  ;;  %v762_v15 = vpop.permute.xlu1 %761 }
  0xce   : > { %v758_v11 = vpop.permute.xlu0 %757  ;;  %v788_v33 = vsel %vm226_vm2, %v5984_v45, %v762_v15  ;;  %v5995_v15 = vld [vmem:[%s8376_s1 + $0x78] sm:$0xff]   ;;  %v5997_v45 = vld [vmem:[%s8376_s1 + $0x88] sm:$0xff]  }
  0xcf   : > { %v783_v43 = vsel %vm226_vm2, %v6285_v14, %v758_v11  ;;  %v859_v16 = vsel %vm552_vm0, %v856_v19, %v858_v13 }
  0xd0   : > { %v792_v7 = vsel %vm662_vm3, %v783_v43, %v775_v61  ;;  %5529 = vmatprep.mubr.msk.bf16.mxu0 %vm902_vm4, %v859_v16 }
  0xd1   : > { %v860_v50 = vrot.slane %v792_v7, 1  ;;  %v779_v42 = vpop.permute.xlu1 %778 }
  0xd2   : > { %v760_v18 = vpop.permute.xlu0 %759  ;;  %v796_v51 = vsel %vm662_vm3, %v788_v33, %v779_v42 }
  0xd3   : > { %v861_v24 = vsel %vm552_vm0, %v858_v13, %v860_v50  ;;  %v785_v14 = vsel %vm226_vm2, %v6296_v20, %v760_v18  ;;  %v864_v53 = vrot.slane %v796_v51, 1 }
  0xd4   : > { %5530 = vmatmul.mubr.msk.bf16.gmra.mrb[28].mxu0 %vm902_vm4, %v861_v24 }
  0xd5   : > { %v516_v19 = vpop.permute.xlu1 %515 }
  0xd6   : > { %v777_v52 = vpop.permute.xlu0 %776  ;;  %v629_v49 = vsel %vm226_vm2, %v6311_v34, %v516_v19  ;;  %v5994_v34 = vld [vmem:[%s8376_s1 + $0x70] sm:$0xff]  }
  0xd7   : > { %v794_v54 = vsel %vm662_vm3, %v785_v14, %v777_v52  ;;  %v6027_v14 = vld [vmem:[%s6109_s29 + $0x88] sm:$0xff]  }
  0xd8   : > { %v862_v56 = vrot.slane %v794_v54, 1 }
  0xd9   : > { %v593_v26 = vpop.permute.xlu1 %592 }
  0xda   : > { %v514_v9 = vpop.permute.xlu0 %513  ;;  %v863_v57 = vsel %vm552_vm0, %v860_v50, %v862_v56  ;;  %v865_v0 = vsel %vm552_vm0, %v862_v56, %v864_v53  ;;  %v666_v13 = vsel %vm662_vm3, %v629_v49, %v593_v26 }
  0xdb   : > { %5533 = vmatprep.mubr.msk.bf16.mxu0 %vm902_vm4, %v863_v57  ;;  %v627_v61 = vsel %vm226_vm2, %v6324_v47, %v514_v9 }
  0xdc   : > { %5534 = vmatmul.mubr.msk.bf16.gmra.mrb[32].mxu0 %vm902_vm4, %v865_v0 }
  0xdd   : > { %v625_v11 = vpop.permute.xlu1 %624 }
  0xde   : > { %v591_v21 = vpop.permute.xlu0 %590 }
  0xdf   : > { %v664_v20 = vsel %vm662_vm3, %v627_v61, %v591_v21 }
  0xe0   : > { %5549 = vmatprep.mubr.msk.bf16.mxu0 %vm902_vm4, %v664_v20 }
  0xe2   : > { %v548_v47 = vpop.permute.xlu0 %547 }
  0xe4   : > { %5550 = vmatmul.mubr.msk.bf16.vlgmr.msra.gmra.mrb[0].mxu0 %vm902_vm4, %v666_v13 }
  0xe5   : > { %5586 = vmatpush3.bf16.msra.mxu0 %v6634_v3  ;;  %5553 = vmatprep.mubr.msk.bf16.mxu0 %vm902_vm4, %v6497_v4  ;;  %v5996_v4 = vld [vmem:[%s8376_s1 + $0x80] sm:$0xff]  }
  0xe6   : > { %5587 = vmatprep.subr.bf16.mxu0 %v5993_v10  ;;  %v1670_v3 = vpop.permute.xlu0 %1669 }
  0xe9   : > { %5588 = vmatpush3.bf16.msra.mxu0 %v5993_v10 }
  0xea   : > { %5589 = vmatprep.subr.bf16.mxu0 %v5994_v34 }
  0xec   : > { %5554 = vmatmul.mubr.msk.bf16.gmra.mrb[4].mxu0 %vm902_vm4, %v6490_v5  ;;  %v1674_v5 = vpop.permute.xlu0 %1673 }
  0xed   : > { %5557 = vmatprep.mubr.msk.bf16.mxu0 %vm902_vm4, %v6552_v48  ;;  %5590 = vmatpush3.bf16.msra.mxu0 %v5994_v34  ;;  %v1672_v48 = vpop.permute.xlu1 %1671  ;;  %v1790_v52 = vsel %vm226_vm2, %v6354_v6, %v1674_v5 }
  0xee   : > { %5591 = vmatprep.subr.bf16.mxu0 %v5995_v15 }
  0xf0   : > { %v1750_v43 = vpop.permute.xlu0 %1749 }
  0xf1   : > { %5592 = vmatpush3.bf16.msra.mxu0 %v5995_v15  ;;  %v1748_v16 = vpop.permute.xlu1 %1747 }
  0xf2   : > { %5593 = vmatprep.subr.bf16.mxu0 %v5996_v4 }
  0xf4   : > { %5558 = vmatmul.mubr.msk.bf16.gmra.mrb[8].mxu0 %vm902_vm4, %v6540_v29  ;;  %v1676_v7 = vpop.permute.xlu0 %1675 }
  0xf5   : > { %5561 = vmatprep.mubr.msk.bf16.mxu0 %vm902_vm4, %v6595_v32  ;;  %5594 = vmatpush3.bf16.msra.mxu0 %v5996_v4  ;;  %v1752_v50 = vpop.permute.xlu1 %1751  ;;  %v1792_v54 = vsel %vm226_vm2, %v6371_v36, %v1676_v7 }
  0xf6   : > { %5595 = vmatprep.subr.bf16.mxu0 %v5997_v45 }
  0xf8   : > { %v1754_v29 = vpop.permute.xlu0 %1753 }
  0xf9   : > { %5596 = vmatpush3.bf16.msra.mxu0 %v5997_v45  ;;  %v1678_v32 = vpop.permute.xlu1 %1677  ;;  %v1831_v9 = vsel %vm662_vm3, %v1792_v54, %v1754_v29 }
  0xfa   : > { %v1900_v0 = vrot.slane %v1831_v9, 2  ;;  %v1794_v6 = vsel %vm226_vm2, %v6374_v38, %v1678_v32 }
  0xfc   : > { %5562 = vmatmul.mubr.msk.bf16.gmra.mrb[12].mxu0 %vm902_vm4, %v6582_v17  ;;  %v1680_v33 = vpop.permute.xlu0 %1679 }
  0xfd   : > { %5565 = vmatprep.mubr.msk.bf16.mxu0 %vm902_vm4, %v6637_v30  ;;  %v1756_v17 = vpop.permute.xlu1 %1755  ;;  %v1796_v36 = vsel %vm226_vm2, %v6381_v41, %v1680_v33 }
  0xfe   : > { %v1833_v49 = vsel %vm662_vm3, %v1794_v6, %v1756_v17 }
  0xff   : > { %v1902_v13 = vrot.slane %v1833_v49, 2 }
 0x100   : > { %v1758_v30 = vpop.permute.xlu0 %1757 }
 0x101   : > { %v1682_v18 = vpop.permute.xlu1 %1681  ;;  %v1835_v10 = vsel %vm662_vm3, %v1796_v36, %v1758_v30  ;;  %v1903_v4 = vsel %vm1894_vm5, %v1900_v0, %v1902_v13 }
 0x102   : > { %v1904_v34 = vrot.slane %v1835_v10, 2  ;;  %v1798_v41 = vsel %vm226_vm2, %v6397_v58, %v1682_v18 }
 0x104   : > { %5566 = vmatmul.mubr.msk.bf16.gmra.mrb[16].mxu0 %vm902_vm4, %v6625_v59  ;;  %v1786_v59 = vsel %vm226_vm2, %v6343_v2, %v1670_v3 }
 0x105   : > { %5569 = vmatprep.mubr.msk.bf16.mxu0 %vm902_vm4, %v6663_v1  ;;  %v1684_v1 = vpop.permute.xlu0 %1683  ;;  %v1760_v42 = vpop.permute.xlu1 %1759  ;;  %v1825_v24 = vsel %vm662_vm3, %v1786_v59, %v1748_v16 }
 0x106   : > { %v1800_v15 = vsel %vm226_vm2, %v6403_v63, %v1684_v1  ;;  %v1837_v3 = vsel %vm662_vm3, %v1798_v41, %v1760_v42 }
 0x109   : > { %v1762_v51 = vpop.permute.xlu0 %1761  ;;  %v1686_v2 = vpop.permute.xlu1 %1685 }
 0x10a   : > { %v1839_v45 = vsel %vm662_vm3, %v1800_v15, %v1762_v51  ;;  %v1802_v16 = vsel %vm226_vm2, %v6417_v22, %v1686_v2 }
 0x10b   : > { %v1908_v58 = vrot.slane %v1839_v45, 2 }
 0x10c   : > { %5570 = vmatmul.mubr.msk.bf16.gmra.mrb[20].mxu0 %vm902_vm4, %v6656_v37  ;;  %v1788_v37 = vsel %vm226_vm2, %v6338_v60, %v1672_v48  ;;  %v661_v60 = vsel %vm226_vm2, %v6027_v14, %v548_v47  ;;  %v1906_v48 = vrot.slane %v1837_v3, 2 }
 0x10d   : > { %5573 = vmatprep.mubr.msk.bf16.mxu0 %vm902_vm4, %v6685_v35  ;;  %v1827_v35 = vsel %vm662_vm3, %v1788_v37, %v1750_v43  ;;  %v1688_v56 = vpop.permute.xlu0 %1687  ;;  %v1764_v57 = vpop.permute.xlu1 %1763 }
 0x10e   : > { %v1804_v63 = vsel %vm226_vm2, %v6423_v27, %v1688_v56  ;;  %v1907_v7 = vsel %vm1894_vm5, %v1904_v34, %v1906_v48  ;;  %v1909_v29 = vsel %vm1894_vm5, %v1906_v48, %v1908_v58  ;;  %v2235_v48 = vlaneseq }
 0x111   : > { %v1766_v61 = vpop.permute.xlu0 %1765  ;;  %v1690_v20 = vpop.permute.xlu1 %1689 }
 0x112   : > { %v1843_v33 = vsel %vm662_vm3, %v1804_v63, %v1766_v61  ;;  %v1806_v22 = vsel %vm226_vm2, %v6437_v40, %v1690_v20 }
 0x113   : > { %v1912_v18 = vrot.slane %v1843_v33, 2 }
 0x114   : > { %5574 = vmatmul.mubr.msk.bf16.gmra.mrb[24].mxu0 %vm902_vm4, %v6680_v25  ;;  %v1896_v25 = vrot.slane %v1827_v35, 2 }
 0x115   : > { %5577 = vmatprep.mubr.msk.bf16.mxu0 %vm902_vm4, %v6701_v44  ;;  %v1895_v44 = vrot.slane %v1825_v24, 2  ;;  %v1692_v38 = vpop.permute.xlu0 %1691  ;;  %v1768_v47 = vpop.permute.xlu1 %1767 }
 0x116   : > { %v1808_v27 = vsel %vm226_vm2, %v6443_v46, %v1692_v38  ;;  %v1845_v42 = vsel %vm662_vm3, %v1806_v22, %v1768_v47  ;;  %v5998_v38 = vld [vmem:[%s6109_s29 + $0xa0] ss:$0 sps:$4 sm:$0x33]  }
 0x117   : > { %v1897_v53 = vsel %vm1894_vm5, %v1895_v44, %v1896_v25 }
 0x119   : > { %v1770_v5 = vpop.permute.xlu0 %1769  ;;  %v1694_v43 = vpop.permute.xlu1 %1693 }
 0x11a   : > { %v1847_v24 = vsel %vm662_vm3, %v1808_v27, %v1770_v5  ;;  %v1810_v46 = vsel %vm226_vm2, %v6457_v62, %v1694_v43  ;;  %v6054_v5 = vmov 0   ;;  %v6887_v43 = vshrl.u32 %v2235_v48, 7 }
 0x11b   : > { %v1916_v44 = vrot.slane %v1847_v24, 2  ;;  %227 = vst.msk [vmem:[#allocation2] sm:$0xff] %vm226_vm2, %v6054_v5  ;;  %232 = vst.msk [vmem:[#allocation2 + $0xa0] sm:$0xff] %vm226_vm2, %v6054_v5 }
 0x11c   : > { %5578 = vmatmul.mubr.msk.bf16.gmra.mrb[28].mxu0 %vm902_vm4, %v6696_v55  ;;  %v698_v55 = vsel %vm662_vm3, %v661_v60, %v625_v11  ;;  %v1905_v11 = vsel %vm1894_vm5, %v1902_v13, %v1904_v34  ;;  %231 = vst.msk [vmem:[#allocation2 + $0x98] sm:$0xf0] %vm230_vm6, %v6054_v5  ;;  %v6891_v63 = vadd.s32 24, %v6887_v43  ;;  %v6904_v33 = vadd.s32 56, %v6887_v43 }
 0x11d   : > { %5581 = vmatprep.mubr.msk.bf16.mxu0 %vm902_vm4, %v6711_v12  ;;  %v1829_v12 = vsel %vm662_vm3, %v1790_v52, %v1752_v50  ;;  %v1841_v50 = vsel %vm662_vm3, %v1802_v16, %v1764_v57  ;;  %v1696_v32 = vpop.permute.xlu0 %1695  ;;  %v1772_v17 = vpop.permute.xlu1 %1771  ;;  %229 = vst.msk [vmem:[#allocation2 + $0x8] sm:$0xf] %vm228_vm7, %v6054_v5 }
 0x11e   : > { %v1898_v19 = vrot.slane %v1829_v12, 2  ;;  %v1910_v30 = vrot.slane %v1841_v50, 2  ;;  %v1812_v2 = vsel %vm226_vm2, %v6465_v8, %v1696_v32  ;;  %v1849_v60 = vsel %vm662_vm3, %v1810_v46, %v1772_v17 }
 0x11f   : > { %v6897_v50 = vadd.s32 48, %v6887_v43  ;;  %v2272_v32 = vcvt.s32.f32 %v6887_v43  ;;  %v6907_v17 = vadd.s32 40, %v6887_v43  ;;  %v2275_v22 = vcvt.s32.f32 %v6891_v63 }
 0x120   : > { %v1899_v21 = vsel %vm1894_vm5, %v1896_v25, %v1898_v19  ;;  %v1901_v26 = vsel %vm1894_vm5, %v1898_v19, %v1900_v0  ;;  %v1911_v37 = vsel %vm1894_vm5, %v1908_v58, %v1910_v30  ;;  %v1913_v35 = vsel %vm1894_vm5, %v1910_v30, %v1912_v18 }
 0x121   : > { %v1774_v59 = vpop.permute.xlu0 %1773  ;;  %v1698_v1 = vpop.permute.xlu1 %1697  ;;  %v1914_v25 = vrot.slane %v1845_v42, 2  ;;  %v2238_v58 = vadd.s32 16, %v6887_v43  ;;  %v2308_v42 = vadd.f32 0.5, %v2272_v32  ;;  %v2277_v24 = vcvt.s32.f32 %v6907_v17 }
 0x122   : > { %v1851_v54 = vsel %vm662_vm3, %v1812_v2, %v1774_v59  ;;  %v1814_v56 = vsel %vm226_vm2, %v6480_v31, %v1698_v1  ;;  %v6915_v59 = vadd.s32 64, %v6887_v43  ;;  %v2311_v46 = vadd.f32 0.5, %v2275_v22 }
 0x123   : > { %v1915_v14 = vsel %vm1894_vm5, %v1912_v18, %v1914_v25  ;;  %v1917_v52 = vsel %vm1894_vm5, %v1914_v25, %v1916_v44  ;;  %v1920_v62 = vrot.slane %v1851_v54, 2  ;;  %v2274_v16 = vcvt.s32.f32 %v2238_v58 }
 0x124   : > { %5582 = vmatmul.mubr.msk.bf16.gmra.mrb[32].mxu0 %vm902_vm4, %v698_v55  ;;  %v1918_v55 = vrot.slane %v1849_v60, 2  ;;  %v6910_v18 = vadd.s32 80, %v6887_v43  ;;  %v2280_v2 = vcvt.s32.f32 %v6915_v59  ;;  %v7032_v59 = vadd.s32 160, %v6887_v43 }
 0x125   : > { %5597 = vmatprep.mubr.msk.bf16.mxu0 %vm902_vm4, %v1897_v53  ;;  %v1700_v40 = vpop.permute.xlu0 %1699  ;;  %v1776_v51 = vpop.permute.xlu1 %1775  ;;  %v2310_v30 = vadd.f32 0.5, %v2274_v16 }
 0x126   : > { %v1816_v8 = vsel %vm226_vm2, %v6487_v39, %v1700_v40  ;;  %v1919_v9 = vsel %vm1894_vm5, %v1916_v44, %v1918_v55  ;;  %v1853_v57 = vsel %vm662_vm3, %v1814_v56, %v1776_v51  ;;  %v1921_v19 = vsel %vm1894_vm5, %v1918_v55, %v1920_v62 }
 0x127   : > { %v1922_v61 = vrot.slane %v1853_v57, 2  ;;  %v2347_v25 = vmul.f32 0.055555556, %v2310_v30  ;;  %v2282_v44 = vcvt.s32.f32 %v6910_v18  ;;  %v6925_v40 = vadd.s32 88, %v6887_v43 }
 0x128   : > { %v6944_v56 = vadd.s32 72, %v6887_v43  ;;  %v2316_v57 = vadd.f32 0.5, %v2280_v2  ;;  %v6963_v30 = vadd.s32 120, %v6887_v43 }
 0x129   : > { %v1778_v53 = vpop.permute.xlu0 %1777  ;;  %v1702_v12 = vpop.permute.xlu1 %1701  ;;  %v1923_v49 = vsel %vm1894_vm5, %v1920_v62, %v1922_v61  ;;  %v2383_v55 = vfloor.f32 %v2347_v25  ;;  %v2283_v62 = vcvt.s32.f32 %v6925_v40 }
 0x12a   : > { %v1855_v6 = vsel %vm662_vm3, %v1816_v8, %v1778_v53  ;;  %v1818_v39 = vsel %vm226_vm2, %v6524_v23, %v1702_v12  ;;  %v2313_v53 = vadd.f32 0.5, %v2277_v24  ;;  %v2318_v12 = vadd.f32 0.5, %v2282_v44 }
 0x12b   : > { %v1924_v31 = vrot.slane %v1855_v6, 2  ;;  %v2348_v8 = vmul.f32 0.055555556, %v2311_v46 }
 0x12c   : > { %5598 = vmatmul.mubr.msk.bf16.vlgmr.msra.gmra.mrb[0].mxu0 %vm902_vm4, %v1899_v21 }
 0x12d   : > { %5601 = vmatprep.mubr.msk.bf16.mxu0 %vm902_vm4, %v1901_v26  ;;  %v1704_v0 = vpop.permute.xlu0 %1703  ;;  %v1780_v36 = vpop.permute.xlu1 %1779  ;;  %v1925_v13 = vsel %vm1894_vm5, %v1922_v61, %v1924_v31  ;;  %v2350_v61 = vmul.f32 0.055555556, %v2313_v53 }
 0x12e   : > { %v1820_v21 = vsel %vm226_vm2, %v6537_v28, %v1704_v0  ;;  %v1857_v10 = vsel %vm662_vm3, %v1818_v39, %v1780_v36  ;;  %v2419_v39 = vmul.f32 18.0, %v2383_v55 }
 0x12f   : > { %v1926_v41 = vrot.slane %v1857_v10, 2 }
 0x131   : > { %v1782_v20 = vpop.permute.xlu0 %1781  ;;  %v1706_v26 = vpop.permute.xlu1 %1705  ;;  %v1927_v15 = vsel %vm1894_vm5, %v1924_v31, %v1926_v41  ;;  %v6949_v31 = vadd.s32 112, %v6887_v43 }
 0x132   : > { %v1859_v34 = vsel %vm662_vm3, %v1820_v21, %v1782_v20  ;;  %v1823_v47 = vsel %vm226_vm2, %v5998_v38, %v1706_v26  ;;  %v2355_v21 = vmul.f32 0.055555556, %v2318_v12  ;;  %v2319_v20 = vadd.f32 0.5, %v2283_v62 }
 0x133   : > { %v1928_v23 = vrot.slane %v1859_v34, 2  ;;  %v2384_v26 = vfloor.f32 %v2348_v8  ;;  %v6976_v12 = vadd.s32 144, %v6887_v43 }
 0x134   : > { %5602 = vmatmul.mubr.msk.bf16.gmra.mrb[4].mxu0 %vm902_vm4, %v1903_v4 }
 0x135   : > { %5605 = vmatprep.mubr.msk.bf16.mxu0 %vm902_vm4, %v1905_v11  ;;  %v1784_v28 = vpop.permute.xlu1 %1783  ;;  %v1929_v3 = vsel %vm1894_vm5, %v1926_v41, %v1928_v23  ;;  %v6955_v41 = vadd.s32 96, %v6887_v43  ;;  %v2420_v5 = vmul.f32 18.0, %v2384_v26 }
 0x136   : > { %v1861_v4 = vsel %vm662_vm3, %v1823_v47, %v1784_v28  ;;  %v2386_v28 = vfloor.f32 %v2350_v61  ;;  %v7029_v61 = vadd.s32 176, %v6887_v43 }
 0x137   : > { %v1930_v11 = vrot.slane %v1861_v4, 2  ;;  %v6958_v4 = vsub.f32 %v2274_v16, %v2419_v39  ;;  %v2284_v46 = vcvt.s32.f32 %v6955_v41  ;;  %v6980_v8 = vsub.f32 %v2275_v22, %v2420_v5 }
 0x138   : > { %v2294_v40 = vcvt.s32.f32 %v7029_v61 }
 0x139   : > { %v1931_v45 = vsel %vm1894_vm5, %v1928_v23, %v1930_v11  ;;  %v2356_v11 = vmul.f32 0.055555556, %v2319_v20  ;;  %v2320_v63 = vadd.f32 0.5, %v2284_v46  ;;  %v7039_v20 = vadd.s32 168, %v6887_v43 }
 0x13a   : > { %vm2570_vm8 = vcmp.lt.f32.partialorder %v6958_v4, 16.0  ;;  %vm2571_vm9 = vcmp.lt.f32.partialorder %v6980_v8, 16.0 }
 0x13b   : > { %v2392_v53 = vfloor.f32 %v2356_v11  ;;  %v2357_v18 = vmul.f32 0.055555556, %v2320_v63 }
 0x13c   : > { %5606 = vmatmul.mubr.msk.bf16.gmra.mrb[8].mxu0 %vm902_vm4, %v1907_v7  ;;  %v6894_v7 = vadd.s32 8, %v6887_v43 }
 0x13d   : > { %5609 = vmatprep.mubr.msk.bf16.mxu0 %vm902_vm4, %v1909_v29  ;;  %v6900_v29 = vadd.s32 32, %v6887_v43 }
 0x13e   : > { %v2273_v27 = vcvt.s32.f32 %v6894_v7 }
 0x13f   : > { %v2276_v1 = vcvt.s32.f32 %v6900_v29 }
 0x140   : > { %v2309_v51 = vadd.f32 0.5, %v2273_v27 }
 0x141   : > { %v2312_v60 = vadd.f32 0.5, %v2276_v1 }
 0x143   : > { %v2349_v0 = vmul.f32 0.055555556, %v2312_v60  ;;  %v2422_v60 = vmul.f32 18.0, %v2386_v28  ;;  %v7053_v28 = vadd.s32 192, %v6887_v43 }
 0x144   : > { %5610 = vmatmul.mubr.msk.bf16.gmra.mrb[12].mxu0 %vm902_vm4, %v1911_v37  ;;  %v2278_v37 = vcvt.s32.f32 %v6897_v50 }
 0x145   : > { %5613 = vmatprep.mubr.msk.bf16.mxu0 %vm902_vm4, %v1913_v35  ;;  %v2279_v35 = vcvt.s32.f32 %v6904_v33  ;;  %v2385_v38 = vfloor.f32 %v2349_v0 }
 0x147   : > { %v2315_v54 = vadd.f32 0.5, %v2279_v35  ;;  %v2421_v25 = vmul.f32 18.0, %v2385_v38 }
 0x149   : > { %v2352_v36 = vmul.f32 0.055555556, %v2315_v54  ;;  %v6993_v0 = vsub.f32 %v2276_v1, %v2421_v25  ;;  %v2428_v1 = vmul.f32 18.0, %v2392_v53 }
 0x14b   : > { %v2388_v47 = vfloor.f32 %v2352_v36  ;;  %v2290_v36 = vcvt.s32.f32 %v6976_v12  ;;  %v7043_v26 = vsub.f32 %v2283_v62, %v2428_v1  ;;  %v8384_v62 = vcvt.s32.f32 %v7032_v59 }
 0x14c   : > { %5614 = vmatmul.mubr.msk.bf16.gmra.mrb[16].mxu0 %vm902_vm4, %v1915_v14  ;;  %v2314_v14 = vadd.f32 0.5, %v2278_v37  ;;  %vm2572_vm15 = vcmp.lt.f32.partialorder %v6993_v0, 16.0 }
 0x14d   : > { %5617 = vmatprep.mubr.msk.bf16.mxu0 %vm902_vm4, %v1917_v52  ;;  %v2345_v52 = vmul.f32 0.055555556, %v2308_v42 }
 0x14f   : > { %v2381_v6 = vfloor.f32 %v2345_v52 }
 0x151   : > { %v2417_v23 = vmul.f32 18.0, %v2381_v6 }
 0x153   : > { %v6971_v16 = vsub.f32 %v2272_v32, %v2417_v23 }
 0x154   : > { %5618 = vmatmul.mubr.msk.bf16.gmra.mrb[20].mxu0 %vm902_vm4, %v1919_v9  ;;  %v2346_v9 = vmul.f32 0.055555556, %v2309_v51  ;;  %v6967_v51 = vadd.s32 104, %v6887_v43 }
 0x155   : > { %5621 = vmatprep.mubr.msk.bf16.mxu0 %vm902_vm4, %v1921_v19  ;;  %v2351_v19 = vmul.f32 0.055555556, %v2314_v14  ;;  %v2424_v14 = vmul.f32 18.0, %v2388_v47  ;;  %vm2568_vm10 = vcmp.lt.f32.partialorder %v6971_v16, 16.0 }
 0x156   : > { %v2382_v10 = vfloor.f32 %v2346_v9  ;;  %v2285_v22 = vcvt.s32.f32 %v6967_v51 }
 0x157   : > { %v2387_v34 = vfloor.f32 %v2351_v19  ;;  %v7000_v7 = vsub.f32 %v2279_v35, %v2424_v14  ;;  %v7021_v35 = vadd.s32 152, %v6887_v43 }
 0x158   : > { %v2418_v48 = vmul.f32 18.0, %v2382_v10 }
 0x159   : > { %v2423_v42 = vmul.f32 18.0, %v2387_v34  ;;  %v7048_v34 = vadd.s32 208, %v6887_v43  ;;  %v2291_v23 = vcvt.s32.f32 %v7021_v35  ;;  %v8400_v35 = vcvt.s32.f32 %v7032_v59 }
 0x15a   : > { %v6984_v9 = vsub.f32 %v2273_v27, %v2418_v48  ;;  %v7004_v27 = vsub.f32 %v2277_v24, %v2422_v60  ;;  %v7024_v24 = vadd.s32 136, %v6887_v43  ;;  %v7067_v60 = vadd.s32 216, %v6887_v43 }
 0x15b   : > { %v6989_v19 = vsub.f32 %v2278_v37, %v2423_v42  ;;  %v7007_v37 = vadd.s32 128, %v6887_v43  ;;  %v8381_v14 = vcvt.s32.f32 %v7048_v34  ;;  %vm2575_vm14 = vcmp.lt.f32.partialorder %v7000_v7, 16.0 }
 0x15c   : > { %5622 = vmatmul.mubr.msk.bf16.gmra.mrb[24].mxu0 %vm902_vm4, %v1923_v49  ;;  %v2281_v49 = vcvt.s32.f32 %v6944_v56  ;;  %v2289_v47 = vcvt.s32.f32 %v7024_v24  ;;  %v2330_v56 = vadd.f32 0.5, %v2294_v40  ;;  %vm2569_vm11 = vcmp.lt.f32.partialorder %v6984_v9, 16.0 }
 0x15d   : > { %5625 = vmatprep.mubr.msk.bf16.mxu0 %vm902_vm4, %v1925_v13  ;;  %v2353_v13 = vmul.f32 0.055555556, %v2316_v57  ;;  %v2287_v57 = vcvt.s32.f32 %v6963_v30  ;;  %v2288_v39 = vcvt.s32.f32 %v7007_v37  ;;  %vm2574_vm13 = vcmp.lt.f32.partialorder %v6989_v19, 16.0 }
 0x15e   : > { %v2325_v53 = vadd.f32 0.5, %v2289_v47  ;;  %vm2573_vm5 = vcmp.lt.f32.partialorder %v7004_v27, 16.0 }
 0x15f   : > { %v2389_v58 = vfloor.f32 %v2353_v13  ;;  %v2323_v17 = vadd.f32 0.5, %v2287_v57  ;;  %v2326_v13 = vadd.f32 0.5, %v2290_v36  ;;  %v2324_v5 = vadd.f32 0.5, %v2288_v39 }
 0x161   : > { %v2425_v32 = vmul.f32 18.0, %v2389_v58  ;;  %v2360_v38 = vmul.f32 0.055555556, %v2323_v17  ;;  %v8382_v58 = vcvt.s32.f32 %v7039_v20  ;;  %v2363_v25 = vmul.f32 0.055555556, %v2326_v13 }
 0x162   : > { %v2361_v1 = vmul.f32 0.055555556, %v2324_v5 }
 0x163   : > { %v7016_v33 = vsub.f32 %v2280_v2, %v2425_v32  ;;  %v2329_v17 = vadd.f32 0.5, %v8382_v58 }
 0x164   : > { %5626 = vmatmul.mubr.msk.bf16.gmra.mrb[28].mxu0 %vm902_vm4, %v1927_v15  ;;  %v2286_v15 = vcvt.s32.f32 %v6949_v31 }
 0x165   : > { %5629 = vmatprep.mubr.msk.bf16.mxu0 %vm902_vm4, %v1929_v3  ;;  %v2391_v3 = vfloor.f32 %v2355_v21  ;;  %v7036_v21 = vadd.s32 184, %v6887_v43  ;;  %v2366_v58 = vmul.f32 0.055555556, %v2329_v17 }
 0x166   : > { %v2322_v52 = vadd.f32 0.5, %v2286_v15 }
 0x167   : > { %v2427_v54 = vmul.f32 18.0, %v2391_v3  ;;  %v2393_v3 = vfloor.f32 %v2357_v18  ;;  %v8383_v48 = vcvt.s32.f32 %v7036_v21  ;;  %v2399_v18 = vfloor.f32 %v2363_v25 }
 0x168   : > { %v2359_v50 = vmul.f32 0.055555556, %v2322_v52  ;;  %v2396_v52 = vfloor.f32 %v2360_v38  ;;  %v2397_v25 = vfloor.f32 %v2361_v1 }
 0x169   : > { %v7011_v29 = vsub.f32 %v2282_v44, %v2427_v54  ;;  %v2321_v44 = vadd.f32 0.5, %v2285_v22  ;;  %v2327_v54 = vadd.f32 0.5, %v2291_v23  ;;  %v2429_v32 = vmul.f32 18.0, %v2393_v3 }
 0x16a   : > { %v2395_v2 = vfloor.f32 %v2359_v50  ;;  %v2432_v13 = vmul.f32 18.0, %v2396_v52  ;;  %v2433_v17 = vmul.f32 18.0, %v2397_v25 }
 0x16b   : > { %v2358_v11 = vmul.f32 0.055555556, %v2321_v44  ;;  %v2334_v44 = vadd.f32 0.5, %v8381_v14  ;;  %v2364_v31 = vmul.f32 0.055555556, %v2327_v54  ;;  %v7096_v3 = vsub.f32 %v2284_v46, %v2429_v32 }
 0x16c   : > { %5630 = vmatmul.mubr.msk.bf16.gmra.mrb[32].mxu0 %vm902_vm4, %v1931_v45  ;;  %v2317_v45 = vadd.f32 0.5, %v2281_v49  ;;  %v7106_v41 = vsub.f32 %v2287_v57, %v2432_v13  ;;  %v7131_v12 = vsub.f32 %v2288_v39, %v2433_v17  ;;  %v8401_v17 = vcvt.s32.f32 %v7036_v21 }
 0x16d   : > { %v2394_v63 = vfloor.f32 %v2358_v11  ;;  %v2371_v52 = vmul.f32 0.055555556, %v2334_v44  ;;  %v2400_v46 = vfloor.f32 %v2364_v31  ;;  %v2402_v44 = vfloor.f32 %v2366_v58 }
 0x16e   : > { %v2354_v55 = vmul.f32 0.055555556, %v2317_v45  ;;  %v2431_v45 = vmul.f32 18.0, %v2395_v2  ;;  %v8385_v2 = vcvt.s32.f32 %v7067_v60 }
 0x16f   : > { %v2430_v11 = vmul.f32 18.0, %v2394_v63  ;;  %v2407_v57 = vfloor.f32 %v2371_v52 }
 0x170   : > { %v2390_v6 = vfloor.f32 %v2354_v55  ;;  %v2296_v55 = vcvt.s32.f32 %v7053_v28  ;;  %v7080_v50 = vsub.f32 %v2286_v15, %v2431_v45  ;;  %v2362_v15 = vmul.f32 0.055555556, %v2325_v53 }
 0x171   : > { %v2367_v45 = vmul.f32 0.055555556, %v2330_v56  ;;  %v2335_v54 = vadd.f32 0.5, %v8385_v2  ;;  %v7110_v56 = vsub.f32 %v2285_v22, %v2430_v11  ;;  %v2436_v22 = vmul.f32 18.0, %v2400_v46 }
 0x172   : > { %v2426_v10 = vmul.f32 18.0, %v2390_v6  ;;  %v2331_v6 = vadd.f32 0.5, %v8383_v48  ;;  %v2332_v38 = vadd.f32 0.5, %v2296_v55  ;;  %v7099_v48 = vadd.s32 240, %v6887_v43 }
 0x173   : > { %v2398_v32 = vfloor.f32 %v2362_v15  ;;  %v2372_v13 = vmul.f32 0.055555556, %v2335_v54  ;;  %v2443_v25 = vmul.f32 18.0, %v2407_v57  ;;  %v7138_v46 = vadd.s32 272, %v6887_v43 }
 0x174   : > { %v7063_v42 = vsub.f32 %v2281_v49, %v2426_v10  ;;  %v2328_v49 = vadd.f32 0.5, %v8384_v62  ;;  %v7090_v10 = vadd.s32 200, %v6887_v43  ;;  %v2368_v14 = vmul.f32 0.055555556, %v2331_v6 }
 0x175   : > { %v2435_v62 = vmul.f32 18.0, %v2399_v18  ;;  %v2369_v63 = vmul.f32 0.055555556, %v2332_v38  ;;  %v7113_v6 = vadd.s32 224, %v6887_v43  ;;  %v2302_v2 = vcvt.s32.f32 %v7099_v48 }
 0x176   : > { %v2365_v5 = vmul.f32 0.055555556, %v2328_v49  ;;  %v2297_v53 = vcvt.s32.f32 %v7090_v10  ;;  %v2403_v49 = vfloor.f32 %v2367_v45  ;;  %v2404_v18 = vfloor.f32 %v2368_v14 }
 0x177   : > { %v7118_v30 = vsub.f32 %v2290_v36, %v2435_v62  ;;  %v2434_v31 = vmul.f32 18.0, %v2398_v32  ;;  %v2405_v15 = vfloor.f32 %v2369_v63  ;;  %v7123_v38 = vadd.s32 248, %v6887_v43 }
 0x178   : > { %v2401_v1 = vfloor.f32 %v2365_v5  ;;  %v2333_v51 = vadd.f32 0.5, %v2297_v53  ;;  %v2439_v11 = vmul.f32 18.0, %v2403_v49  ;;  %v2300_v58 = vcvt.s32.f32 %v7113_v6  ;;  %v7154_v49 = vld [vmem:[%s8377_s2] ss:$0 sm:$0xff] }
 0x179   : > { %v7127_v45 = vadd.s32 232, %v6887_v43  ;;  %v2440_v36 = vmul.f32 18.0, %v2404_v18  ;;  %v2438_v62 = vmul.f32 18.0, %v2402_v44  ;;  %v2338_v5 = vadd.f32 0.5, %v2302_v2 }
 0x17a   : > { %v2437_v14 = vmul.f32 18.0, %v2401_v1  ;;  %v2408_v52 = vfloor.f32 %v2372_v13  ;;  %v2370_v54 = vmul.f32 0.055555556, %v2333_v51  ;;  %v7144_v37 = vsub.f32 %v2291_v23, %v2436_v22 }
 0x17b   : > { %v7148_v39 = vsub.f32 %v2289_v47, %v2434_v31  ;;  %v2441_v32 = vmul.f32 18.0, %v2405_v15  ;;  %v8388_v63 = vcvt.s32.f32 %v7123_v38  ;;  %v7158_v1 = vsub.f32 %v2294_v40, %v2439_v11 }
 0x17c   : > { %v7162_v23 = vsub.f32 %v8400_v35, %v2437_v14  ;;  %v2336_v24 = vadd.f32 0.5, %v2300_v58  ;;  %v8386_v47 = vcvt.s32.f32 %v7127_v45  ;;  %v7169_v18 = vsub.f32 %v8401_v17, %v2440_v36 }
 0x17d   : > { %v8402_v44 = vcvt.s32.f32 %v7039_v20  ;;  %v2375_v61 = vmul.f32 0.055555556, %v2338_v5  ;;  %v7176_v40 = vadd.s32 256, %v6887_v43  ;;  %v8403_v13 = vcvt.s32.f32 %v7048_v34 }
 0x17e   : > { %v2444_v22 = vmul.f32 18.0, %v2408_v52  ;;  %v2406_v31 = vfloor.f32 %v2370_v54  ;;  %v8387_v15 = vcvt.s32.f32 %v7138_v46  ;;  %v7186_v20 = vsub.f32 %v2296_v55, %v2441_v32 }
 0x17f   : > { %v7173_v57 = vsub.f32 %v8402_v44, %v2438_v62  ;;  %v7180_v51 = vsub.f32 %v8403_v13, %v2443_v25  ;;  %v2339_v14 = vadd.f32 0.5, %v8388_v63  ;;  %v7191_v36 = vadd.s32 280, %v6887_v43 }
 0x180   : > { %v2373_v5 = vmul.f32 0.055555556, %v2336_v24  ;;  %v2337_v25 = vadd.f32 0.5, %v8386_v47  ;;  %v7197_v52 = vadd.s32 264, %v6887_v43  ;;  %v2411_v32 = vfloor.f32 %v2375_v61 }
 0x181   : > { %v2304_v35 = vcvt.s32.f32 %v7176_v40  ;;  %v8404_v24 = vcvt.s32.f32 %v7067_v60  ;;  %v2342_v43 = vadd.f32 0.5, %v8387_v15  ;;  %v2442_v61 = vmul.f32 18.0, %v2406_v31 }
 0x182   : > { %v2305_v47 = vcvt.s32.f32 %v7197_v52  ;;  %v8405_v27 = vcvt.s32.f32 %v7123_v38  ;;  %v8407_v38 = vcvt.s32.f32 %v7138_v46 }
 0x184   : > { %v2341_v9 = vadd.f32 0.5, %v2305_v47 }
 0x1ff   : > { %v5599_v59 = vpop.f32.mrb[0].mxu0 }
 0x200   : > { %v2498_v21 = vadd.f32 %v5599_v59, %v7154_v49  ;;  %v2056_v11 = vpop.f32.mrb[1].mxu0  ;;  %v7206_v59 = vsub.f32 %v8404_v24, %v2444_v22  ;;  %v2340_v24 = vadd.f32 0.5, %v2304_v35 }
 0x201   : > { %v2496_v34 = vadd.f32 %v7154_v49, %v2056_v11  ;;  %v5600_v62 = vpop.f32.mrb[2].mxu0  ;;  %v2307_v11 = vcvt.s32.f32 %v7191_v36 }
 0x202   : > { %v2534_v28 = vmax.f32 %v2498_v21, 0.0  ;;  %v2499_v55 = vadd.f32 %v5600_v62, %v7154_v49  ;;  %v2059_v54 = vpop.f32.mrb[3].mxu0  ;;  %v2376_v21 = vmul.f32 0.055555556, %v2339_v14  ;;  %v2409_v62 = vfloor.f32 %v2373_v5 }
 0x203   : > { %v2532_v17 = vmax.f32 %v2496_v34, 0.0  ;;  %v2497_v44 = vadd.f32 %v7154_v49, %v2059_v54  ;;  %v2374_v54 = vmul.f32 0.055555556, %v2337_v25  ;;  %v2343_v8 = vadd.f32 0.5, %v2307_v11 }
 0x204   : > { %v2535_v13 = vmax.f32 %v2499_v55, 0.0  ;;  %v2606_v60 = vsel %vm2570_vm8, %v2534_v28, 0.0  ;;  %v2447_v55 = vmul.f32 18.0, %v2411_v32  ;;  %v2412_v63 = vfloor.f32 %v2376_v21  ;;  %v5999_v21 = vld [vmem:[%s8378_s3 + $0x30] sm:$0xff]  }
 0x205   : > { %v2533_v34 = vmax.f32 %v2497_v44, 0.0  ;;  %v2604_v31 = vsel %vm2568_vm10, %v2532_v17, 0.0  ;;  %v2379_v44 = vmul.f32 0.055555556, %v2342_v43  ;;  %v2410_v17 = vfloor.f32 %v2374_v54  ;;  %5633 = vmatprep.subr.bf16.mxu1 %v5999_v21 }
 0x206   : > { %v2607_v22 = vsel %vm2571_vm9, %v2535_v13, 0.0  ;;  %vm2578_vm8 = vcmp.lt.f32.partialorder %v7011_v29, 16.0  ;;  %vm2579_vm9 = vcmp.lt.f32.partialorder %v7043_v26, 16.0  ;;  %v7241_v54 = vsub.f32 %v2297_v53, %v2442_v61  ;;  %5634 = vmatpush3.bf16.msra.mxu1 %v5999_v21 }
 0x207   : > { %v2641_v14 = vpack.c.bf16 %v2607_v22, %v2606_v60  ;;  %v2605_v5 = vsel %vm2569_vm11, %v2533_v34, 0.0  ;;  %v5603_v25 = vpop.f32.mrb[4].mxu0  ;;  %vm2576_vm10 = vcmp.lt.f32.partialorder %v7016_v33, 16.0  ;;  %vm2577_vm11 = vcmp.lt.f32.partialorder %v7063_v42, 16.0 }
 0x208   : > { %v2640_v15 = vpack.c.bf16 %v2605_v5, %v2604_v31  ;;  %v2502_v4 = vadd.f32 %v5603_v25, %v7154_v49  ;;  %v2072_v28 = vpop.f32.mrb[5].mxu0  ;;  %v2377_v31 = vmul.f32 0.055555556, %v2340_v24  ;;  %v7251_v10 = vsub.f32 %v2302_v2, %v2447_v55 }
 0x209   : > { %v7227_v32 = vrot.slane %v2641_v14, 4  ;;  %v2500_v13 = vadd.f32 %v7154_v49, %v2072_v28  ;;  %v5604_v16 = vpop.f32.mrb[6].mxu0  ;;  %v2380_v28 = vmul.f32 0.055555556, %v2343_v8  ;;  %v2448_v53 = vmul.f32 18.0, %v2412_v63  ;;  %v6000_v8 = vld [vmem:[%s8378_s3 + $0x38] sm:$0xff]  }
 0x20a   : > { %v2677_v34 = vrot.slane %v2640_v15, 4  ;;  %v2538_v60 = vmax.f32 %v2502_v4, 0.0  ;;  %v2503_v43 = vadd.f32 %v5604_v16, %v7154_v49  ;;  %v2075_v22 = vpop.f32.mrb[7].mxu0  ;;  %v2415_v15 = vfloor.f32 %v2379_v44  ;;  %5635 = vmatprep.subr.bf16.mxu1 %v6000_v8 }
 0x20b   : > { %v2536_v5 = vmax.f32 %v2500_v13, 0.0  ;;  %v2501_v14 = vadd.f32 %v7154_v49, %v2075_v22  ;;  %v2445_v4 = vmul.f32 18.0, %v2409_v62  ;;  %v2378_v61 = vmul.f32 0.055555556, %v2341_v9  ;;  %5636 = vmatpush3.bf16.msra.mxu1 %v6000_v8 }
 0x20c   : > { %v2679_v25 = vsel %vm2676_vm12, %v2677_v34, %v7227_v32  ;;  %2731 = vst.msk [vmem:[#allocation2 + $0x8] sm:$0xf0] %vm230_vm6, %v2677_v34  ;;  %v2539_v24 = vmax.f32 %v2503_v43, 0.0  ;;  %v2610_v44 = vsel %vm2574_vm13, %v2538_v60, 0.0  ;;  %v2446_v34 = vmul.f32 18.0, %v2410_v17 }
 0x20d   : > { %2732 = vst.msk [vmem:[#allocation2 + $0x10] sm:$0xff] %vm226_vm2, %v2679_v25  ;;  %v2537_v13 = vmax.f32 %v2501_v14, 0.0  ;;  %v2413_v62 = vfloor.f32 %v2377_v31  ;;  %v2608_v48 = vsel %vm2572_vm15, %v2536_v5, 0.0  ;;  %v2451_v9 = vmul.f32 18.0, %v2415_v15 }
 0x20e   : > { %v2611_v16 = vsel %vm2575_vm14, %v2539_v24, 0.0  ;;  %v7267_v17 = vsub.f32 %v2300_v58, %v2445_v4  ;;  %v2416_v43 = vfloor.f32 %v2380_v28  ;;  %v7274_v21 = vsub.f32 %v8405_v27, %v2448_v53 }
 0x20f   : > { %v2643_v2 = vpack.c.bf16 %v2611_v16, %v2610_v44  ;;  %v2609_v63 = vsel %vm2573_vm5, %v2537_v13, 0.0  ;;  %v5607_v55 = vpop.f32.mrb[8].mxu0  ;;  %v2414_v5 = vfloor.f32 %v2378_v61  ;;  %v8406_v58 = vcvt.s32.f32 %v7127_v45 }
 0x210   : > { %v2642_v19 = vpack.c.bf16 %v2609_v63, %v2608_v48  ;;  %v2506_v60 = vadd.f32 %v5607_v55, %v7154_v49  ;;  %v2088_v7 = vpop.f32.mrb[9].mxu0  ;;  %vm2582_vm6 = vcmp.lt.f32.partialorder %v7080_v50, 16.0  ;;  %vm2580_vm13 = vcmp.lt.f32.partialorder %v7096_v3, 16.0 }
 0x211   : > { %v7269_v22 = vrot.slane %v2643_v2, 4  ;;  %v2504_v0 = vadd.f32 %v7154_v49, %v2088_v7  ;;  %v5608_v31 = vpop.f32.mrb[10].mxu0  ;;  %v7279_v24 = vsub.f32 %v8406_v58, %v2446_v34  ;;  %vm2583_vm14 = vcmp.lt.f32.partialorder %v7106_v41, 16.0 }
 0x212   : > { %v2680_v14 = vrot.slane %v2642_v19, 4  ;;  %v2542_v15 = vmax.f32 %v2506_v60, 0.0  ;;  %v2507_v25 = vadd.f32 %v5608_v31, %v7154_v49  ;;  %v2091_v6 = vpop.f32.mrb[11].mxu0  ;;  %v7287_v53 = vsub.f32 %v8407_v38, %v2451_v9 }
 0x213   : > { %v2540_v4 = vmax.f32 %v2504_v0, 0.0  ;;  %v2505_v28 = vadd.f32 %v7154_v49, %v2091_v6  ;;  %v3146_v13 = vld [vmem:[#allocation2 + $0x8] sm:$0xf0]  ;;  %v2449_v61 = vmul.f32 18.0, %v2413_v62  ;;  %vm2581_vm15 = vcmp.lt.f32.partialorder %v7110_v56, 16.0  ;;  %v6004_v56 = vld [vmem:[%s8378_s3 + $0x58] sm:$0xff]  }
 0x214   : > { %v2681_v45 = vsel %vm2676_vm12, %v7227_v32, %v2680_v14  ;;  %v2683_v44 = vsel %vm2676_vm12, %v2680_v14, %v7269_v22  ;;  %v2543_v16 = vmax.f32 %v2507_v25, 0.0  ;;  %v7293_v34 = vld [vmem:[#allocation2 + $0x10] sm:$0xff]  ;;  %v2452_v8 = vmul.f32 18.0, %v2416_v43  ;;  %v6001_v32 = vld [vmem:[%s8378_s3 + $0x40] sm:$0xff]  }
 0x215   : > { %2733 = vst.msk [vmem:[#allocation2 + $0x18] sm:$0xff] %vm226_vm2, %v2681_v45  ;;  %2734 = vst.msk [vmem:[#allocation2 + $0x20] sm:$0xff] %vm226_vm2, %v2683_v44  ;;  %v2541_v46 = vmax.f32 %v2505_v28, 0.0  ;;  %v7299_v48 = vrot.slane %v7293_v34, 1  ;;  %v3183_v62 = vrot.slane %v3146_v13, 1  ;;  %v2450_v2 = vmul.f32 18.0, %v2414_v5  ;;  %5637 = vmatprep.subr.bf16.mxu1 %v6001_v32 }
 0x216   : > { %v2614_v63 = vsel %vm2578_vm8, %v2542_v15, 0.0  ;;  %v2615_v55 = vsel %vm2579_vm9, %v2543_v16, 0.0  ;;  %v2787_v9 = vshll.u32 %v7293_v34, 16  ;;  %v3151_v19 = vshll.u32 %v3146_v13, 16  ;;  %5638 = vmatpush3.bf16.msra.mxu1 %v6001_v32 }
 0x217   : > { %v2612_v60 = vsel %vm2576_vm10, %v2540_v4, 0.0  ;;  %v2645_v7 = vpack.c.bf16 %v2615_v55, %v2614_v63  ;;  %v2613_v43 = vsel %vm2577_vm11, %v2541_v46, 0.0  ;;  %v5611_v0 = vpop.f32.mrb[12].mxu0  ;;  %v3184_v31 = vsel %vm552_vm0, %v3183_v62, %v7299_v48 }
 0x218   : > { %v2644_v29 = vpack.c.bf16 %v2613_v43, %v2612_v60  ;;  %v2510_v27 = vadd.f32 %v5611_v0, %v7154_v49  ;;  %3189 = vrot.lane.b32.xlu0 %v3184_v31, %s6052_s7  ;;  %v2104_v26 = vpop.f32.mrb[13].mxu0  ;;  %v3149_v5 = vshrl.u32 %v3146_v13, 16  ;;  %v3153_v14 = vrot.slane %v3151_v19, 1  ;;  %v6003_v19 = vld [vmem:[%s8378_s3 + $0x50] sm:$0xff]  }
 0x219   : > { %v7317_v33 = vrot.slane %v2645_v7, 4  ;;  %v2508_v15 = vadd.f32 %v7154_v49, %v2104_v26  ;;  %v5612_v42 = vpop.f32.mrb[14].mxu0  ;;  %v7320_v25 = vrot.slane %v2787_v9, 1  ;;  %v7324_v6 = vsub.f32 %v2304_v35, %v2449_v61 }
 0x21a   : > { %v2684_v58 = vrot.slane %v2644_v29, 4  ;;  %v2546_v4 = vmax.f32 %v2510_v27, 0.0  ;;  %v2511_v28 = vadd.f32 %v5612_v42, %v7154_v49  ;;  %v2107_v38 = vpop.f32.mrb[15].mxu0  ;;  %v3154_v45 = vor.u32 %v3153_v14, %v3149_v5 }
 0x21b   : > { %vm2586_vm5 = vcmp.lt.f32.partialorder %v7118_v30, 16.0  ;;  %v2544_v13 = vmax.f32 %v2508_v15, 0.0  ;;  %v2509_v44 = vadd.f32 %v7154_v49, %v2107_v38  ;;  %vm2587_vm8 = vcmp.lt.f32.partialorder %v7144_v37, 16.0 }
 0x21c   : > { %v2791_v16 = vshrl.u32 %v7293_v34, 16  ;;  %v7333_v40 = vsub.f32 %v2307_v11, %v2452_v8  ;;  %v2685_v35 = vsel %vm2676_vm12, %v7269_v22, %v2684_v58  ;;  %v2687_v61 = vsel %vm2676_vm12, %v2684_v58, %v7317_v33  ;;  %v7339_v62 = vld [vmem:[#allocation2 + $0x18] sm:$0xff]  ;;  %v7343_v32 = vld [vmem:[#allocation2 + $0x20] sm:$0xff]  ;;  %v6002_v11 = vld [vmem:[%s8378_s3 + $0x48] sm:$0xff]  }
 0x21d   : > { %v2547_v46 = vmax.f32 %v2511_v28, 0.0  ;;  %vm2584_vm9 = vcmp.lt.f32.partialorder %v7131_v12, 16.0  ;;  %vm2585_vm10 = vcmp.lt.f32.partialorder %v7148_v39, 16.0  ;;  %v7347_v36 = vsub.f32 %v2305_v47, %v2450_v2  ;;  %2735 = vst.msk [vmem:[#allocation2 + $0x28] sm:$0xff] %vm226_vm2, %v2685_v35  ;;  %2736 = vst.msk [vmem:[#allocation2 + $0x30] sm:$0xff] %vm226_vm2, %v2687_v61  ;;  %5639 = vmatprep.subr.bf16.mxu1 %v6002_v11  ;;  %v7444_v39 = vld [vmem:[%s8378_s3] sm:$0xff]  }
 0x21e   : > { %v2545_v22 = vmax.f32 %v2509_v44, 0.0  ;;  %v3155_v8 = vsel %vm364_vm1, %v3154_v45, %v7320_v25  ;;  %v7357_v63 = vrot.slane %v7339_v62, 1  ;;  %v2793_v55 = vor.u32 %v2791_v16, %v7320_v25  ;;  %5640 = vmatpush3.bf16.msra.mxu1 %v6002_v11 }
 0x21f   : > { %v2618_v47 = vsel %vm2582_vm6, %v2546_v4, 0.0  ;;  %v2616_v52 = vsel %vm2580_vm13, %v2544_v13, 0.0  ;;  %v2619_v2 = vsel %vm2583_vm14, %v2547_v46, 0.0  ;;  %3172 = vrot.lane.b32.xlu1 %v3155_v8, %s6053_s8  ;;  %v2795_v9 = vshll.u32 %v7339_v62, 16  ;;  %v5615_v7 = vpop.f32.mrb[16].mxu0  ;;  %5641 = vmatprep.subr.bf16.mxu1 %v6003_v19 }
 0x220   : > { %v2647_v60 = vpack.c.bf16 %v2619_v2, %v2618_v47  ;;  %v2617_v50 = vsel %vm2581_vm15, %v2545_v22, 0.0  ;;  %v2985_v3 = vsel %vm552_vm0, %v7299_v48, %v7357_v63  ;;  %v2803_v41 = vshll.u32 %v7343_v32, 16  ;;  %v2120_v31 = vpop.f32.mrb[17].mxu0 }
 0x221   : > { %v2646_v43 = vpack.c.bf16 %v2617_v50, %v2616_v52  ;;  %v2514_v0 = vadd.f32 %v5615_v7, %v7154_v49  ;;  %v7378_v29 = vrot.slane %v2795_v9, 1  ;;  %v2986_v27 = vrot.slane %v7343_v32, 1  ;;  %v5616_v14 = vpop.f32.mrb[18].mxu0 }
 0x222   : > { %v7384_v26 = vrot.slane %v2647_v60, 4  ;;  %v2512_v5 = vadd.f32 %v7154_v49, %v2120_v31  ;;  %v2799_v15 = vshrl.u32 %v7339_v62, 16  ;;  %v2805_v42 = vrot.slane %v2803_v41, 1  ;;  %v2123_v45 = vpop.f32.mrb[19].mxu0  ;;  %5642 = vmatpush3.bf16.msra.mxu1 %v6003_v19 }
 0x223   : > { %v2688_v58 = vrot.slane %v2646_v43, 4  ;;  %v2550_v4 = vmax.f32 %v2514_v0, 0.0  ;;  %3020 = vrot.lane.b32.xlu1 %v2985_v3, %s6052_s7  ;;  %v2515_v28 = vadd.f32 %v5616_v14, %v7154_v49  ;;  %v2798_v38 = vsel %vm364_vm1, %v2793_v55, %v7378_v29  ;;  %5643 = vmatprep.subr.bf16.mxu1 %v6004_v56 }
 0x224   : > { %v2548_v13 = vmax.f32 %v2512_v5, 0.0  ;;  %2926 = vrot.lane.b32.xlu0 %v2798_v38, %s6053_s8  ;;  %v2513_v44 = vadd.f32 %v7154_v49, %v2123_v45  ;;  %v2801_v16 = vor.u32 %v2799_v15, %v7378_v29  ;;  %vm2590_vm11 = vcmp.lt.f32.partialorder %v7158_v1, 16.0  ;;  %v7408_v8 = vld [vmem:[#allocation2 + $0x28] sm:$0xff]  ;;  %v7410_v55 = vld [vmem:[#allocation2 + $0x30] sm:$0xff] }
 0x225   : > { %vm2591_vm6 = vcmp.lt.f32.partialorder %v7169_v18, 16.0  ;;  %v2807_v35 = vshrl.u32 %v7343_v32, 16  ;;  %v2689_v61 = vsel %vm2676_vm12, %v7317_v33, %v2688_v58  ;;  %v2691_v46 = vsel %vm2676_vm12, %v2688_v58, %v7384_v26 }
 0x226   : > { %v2551_v11 = vmax.f32 %v2515_v28, 0.0  ;;  %v7406_v22 = vsel %vm552_vm0, %v7357_v63, %v2986_v27  ;;  %vm2588_vm13 = vcmp.lt.f32.partialorder %v7162_v23, 16.0  ;;  %vm2589_vm14 = vcmp.lt.f32.partialorder %v7173_v57, 16.0  ;;  %2737 = vst.msk [vmem:[#allocation2 + $0x38] sm:$0xff] %vm226_vm2, %v2689_v61  ;;  %2738 = vst.msk [vmem:[#allocation2 + $0x40] sm:$0xff] %vm226_vm2, %v2691_v46  ;;  %5644 = vmatpush3.bf16.msra.mxu1 %v6004_v56 }
 0x227   : > { %v2622_v33 = vsel %vm2586_vm5, %v2550_v4, 0.0  ;;  %v2549_v47 = vmax.f32 %v2513_v44, 0.0  ;;  %v2988_v52 = vrot.slane %v7408_v8, 1  ;;  %v2809_v2 = vor.u32 %v2807_v35, %v2805_v42  ;;  %3022 = vrot.lane.b32.xlu1 %v7406_v22, %s6052_s7  ;;  %v5619_v37 = vpop.f32.mrb[20].mxu0  ;;  %5681 = vmatprep.subr.bf16.mxu1 %v7444_v39 }
 0x228   : > { %v2623_v9 = vsel %vm2587_vm8, %v2551_v11, 0.0  ;;  %v7424_v19 = vsel %vm364_vm1, %v2801_v16, %v2805_v42  ;;  %v2990_v60 = vrot.slane %v7410_v55, 1  ;;  %v2811_v50 = vshll.u32 %v7408_v8, 16  ;;  %v2136_v12 = vpop.f32.mrb[21].mxu0 }
 0x229   : > { %v2620_v30 = vsel %vm2584_vm9, %v2548_v13, 0.0  ;;  %v2649_v7 = vpack.c.bf16 %v2623_v9, %v2622_v33  ;;  %v2621_v3 = vsel %vm2585_vm10, %v2549_v47, 0.0  ;;  %2928 = vrot.lane.b32.xlu0 %v7424_v19, %s6053_s8  ;;  %v2819_v41 = vshll.u32 %v7410_v55, 16  ;;  %v5620_v56 = vpop.f32.mrb[22].mxu0 }
 0x22a   : > { %v2648_v43 = vpack.c.bf16 %v2621_v3, %v2620_v30  ;;  %v2518_v0 = vadd.f32 %v5619_v37, %v7154_v49  ;;  %v7439_v31 = vsel %vm552_vm0, %v2988_v52, %v2990_v60  ;;  %v2813_v5 = vrot.slane %v2811_v50, 1  ;;  %v2139_v13 = vpop.f32.mrb[23].mxu0 }
 0x22b   : > { %v7446_v14 = vrot.slane %v2649_v7, 4  ;;  %v2516_v15 = vadd.f32 %v7154_v49, %v2136_v12  ;;  %v2815_v42 = vshrl.u32 %v7408_v8, 16  ;;  %v2821_v58 = vrot.slane %v2819_v41, 1  ;;  %3026 = vrot.lane.b32.xlu1 %v7439_v31, %s6052_s7 }
 0x22c   : > { %v2692_v4 = vrot.slane %v2648_v43, 4  ;;  %v2554_v28 = vmax.f32 %v2518_v0, 0.0  ;;  %v2519_v38 = vadd.f32 %v5620_v56, %v7154_v49  ;;  %v7454_v45 = vsel %vm364_vm1, %v2809_v2, %v2813_v5 }
 0x22d   : > { %v2552_v44 = vmax.f32 %v2516_v15, 0.0  ;;  %2930 = vrot.lane.b32.xlu0 %v7454_v45, %s6053_s8  ;;  %v2517_v16 = vadd.f32 %v7154_v49, %v2139_v13  ;;  %v2817_v35 = vor.u32 %v2815_v42, %v2813_v5  ;;  %vm2594_vm15 = vcmp.lt.f32.partialorder %v7180_v51, 16.0  ;;  %v7472_v2 = vld [vmem:[#allocation2 + $0x38] sm:$0xff]  ;;  %v7474_v9 = vld [vmem:[#allocation2 + $0x40] sm:$0xff] }
 0x22e   : > { %vm2595_vm5 = vcmp.lt.f32.partialorder %v7206_v59, 16.0  ;;  %v2823_v61 = vshrl.u32 %v7410_v55, 16  ;;  %v2693_v46 = vsel %vm2676_vm12, %v7384_v26, %v2692_v4  ;;  %v2695_v11 = vsel %vm2676_vm12, %v2692_v4, %v7446_v14 }
 0x22f   : > { %v2555_v33 = vmax.f32 %v2519_v38, 0.0  ;;  %v7470_v47 = vsel %vm552_vm0, %v2986_v27, %v2988_v52  ;;  %vm2592_vm8 = vcmp.lt.f32.partialorder %v7186_v20, 16.0  ;;  %vm2593_vm9 = vcmp.lt.f32.partialorder %v7241_v54, 16.0  ;;  %2739 = vst.msk [vmem:[#allocation2 + $0x48] sm:$0xff] %vm226_vm2, %v2693_v46  ;;  %2740 = vst.msk [vmem:[#allocation2 + $0x50] sm:$0xff] %vm226_vm2, %v2695_v11  ;;  %v5623_v1 = vpop.f32.mrb[24].mxu0 }
 0x230   : > { %v2553_v26 = vmax.f32 %v2517_v16, 0.0  ;;  %v7481_v50 = vsel %vm364_vm1, %v2817_v35, %v2821_v58  ;;  %v2992_v30 = vrot.slane %v7472_v2, 1  ;;  %v2825_v27 = vor.u32 %v2823_v61, %v2821_v58  ;;  %v2152_v23 = vpop.f32.mrb[25].mxu0 }
 0x231   : > { %v2626_v52 = vsel %vm2590_vm11, %v2554_v28, 0.0  ;;  %v2627_v7 = vsel %vm2591_vm6, %v2555_v33, 0.0  ;;  %2932 = vrot.lane.b32.xlu1 %v7481_v50, %s6053_s8  ;;  %v2994_v3 = vrot.slane %v7474_v9, 1  ;;  %v2827_v37 = vshll.u32 %v7472_v2, 16  ;;  %3024 = vrot.lane.b32.xlu0 %v7470_v47, %s6052_s7  ;;  %v5624_v58 = vpop.f32.mrb[26].mxu0 }
 0x232   : > { %v2624_v41 = vsel %vm2588_vm13, %v2552_v44, 0.0  ;;  %v2651_v43 = vpack.c.bf16 %v2627_v7, %v2626_v52  ;;  %v2625_v0 = vsel %vm2589_vm14, %v2553_v26, 0.0  ;;  %v2835_v18 = vshll.u32 %v7474_v9, 16  ;;  %v2155_v35 = vpop.f32.mrb[27].mxu0 }
 0x233   : > { %v2650_v12 = vpack.c.bf16 %v2625_v0, %v2624_v41  ;;  %v2522_v5 = vadd.f32 %v5623_v1, %v7154_v49  ;;  %v7503_v15 = vsel %vm552_vm0, %v2992_v30, %v2994_v3  ;;  %v2829_v56 = vrot.slane %v2827_v37, 1 }
 0x234   : > { %v7505_v42 = vrot.slane %v2651_v43, 4  ;;  %v2520_v57 = vadd.f32 %v7154_v49, %v2152_v23  ;;  %v2831_v4 = vshrl.u32 %v7472_v2, 16  ;;  %v2837_v28 = vrot.slane %v2835_v18, 1 }
 0x235   : > { %v2696_v38 = vrot.slane %v2650_v12, 4  ;;  %v2558_v13 = vmax.f32 %v2522_v5, 0.0  ;;  %3030 = vrot.lane.b32.xlu1 %v7503_v15, %s6052_s7  ;;  %v2523_v44 = vadd.f32 %v5624_v58, %v7154_v49  ;;  %v7513_v16 = vsel %vm364_vm1, %v2825_v27, %v2829_v56 }
 0x236   : > { %v2556_v61 = vmax.f32 %v2520_v57, 0.0  ;;  %2934 = vrot.lane.b32.xlu0 %v7513_v16, %s6053_s8  ;;  %v2521_v46 = vadd.f32 %v7154_v49, %v2155_v35  ;;  %v2833_v11 = vor.u32 %v2831_v4, %v2829_v56  ;;  %vm2598_vm10 = vcmp.lt.f32.partialorder %v7251_v10, 16.0  ;;  %v7530_v37 = vld [vmem:[#allocation2 + $0x48] sm:$0xff]  ;;  %v7532_v41 = vld [vmem:[#allocation2 + $0x50] sm:$0xff] }
 0x237   : > { %vm2599_vm11 = vcmp.lt.f32.partialorder %v7274_v21, 16.0  ;;  %v2839_v33 = vshrl.u32 %v7474_v9, 16  ;;  %v2697_v26 = vsel %vm2676_vm12, %v7446_v14, %v2696_v38  ;;  %v2699_v27 = vsel %vm2676_vm12, %v2696_v38, %v7505_v42  ;;  %v5627_v51 = vpop.f32.mrb[28].mxu0 }
 0x238   : > { %v2559_v52 = vmax.f32 %v2523_v44, 0.0  ;;  %v7528_v7 = vsel %vm552_vm0, %v2990_v60, %v2992_v30  ;;  %vm2596_vm6 = vcmp.lt.f32.partialorder %v7267_v17, 16.0  ;;  %vm2597_vm13 = vcmp.lt.f32.partialorder %v7279_v24, 16.0  ;;  %2741 = vst.msk [vmem:[#allocation2 + $0x58] sm:$0xff] %vm226_vm2, %v2697_v26  ;;  %2742 = vst.msk [vmem:[#allocation2 + $0x60] sm:$0xff] %vm226_vm2, %v2699_v27  ;;  %v2168_v20 = vpop.f32.mrb[29].mxu0 }
 0x239   : > { %v2557_v14 = vmax.f32 %v2521_v46, 0.0  ;;  %v7539_v43 = vsel %vm364_vm1, %v2833_v11, %v2837_v28  ;;  %v2996_v0 = vrot.slane %v7530_v37, 1  ;;  %v2841_v60 = vor.u32 %v2839_v33, %v2837_v28 }
 0x23a   : > { %v2630_v30 = vsel %vm2594_vm15, %v2558_v13, 0.0  ;;  %v2631_v1 = vsel %vm2595_vm5, %v2559_v52, 0.0  ;;  %2936 = vrot.lane.b32.xlu1 %v7539_v43, %s6053_s8  ;;  %v2998_v18 = vrot.slane %v7532_v41, 1  ;;  %v2843_v12 = vshll.u32 %v7530_v37, 16  ;;  %3028 = vrot.lane.b32.xlu0 %v7528_v7, %s6052_s7  ;;  %v5628_v13 = vpop.f32.mrb[30].mxu0 }
 0x23b   : > { %v2628_v5 = vsel %vm2592_vm8, %v2556_v61, 0.0  ;;  %v2653_v23 = vpack.c.bf16 %v2631_v1, %v2630_v30  ;;  %v2629_v56 = vsel %vm2593_vm9, %v2557_v14, 0.0  ;;  %v2851_v59 = vshll.u32 %v7532_v41, 16  ;;  %v2171_v26 = vpop.f32.mrb[31].mxu0 }
 0x23c   : > { %v2652_v57 = vpack.c.bf16 %v2629_v56, %v2628_v5  ;;  %v2526_v58 = vadd.f32 %v5627_v51, %v7154_v49  ;;  %v7561_v4 = vsel %vm552_vm0, %v2996_v0, %v2998_v18  ;;  %v2845_v28 = vrot.slane %v2843_v12, 1 }
 0x23d   : > { %v7563_v38 = vrot.slane %v2653_v23, 4  ;;  %v2524_v54 = vadd.f32 %v7154_v49, %v2168_v20  ;;  %v2847_v44 = vshrl.u32 %v7530_v37, 16  ;;  %v2853_v35 = vrot.slane %v2851_v59, 1 }
 0x23e   : > { %vm2602_vm14 = vcmp.lt.f32.partialorder %v7287_v53, 16.0  ;;  %v2700_v61 = vrot.slane %v2652_v57, 4  ;;  %v2562_v46 = vmax.f32 %v2526_v58, 0.0  ;;  %3034 = vrot.lane.b32.xlu1 %v7561_v4, %s6052_s7  ;;  %v2527_v11 = vadd.f32 %v5628_v13, %v7154_v49 }
 0x23f   : > { %v7572_v33 = vsel %vm364_vm1, %v2841_v60, %v2845_v28  ;;  %vm2600_vm15 = vcmp.lt.f32.partialorder %v7324_v6, 16.0  ;;  %v2560_v27 = vmax.f32 %v2524_v54, 0.0  ;;  %v2525_v52 = vadd.f32 %v7154_v49, %v2171_v26  ;;  %v7589_v23 = vld [vmem:[#allocation2 + $0x58] sm:$0xff]  ;;  %v7591_v56 = vld [vmem:[#allocation2 + $0x60] sm:$0xff]  ;;  %v5631_v10 = vpop.f32.mrb[32].mxu0 }
 0x240   : > { %2938 = vrot.lane.b32.xlu0 %v7572_v33, %s6053_s8  ;;  %v2849_v14 = vor.u32 %v2847_v44, %v2845_v28  ;;  %vm2603_vm5 = vcmp.lt.f32.partialorder %v7333_v40, 16.0  ;;  %v2855_v30 = vshrl.u32 %v7532_v41, 16  ;;  %v2701_v1 = vsel %vm2676_vm12, %v7505_v42, %v2700_v61  ;;  %8408 = vst [vmem:[#allocation3_spill] sm:$0xff] %v7589_v23  ;;  %8409 = vst [vmem:[#allocation4_spill] sm:$0xff] %v7591_v56  ;;  %v2184_v17 = vpop.f32.mrb[33].mxu0 }
 0x241   : > { %v2703_v60 = vsel %vm2676_vm12, %v2700_v61, %v7563_v38  ;;  %v2563_v12 = vmax.f32 %v2527_v11, 0.0  ;;  %v7587_v5 = vsel %vm552_vm0, %v2994_v3, %v2996_v0  ;;  %vm2601_vm8 = vcmp.lt.f32.partialorder %v7347_v36, 16.0  ;;  %2743 = vst.msk [vmem:[#allocation2 + $0x68] sm:$0xff] %vm226_vm2, %v2701_v1  ;;  %v5632_v26 = vpop.f32.mrb[34].mxu0 }
 0x242   : > { %2744 = vst.msk [vmem:[#allocation2 + $0x70] sm:$0xff] %vm226_vm2, %v2703_v60  ;;  %v2561_v42 = vmax.f32 %v2525_v52, 0.0  ;;  %v7597_v51 = vsel %vm364_vm1, %v2849_v14, %v2853_v35  ;;  %v3000_v59 = vrot.slane %v7589_v23, 1  ;;  %v2857_v57 = vor.u32 %v2855_v30, %v2853_v35 }
 0x243   : > { %v2634_v3 = vsel %vm2598_vm10, %v2562_v46, 0.0  ;;  %v2635_v0 = vsel %vm2599_vm11, %v2563_v12, 0.0  ;;  %2940 = vrot.lane.b32.xlu1 %v7597_v51, %s6053_s8  ;;  %v3002_v58 = vrot.slane %v7591_v56, 1  ;;  %v2859_v20 = vshll.u32 %v7589_v23, 16  ;;  %v2187_v12 = vpop.f32.mrb[35].mxu0 }
 0x244   : > { %v2632_v28 = vsel %vm2596_vm6, %v2560_v27, 0.0  ;;  %v2655_v54 = vpack.c.bf16 %v2635_v0, %v2634_v3  ;;  %v2633_v13 = vsel %vm2597_vm13, %v2561_v42, 0.0  ;;  %3032 = vrot.lane.b32.xlu0 %v7587_v5, %s6052_s7  ;;  %v2867_v21 = vshll.u32 %v7591_v56, 16 }
 0x245   : > { %v2654_v44 = vpack.c.bf16 %v2633_v13, %v2632_v28  ;;  %v2530_v35 = vadd.f32 %v5631_v10, %v7154_v49  ;;  %v7619_v61 = vsel %vm552_vm0, %v3000_v59, %v3002_v58  ;;  %v2861_v46 = vrot.slane %v2859_v20, 1 }
 0x246   : > { %v2706_v11 = vrot.slane %v2655_v54, 4  ;;  %v2528_v24 = vadd.f32 %v7154_v49, %v2184_v17  ;;  %v2863_v27 = vshrl.u32 %v7589_v23, 16  ;;  %v2869_v52 = vrot.slane %v2867_v21, 1 }
 0x247   : > { %v2704_v14 = vrot.slane %v2654_v44, 4  ;;  %v2566_v30 = vmax.f32 %v2530_v35, 0.0  ;;  %3038 = vrot.lane.b32.xlu1 %v7619_v61, %s6052_s7  ;;  %v2531_v1 = vadd.f32 %v5632_v26, %v7154_v49  ;;  %v7627_v60 = vsel %vm364_vm1, %v2857_v57, %v2861_v46 }
 0x248   : > { %v2564_v42 = vmax.f32 %v2528_v24, 0.0  ;;  %2942 = vrot.lane.b32.xlu0 %v7627_v60, %s6053_s8  ;;  %v2529_v3 = vadd.f32 %v7154_v49, %v2187_v12  ;;  %v2865_v0 = vor.u32 %v2863_v27, %v2861_v46  ;;  %v2871_v20 = vshrl.u32 %v7591_v56, 16  ;;  %v7638_v10 = vld [vmem:[#allocation2 + $0x68] sm:$0xff] }
 0x249   : > { %v2705_v28 = vsel %vm2676_vm12, %v7563_v38, %v2704_v14  ;;  %v2707_v54 = vsel %vm2676_vm12, %v2704_v14, %v2706_v11  ;;  %v2638_v13 = vsel %vm2602_vm14, %v2566_v30, 0.0  ;;  %v2567_v57 = vmax.f32 %v2531_v1, 0.0  ;;  %8410 = vst [vmem:[#allocation5_spill] sm:$0xff] %v7638_v10  ;;  %v7640_v21 = vld [vmem:[#allocation2 + $0x70] sm:$0xff] }
 0x24a   : > { %8411 = vst [vmem:[#allocation6_spill] sm:$0xff] %v7640_v21  ;;  %2745 = vst.msk [vmem:[#allocation2 + $0x78] sm:$0xff] %vm226_vm2, %v2705_v28  ;;  %v2636_v49 = vsel %vm2600_vm15, %v2564_v42, 0.0  ;;  %v2565_v44 = vmax.f32 %v2529_v3, 0.0  ;;  %v7647_v38 = vsel %vm364_vm1, %v2865_v0, %v2869_v52  ;;  %v3004_v35 = vrot.slane %v7638_v10, 1 }
 0x24b   : > { %2746 = vst.msk [vmem:[#allocation2 + $0x80] sm:$0xff] %vm226_vm2, %v2707_v54  ;;  %v2639_v53 = vsel %vm2603_vm5, %v2567_v57, 0.0  ;;  %2944 = vrot.lane.b32.xlu1 %v7647_v38, %s6053_s8  ;;  %v7657_v17 = vsel %vm552_vm0, %v2998_v18, %v3000_v59  ;;  %v3006_v6 = vrot.slane %v7640_v21, 1  ;;  %v2875_v46 = vshll.u32 %v7638_v10, 16 }
 0x24c   : > { %v2657_v24 = vpack.c.bf16 %v2639_v53, %v2638_v13  ;;  %v2637_v26 = vsel %vm2601_vm8, %v2565_v44, 0.0  ;;  %3036 = vrot.lane.b32.xlu0 %v7657_v17, %s6052_s7  ;;  %v2873_v40 = vor.u32 %v2871_v20, %v2869_v52  ;;  %v2883_v27 = vshll.u32 %v7640_v21, 16 }
 0x24d   : > { %v2656_v14 = vpack.c.bf16 %v2637_v26, %v2636_v49  ;;  %v7667_v30 = vsel %vm552_vm0, %v3004_v35, %v3006_v6  ;;  %v2877_v18 = vrot.slane %v2875_v46, 1  ;;  %v2879_v59 = vshrl.u32 %v7638_v10, 16 }
 0x24e   : > { %v2710_v1 = vrot.slane %v2657_v24, 4  ;;  %v2885_v3 = vrot.slane %v2883_v27, 1  ;;  %v2887_v49 = vshrl.u32 %v7640_v21, 16  ;;  %v7698_v44 = vsel %vm552_vm0, %v3002_v58, %v3004_v35 }
 0x24f   : > { %v2708_v12 = vrot.slane %v2656_v14, 4  ;;  %3042 = vrot.lane.b32.xlu1 %v7667_v30, %s6052_s7  ;;  %v7673_v36 = vsel %vm364_vm1, %v2873_v40, %v2877_v18  ;;  %v2881_v42 = vor.u32 %v2879_v59, %v2877_v18 }
 0x250   : > { %2749 = vst.msk [vmem:[#allocation2 + $0x98] sm:$0xf] %vm228_vm7, %v2710_v1  ;;  %2946 = vrot.lane.b32.xlu0 %v7673_v36, %s6053_s8  ;;  %v2889_v24 = vor.u32 %v2887_v49, %v2885_v3  ;;  %vm3227_vm7 = vsmask.f32 4352 }
 0x251   : > { %v2709_v52 = vsel %vm2676_vm12, %v2706_v11, %v2708_v12  ;;  %v2711_v0 = vsel %vm2676_vm12, %v2708_v12, %v2710_v1  ;;  %v7681_v20 = vsel %vm364_vm1, %v2881_v42, %v2885_v3  ;;  %v7683_v28 = vld [vmem:[#allocation2 + $0x78] sm:$0xff]  ;;  %vm3646_vm12 = vsmask.f32 5376 }
 0x252   : > { %8412 = vst [vmem:[#allocation7_spill] sm:$0xff] %v7683_v28  ;;  %v7685_v54 = vld [vmem:[#allocation2 + $0x80] sm:$0xff]  ;;  %2747 = vst.msk [vmem:[#allocation2 + $0x88] sm:$0xff] %vm226_vm2, %v2709_v52  ;;  %v3008_v13 = vrot.slane %v7683_v28, 1  ;;  %v2891_v11 = vshll.u32 %v7683_v28, 16  ;;  %v2895_v40 = vshrl.u32 %v7683_v28, 16 }
 0x253   : > { %8413 = vst [vmem:[#allocation8_spill] sm:$0xff] %v7685_v54  ;;  %2748 = vst.msk [vmem:[#allocation2 + $0x90] sm:$0xff] %vm226_vm2, %v2711_v0  ;;  %v3010_v57 = vrot.slane %v7685_v54, 1  ;;  %2948 = vrot.lane.b32.xlu1 %v7681_v20, %s6053_s8  ;;  %v2899_v53 = vshll.u32 %v7685_v54, 16  ;;  %v2903_v12 = vshrl.u32 %v7685_v54, 16  ;;  %v7750_v54 = vld [vmem:[#allocation2 + $0x8] sm:$0xff] }
 0x254   : > { %3040 = vrot.lane.b32.xlu0 %v7698_v44, %s6052_s7  ;;  %v2893_v26 = vrot.slane %v2891_v11, 1  ;;  %v7731_v52 = vsel %vm552_vm0, %v3006_v6, %v3008_v13 }
 0x255   : > { %v7704_v46 = vsel %vm552_vm0, %v3008_v13, %v3010_v57  ;;  %v2901_v18 = vrot.slane %v2899_v53, 1 }
 0x256   : > { %v7708_v27 = vsel %vm364_vm1, %v2889_v24, %v2893_v26  ;;  %v2897_v14 = vor.u32 %v2895_v40, %v2893_v26 }
 0x257   : > { %3046 = vrot.lane.b32.xlu1 %v7704_v46, %s6052_s7  ;;  %v7726_v3 = vld [vmem:[#allocation2 + $0x98] sm:$0xf]  ;;  %v2905_v11 = vor.u32 %v2903_v12, %v2901_v18 }
 0x258   : > { %2950 = vrot.lane.b32.xlu0 %v7708_v27, %s6053_s8  ;;  %v7715_v58 = vsel %vm364_vm1, %v2897_v14, %v2901_v18  ;;  %8416 = vst [vmem:[#allocation11_spill] sm:$0xff] %v7726_v3  ;;  %v3165_v26 = vshll.u32 %v7726_v3, 16 }
 0x259   : > { %v7717_v35 = vld [vmem:[#allocation2 + $0x88] sm:$0xff] }
 0x25a   : > { %8414 = vst [vmem:[#allocation9_spill] sm:$0xff] %v7717_v35  ;;  %v7719_v59 = vld [vmem:[#allocation2 + $0x90] sm:$0xff]  ;;  %v7722_v1 = vrot.slane %v7717_v35, 1  ;;  %v2907_v42 = vshll.u32 %v7717_v35, 16  ;;  %v2911_v24 = vshrl.u32 %v7717_v35, 16  ;;  %v3167_v18 = vrot.slane %v3165_v26, 1 }
 0x25b   : > { %8415 = vst [vmem:[#allocation10_spill] sm:$0xff] %v7719_v59  ;;  %2952 = vrot.lane.b32.xlu1 %v7715_v58, %s6053_s8  ;;  %v3157_v0 = vshll.u32 %v7719_v59, 16  ;;  %v7746_v6 = vrot.slane %v7719_v59, 1  ;;  %v3161_v12 = vshrl.u32 %v7719_v59, 16  ;;  %v3147_v35 = vld [vmem:[#allocation2 + $0x98] sm:$0x1f] }
 0x25c   : > { %3044 = vrot.lane.b32.xlu0 %v7731_v52, %s6052_s7  ;;  %v7738_v49 = vsel %vm552_vm0, %v3010_v57, %v7722_v1  ;;  %v2909_v53 = vrot.slane %v2907_v42, 1  ;;  %v2769_v57 = vld [vmem:[#allocation2] sm:$0xf8] }
 0x25d   : > { %v3159_v14 = vrot.slane %v3157_v0, 1  ;;  %v7758_v42 = vsel %vm552_vm0, %v7722_v1, %v7746_v6  ;;  %v2774_v26 = vshll.u32 %v2769_v57, 16  ;;  %v2772_v10 = vshrl.u32 %v2769_v57, 16 }
 0x25e   : > { %v7743_v40 = vsel %vm364_vm1, %v2905_v11, %v2909_v53  ;;  %v2913_v13 = vor.u32 %v2911_v24, %v2909_v53  ;;  %8417 = vst [vmem:[#allocation12_spill] sm:$0xff] %v7758_v42  ;;  %v2779_v11 = vshll.u32 %v7750_v54, 16  ;;  %v3169_v53 = vshrl.u32 %v7726_v3, 16 }
 0x25f   : > { %3048 = vrot.lane.b32.xlu1 %v7738_v49, %s6052_s7  ;;  %v7767_v24 = vor.u32 %v3161_v12, %v3159_v14  ;;  %v2776_v56 = vrot.slane %v2774_v26, 1  ;;  %v2783_v3 = vshrl.u32 %v7750_v54, 16  ;;  %v2770_v26 = vld [vmem:[#allocation2 + $0x90] sm:$0xf] }
 0x260   : > { %2954 = vrot.lane.b32.xlu0 %v7743_v40, %s6053_s8  ;;  %v7764_v0 = vsel %vm364_vm1, %v2913_v13, %v3159_v14  ;;  %v3171_v59 = vor.u32 %v3169_v53, %v3167_v18  ;;  %v2781_v28 = vrot.slane %v2779_v11, 1  ;;  %v3187_v14 = vrot.slane %v3147_v35, 1 }
 0x261   : > { %v3168_v21 = vsel %vm364_vm1, %v7767_v24, %v3167_v18  ;;  %v2777_v53 = vor.u32 %v2776_v56, %v2772_v10  ;;  %v4024_v10 = vld [vmem:[#allocation2 + $0x10] sm:$0xe0] }
 0x262   : > { %v2785_v12 = vor.u32 %v2783_v3, %v2781_v28  ;;  %v3188_v11 = vsel %vm552_vm0, %v7746_v6, %v3187_v14  ;;  %v2979_v3 = vrot.slane %v2769_v57, 1 }
 0x263   : > { %3191 = vrot.lane.b32.xlu1 %v7758_v42, %s6052_s7  ;;  %v7776_v42 = vld [vmem:[#allocation2 + $0x90] sm:$0x7]  ;;  %v2782_v35 = vsel %vm364_vm1, %v2777_v53, %v2781_v28  ;;  %v4029_v28 = vshll.u32 %v4024_v10, 16 }
 0x264   : > { %3174 = vrot.lane.b32.xlu0 %v7764_v0, %s6053_s8  ;;  %v2790_v18 = vsel %vm364_vm1, %v2785_v12, %v7320_v25  ;;  %v2919_v25 = vshrl.u32 %v7776_v42, 16  ;;  %v3014_v12 = vrot.slane %v2770_v26, 1 }
 0x266   : > { %v3015_v57 = vsel %vm552_vm0, %v7722_v1, %v3014_v12  ;;  %v4234_v1 = vrot.slane %v4024_v10, 1 }
 0x267   : > { %3178 = vrot.lane.b32.xlu1 %v3171_v59, %s6053_s8  ;;  %v2915_v59 = vshll.u32 %v7776_v42, 16 }
 0x268   : > { %3176 = vrot.lane.b32.xlu0 %v3168_v21, %s6053_s8  ;;  %v2980_v21 = vrot.slane %v7750_v54, 1 }
 0x269   : > { %v2917_v23 = vrot.slane %v2915_v59, 1  ;;  %v4027_v59 = vshrl.u32 %v4024_v10, 16 }
 0x26a   : > { %v2983_v56 = vsel %vm552_vm0, %v2980_v21, %v7299_v48  ;;  %v4031_v48 = vrot.slane %v4029_v28, 1 }
 0x26b   : > { %3195 = vrot.lane.b32.xlu1 %v3187_v14, %s6052_s7  ;;  %v2981_v14 = vsel %vm552_vm0, %v2979_v3, %v2980_v21  ;;  %v2918_v53 = vsel %vm364_vm1, %v2913_v13, %v2917_v23 }
 0x26c   : > { %3193 = vrot.lane.b32.xlu0 %v3188_v11, %s6052_s7  ;;  %v2921_v11 = vor.u32 %v2919_v25, %v2917_v23 }
 0x26f   : > { %2924 = vrot.lane.b32.xlu1 %v2790_v18, %s6053_s8  ;;  %v4032_v18 = vor.u32 %v4031_v48, %v4027_v59 }
 0x270   : > { %2922 = vrot.lane.b32.xlu0 %v2782_v35, %s6053_s8  ;;  %v4236_v35 = vsel %vm552_vm0, %v4234_v1, %v7357_v63  ;;  %v3143_v63 = vld [vmem:[#allocation2 + $0x8] sm:$0xf8] }
 0x271   : > { %v4037_v21 = vsel %vm364_vm1, %v4032_v18, %v7378_v29 }
 0x273   : > { %3018 = vrot.lane.b32.xlu1 %v2983_v56, %s6052_s7 }
 0x274   : > { %3016 = vrot.lane.b32.xlu0 %v2981_v14, %s6052_s7 }
 0x277   : > { %2958 = vrot.lane.b32.xlu1 %v2921_v11, %s6053_s8 }
 0x278   : > { %3050 = vrot.lane.b32.xlu0 %v3015_v57, %s6052_s7 }
 0x27b   : > { %3052 = vrot.lane.b32.xlu1 %v3014_v12, %s6052_s7 }
 0x27c   : > { %2956 = vrot.lane.b32.xlu0 %v2918_v53, %s6053_s8 }
 0x27f   : > { %4179 = vrot.lane.b32.xlu1 %v7424_v19, %s6053_s8 }
 0x280   : > { %4177 = vrot.lane.b32.xlu0 %v4037_v21, %s6053_s8 }
 0x283   : > { %4271 = vrot.lane.b32.xlu1 %v4236_v35, %s6052_s7 }
 0x284   : > { %4181 = vrot.lane.b32.xlu0 %v7454_v45, %s6053_s8 }
 0x287   : > { %4275 = vrot.lane.b32.xlu1 %v7470_v47, %s6052_s7 }
 0x288   : > { %4273 = vrot.lane.b32.xlu0 %v7406_v22, %s6052_s7 }
 0x28a   : > { %v3190_v22 = vpop.permute.xlu0 %3189 }
 0x28b   : > { %4185 = vrot.lane.b32.xlu1 %v7513_v16, %s6053_s8 }
 0x28c   : > { %4183 = vrot.lane.b32.xlu0 %v7481_v50, %s6053_s8 }
 0x28f   : > { %4279 = vrot.lane.b32.xlu1 %v7528_v7, %s6052_s7 }
 0x290   : > { %4277 = vrot.lane.b32.xlu0 %v7439_v31, %s6052_s7 }
 0x291   : > { %v3173_v29 = vpop.permute.xlu1 %3172 }
 0x292   : > { %v3199_v19 = vsel %vm226_vm2, %v3143_v63, %v3173_v29 }
 0x293   : > { %4189 = vrot.lane.b32.xlu1 %v7572_v33, %s6053_s8  ;;  %v3207_v45 = vsel %vm662_vm3, %v3199_v19, %v3190_v22 }
 0x294   : > { %4187 = vrot.lane.b32.xlu0 %v7539_v43, %s6053_s8  ;;  %v3228_v47 = vshrl.u32 %v3207_v45, 16  ;;  %v3231_v50 = vshll.u32 %v3207_v45, 16 }
 0x295   : > { %v3021_v31 = vpop.permute.xlu1 %3020 }
 0x296   : > { %v2927_v16 = vpop.permute.xlu0 %2926  ;;  %v3230_v13 = vrot.slane %v3228_v47, 3 }
 0x297   : > { %4283 = vrot.lane.b32.xlu1 %v7587_v5, %s6052_s7  ;;  %v3060_v7 = vsel %vm226_vm2, %v7293_v34, %v2927_v16 }
 0x298   : > { %4281 = vrot.lane.b32.xlu0 %v7503_v15, %s6052_s7  ;;  %v3098_v43 = vsel %vm662_vm3, %v3060_v7, %v3021_v31  ;;  %v3233_v15 = vrot.slane %v3231_v50, 4 }
 0x299   : > { %v3235_v33 = vshrl.u32 %v3098_v43, 16  ;;  %v3238_v5 = vshll.u32 %v3098_v43, 16  ;;  %v3023_v23 = vpop.permute.xlu1 %3022 }
 0x29a   : > { %v3234_v57 = vor.u32 %v3233_v15, %v3230_v13 }
 0x29b   : > { %4193 = vrot.lane.b32.xlu1 %v7627_v60, %s6053_s8  ;;  %v2929_v3 = vpop.permute.xlu0 %2928  ;;  %v3662_v26 = vrot.slane %v3235_v33, 2  ;;  %v3663_v56 = vrot.slane %v3238_v5, 3  ;;  %v3237_v34 = vrot.slane %v3235_v33, 3 }
 0x29c   : > { %4191 = vrot.lane.b32.xlu0 %v7597_v51, %s6053_s8  ;;  %v3062_v60 = vsel %vm226_vm2, %v7339_v62, %v2929_v3  ;;  %v3240_v51 = vrot.slane %v3238_v5, 4  ;;  %v6007_v5 = vld [vmem:[%s8378_s3 + $0x10] sm:$0xff]  }
 0x29d   : > { %v3100_v10 = vsel %vm662_vm3, %v3062_v60, %v3023_v23  ;;  %v7848_v14 = vor.u32 %v3663_v56, %v3662_v26  ;;  %v3027_v11 = vpop.permute.xlu1 %3026 }
 0x29e   : > { %v3243_v25 = vshrl.u32 %v3100_v10, 16  ;;  %v3246_v12 = vshll.u32 %v3100_v10, 16  ;;  %v3241_v48 = vor.u32 %v3240_v51, %v3237_v34 }
 0x29f   : > { %4287 = vrot.lane.b32.xlu1 %v7657_v17, %s6052_s7  ;;  %v2931_v28 = vpop.permute.xlu0 %2930 }
 0x2a0   : > { %4285 = vrot.lane.b32.xlu0 %v7561_v4, %s6052_s7  ;;  %v3245_v17 = vrot.slane %v3243_v25, 3  ;;  %v3248_v53 = vrot.slane %v3246_v12, 4  ;;  %v3666_v59 = vrot.slane %v3243_v25, 2  ;;  %v3667_v62 = vrot.slane %v3246_v12, 3  ;;  %v7889_v25 = vld [vmem:[#allocation2 + $0x98] sm:$0xff] }
 0x2a1   : > { %v3242_v4 = vsel %vm3227_vm7, %v3234_v57, %v3241_v48  ;;  %v3064_v35 = vsel %vm226_vm2, %v7343_v32, %v2931_v28 }
 0x2a2   : > { %5645 = vmatprep.mubr.msk.bf16.mxu1 %vm902_vm4, %v3242_v4  ;;  %v3249_v21 = vor.u32 %v3248_v53, %v3245_v17  ;;  %v3668_v1 = vor.u32 %v3667_v62, %v3666_v59  ;;  %v4162_v17 = vshll.u32 %v7889_v25, 16 }
 0x2a3   : > { %4197 = vrot.lane.b32.xlu1 %v7673_v36, %s6053_s8  ;;  %v2933_v18 = vpop.permute.xlu1 %2932  ;;  %v3025_v29 = vpop.permute.xlu0 %3024  ;;  %v6006_v36 = vld [vmem:[%s8378_s3 + $0x8] sm:$0xff]  }
 0x2a4   : > { %4195 = vrot.lane.b32.xlu0 %v7647_v38, %s6053_s8  ;;  %v3066_v63 = vsel %vm226_vm2, %v7408_v8, %v2933_v18  ;;  %v3102_v22 = vsel %vm662_vm3, %v3064_v35, %v3025_v29  ;;  %v3250_v19 = vsel %vm3227_vm7, %v3241_v48, %v3249_v21  ;;  %v7870_v32 = vsel %vm3646_vm12, %v7848_v14, %v3668_v1 }
 0x2a5   : > { %v3104_v38 = vsel %vm662_vm3, %v3066_v63, %v3027_v11  ;;  %v3251_v31 = vshrl.u32 %v3102_v22, 16  ;;  %v3254_v47 = vshll.u32 %v3102_v22, 16  ;;  %5646 = vmatmul.mubr.msk.bf16.vlgmr.msra.gmra.mrb[0].mxu1 %vm902_vm4, %v3250_v19  ;;  %v7912_v63 = vld [vmem:[#allocation2 + $0xa0] sm:$0x1f] }
 0x2a6   : > { %v3259_v45 = vshrl.u32 %v3104_v38, 16  ;;  %v3262_v8 = vshll.u32 %v3104_v38, 16  ;;  %5682 = vmatpush3.bf16.msra.mxu1 %v7444_v39 }
 0x2a7   : > { %4291 = vrot.lane.b32.xlu1 %v7698_v44, %s6052_s7  ;;  %v3031_v50 = vpop.permute.xlu1 %3030  ;;  %5683 = vmatprep.subr.bf16.mxu1 %v6006_v36  ;;  %v3253_v23 = vrot.slane %v3251_v31, 3  ;;  %v3256_v13 = vrot.slane %v3254_v47, 4  ;;  %v3670_v15 = vrot.slane %v3251_v31, 2  ;;  %v3671_v3 = vrot.slane %v3254_v47, 3  ;;  %v6009_v47 = vld [vmem:[%s8378_s3 + $0x20] sm:$0xff]  }
 0x2a8   : > { %4289 = vrot.lane.b32.xlu0 %v7619_v61, %s6052_s7  ;;  %v3261_v44 = vrot.slane %v3259_v45, 3  ;;  %v3264_v16 = vrot.slane %v3262_v8, 4  ;;  %v3674_v7 = vrot.slane %v3259_v45, 2  ;;  %v3675_v43 = vrot.slane %v3262_v8, 3  ;;  %v2935_v33 = vpop.permute.xlu0 %2934 }
 0x2a9   : > { %v3257_v26 = vor.u32 %v3256_v13, %v3253_v23  ;;  %v3672_v56 = vor.u32 %v3671_v3, %v3670_v15  ;;  %v3068_v34 = vsel %vm226_vm2, %v7410_v55, %v2935_v33  ;;  %v6008_v55 = vld [vmem:[%s8378_s3 + $0x18] sm:$0xff]   ;;  %v4170_v31 = vshll.u32 %v7912_v63, 16 }
 0x2aa   : > { %v3265_v39 = vor.u32 %v3264_v16, %v3261_v44  ;;  %v7883_v61 = vor.u32 %v3675_v43, %v3674_v7  ;;  %5684 = vmatpush3.bf16.msra.mxu1 %v6006_v36  ;;  %v4164_v44 = vrot.slane %v4162_v17, 1  ;;  %v4174_v16 = vshrl.u32 %v7912_v63, 16  ;;  %v7965_v17 = vld [vmem:[%s8378_s3 + $0x60] sm:$0xff]  }
 0x2ab   : > { %4201 = vrot.lane.b32.xlu1 %v7708_v27, %s6053_s8  ;;  %5685 = vmatprep.subr.bf16.mxu1 %v6007_v5  ;;  %v3258_v12 = vsel %vm3227_vm7, %v3249_v21, %v3257_v26  ;;  %v7906_v53 = vsel %vm3646_vm12, %v3668_v1, %v3672_v56 }
 0x2ac   : > { %4199 = vrot.lane.b32.xlu0 %v7681_v20, %s6053_s8  ;;  %v2937_v60 = vpop.permute.xlu1 %2936  ;;  %v3029_v51 = vpop.permute.xlu0 %3028  ;;  %v3266_v11 = vsel %vm3227_vm7, %v3257_v26, %v3265_v39  ;;  %5649 = vmatprep.mubr.msk.bf16.mxu1 %vm902_vm4, %v3258_v12  ;;  %v7910_v59 = vsel %vm3646_vm12, %v3672_v56, %v7883_v61  ;;  %v4165_v3 = vsel %vm364_vm1, %v7767_v24, %v4164_v44 }
 0x2ad   : > { %v3070_v10 = vsel %vm226_vm2, %v7472_v2, %v2937_v60  ;;  %v3106_v20 = vsel %vm662_vm3, %v3068_v34, %v3029_v51  ;;  %5650 = vmatmul.mubr.msk.bf16.gmra.mrb[4].mxu1 %vm902_vm4, %v3266_v11 }
 0x2ae   : > { %v3108_v27 = vsel %vm662_vm3, %v3070_v10, %v3031_v50  ;;  %v3267_v57 = vshrl.u32 %v3106_v20, 16  ;;  %v3270_v48 = vshll.u32 %v3106_v20, 16  ;;  %5686 = vmatpush3.bf16.msra.mxu1 %v6007_v5 }
 0x2af   : > { %4295 = vrot.lane.b32.xlu1 %v7731_v52, %s6052_s7  ;;  %v3275_v2 = vshrl.u32 %v3108_v27, 16  ;;  %v3278_v28 = vshll.u32 %v3108_v27, 16  ;;  %5687 = vmatprep.subr.bf16.mxu1 %v6008_v55 }
 0x2b0   : > { %4293 = vrot.lane.b32.xlu0 %v7667_v30, %s6052_s7  ;;  %v3035_v52 = vpop.permute.xlu1 %3034  ;;  %v3269_v30 = vrot.slane %v3267_v57, 3  ;;  %v3272_v29 = vrot.slane %v3270_v48, 4  ;;  %v3678_v36 = vrot.slane %v3267_v57, 2  ;;  %v3679_v38 = vrot.slane %v3270_v48, 3 }
 0x2b1   : > { %v3277_v62 = vrot.slane %v3275_v2, 3  ;;  %v3280_v4 = vrot.slane %v3278_v28, 4  ;;  %v3682_v18 = vrot.slane %v3275_v2, 2  ;;  %v3683_v21 = vrot.slane %v3278_v28, 3 }
 0x2b2   : > { %v2939_v35 = vpop.permute.xlu0 %2938  ;;  %v3273_v19 = vor.u32 %v3272_v29, %v3269_v30  ;;  %v3680_v45 = vor.u32 %v3679_v38, %v3678_v36  ;;  %5688 = vmatpush3.bf16.msra.mxu1 %v6008_v55  ;;  %v4172_v55 = vrot.slane %v4170_v31, 1  ;;  %v4025_v30 = vld [vmem:[#allocation2 + $0xa0] sm:$0x3f] }
 0x2b3   : > { %4205 = vrot.lane.b32.xlu1 %v7743_v40, %s6053_s8  ;;  %v7918_v1 = vor.u32 %v3280_v4, %v3277_v62  ;;  %v7920_v22 = vor.u32 %v3683_v21, %v3682_v18  ;;  %v3072_v40 = vsel %vm226_vm2, %v7474_v9, %v2939_v35  ;;  %5689 = vmatprep.subr.bf16.mxu1 %v6009_v47  ;;  %v8418_v4 = vld [vmem:[#allocation3_spill] sm:$0xff] }
 0x2b4   : > { %4203 = vrot.lane.b32.xlu0 %v7715_v58, %s6053_s8  ;;  %v3274_v33 = vsel %vm3227_vm7, %v3265_v39, %v3273_v19  ;;  %v4166_v39 = vshrl.u32 %v7889_v25, 16  ;;  %v7950_v26 = vsel %vm3646_vm12, %v7883_v61, %v3680_v45  ;;  %v4267_v61 = vrot.slane %v7889_v25, 1 }
 0x2b5   : > { %v2941_v8 = vpop.permute.xlu1 %2940  ;;  %v3282_v9 = vsel %vm3227_vm7, %v3273_v19, %v7918_v1  ;;  %5653 = vmatprep.mubr.msk.bf16.mxu1 %vm902_vm4, %v3274_v33  ;;  %v7954_v56 = vsel %vm3646_vm12, %v3680_v45, %v7920_v22  ;;  %v4176_v35 = vor.u32 %v4174_v16, %v4172_v55 }
 0x2b6   : > { %v3074_v50 = vsel %vm226_vm2, %v7530_v37, %v2941_v8  ;;  %v3033_v58 = vpop.permute.xlu0 %3032  ;;  %v6010_v37 = vld [vmem:[%s8378_s3 + $0x28] sm:$0xff]   ;;  %5654 = vmatmul.mubr.msk.bf16.gmra.mrb[8].mxu1 %vm902_vm4, %v3282_v9  ;;  %v4268_v18 = vsel %vm552_vm0, %v7746_v6, %v4267_v61  ;;  %v8419_v6 = vld [vmem:[#allocation12_spill] sm:$0xff] }
 0x2b7   : > { %v3112_v7 = vsel %vm662_vm3, %v3074_v50, %v3035_v52  ;;  %4299 = vrot.lane.b32.xlu1 %v7738_v49, %s6052_s7  ;;  %v3110_v43 = vsel %vm662_vm3, %v3072_v40, %v3033_v58  ;;  %5690 = vmatpush3.bf16.msra.mxu1 %v6009_v47  ;;  %v4168_v52 = vor.u32 %v4166_v39, %v4164_v44  ;;  %v4269_v50 = vrot.slane %v4025_v30, 1  ;;  %v8420_v39 = vld [vmem:[#allocation4_spill] sm:$0xff] }
 0x2b8   : > { %v3291_v5 = vshrl.u32 %v3112_v7, 16  ;;  %v3294_v23 = vshll.u32 %v3112_v7, 16  ;;  %v3283_v13 = vshrl.u32 %v3110_v43, 16  ;;  %v3286_v15 = vshll.u32 %v3110_v43, 16  ;;  %4297 = vrot.lane.b32.xlu0 %v7704_v46, %s6052_s7  ;;  %5691 = vmatprep.subr.bf16.mxu1 %v6010_v37 }
 0x2b9   : > { %v3039_v49 = vpop.permute.xlu1 %3038  ;;  %v4173_v40 = vsel %vm364_vm1, %v4168_v52, %v4172_v55 }
 0x2ba   : > { %v3293_v60 = vrot.slane %v3291_v5, 3  ;;  %v3296_v34 = vrot.slane %v3294_v23, 4  ;;  %v3690_v46 = vrot.slane %v3291_v5, 2  ;;  %v3691_v10 = vrot.slane %v3294_v23, 3  ;;  %v2943_v51 = vpop.permute.xlu0 %2942 }
 0x2bb   : > { %v3285_v27 = vrot.slane %v3283_v13, 3  ;;  %v3288_v20 = vrot.slane %v3286_v15, 4  ;;  %v3686_v24 = vrot.slane %v3283_v13, 2  ;;  %v3687_v12 = vrot.slane %v3286_v15, 3  ;;  %4209 = vrot.lane.b32.xlu1 %v4165_v3, %s6053_s8  ;;  %5692 = vmatpush3.bf16.msra.mxu1 %v6010_v37 }
 0x2bc   : > { %4207 = vrot.lane.b32.xlu0 %v7764_v0, %s6053_s8  ;;  %v3297_v11 = vor.u32 %v3296_v34, %v3293_v60  ;;  %v7960_v2 = vor.u32 %v3691_v10, %v3690_v46  ;;  %v3076_v62 = vsel %vm226_vm2, %v7532_v41, %v2943_v51  ;;  %5729 = vmatprep.subr.bf16.mxu1 %v7965_v17  ;;  %v8421_v34 = vld [vmem:[#allocation5_spill] sm:$0xff] }
 0x2bd   : > { %v3289_v28 = vor.u32 %v3288_v20, %v3285_v27  ;;  %v3688_v57 = vor.u32 %v3687_v12, %v3686_v24  ;;  %v2945_v48 = vpop.permute.xlu1 %2944  ;;  %v4270_v51 = vsel %vm552_vm0, %v4267_v61, %v4269_v50  ;;  %vm4399_vm0 = vsmask.f32 3328 }
 0x2be   : > { %v3078_v0 = vsel %vm226_vm2, %v8418_v4, %v2945_v48  ;;  %v3037_v21 = vpop.permute.xlu0 %3036 }
 0x2bf   : > { %v3116_v29 = vsel %vm662_vm3, %v3078_v0, %v3039_v49  ;;  %4303 = vrot.lane.b32.xlu1 %v4268_v18, %s6052_s7  ;;  %v3114_v36 = vsel %vm662_vm3, %v3076_v62, %v3037_v21  ;;  %v3290_v38 = vsel %vm3227_vm7, %v7918_v1, %v3289_v28  ;;  %v3298_v41 = vsel %vm3227_vm7, %v3289_v28, %v3297_v11 }
 0x2c0   : > { %v3307_v19 = vshrl.u32 %v3116_v29, 16  ;;  %v3310_v45 = vshll.u32 %v3116_v29, 16  ;;  %v3299_v8 = vshrl.u32 %v3114_v36, 16  ;;  %v3302_v31 = vshll.u32 %v3114_v36, 16  ;;  %5657 = vmatprep.mubr.msk.bf16.mxu1 %vm902_vm4, %v3290_v38  ;;  %4301 = vrot.lane.b32.xlu0 %v8419_v6, %s6052_s7  ;;  %v8423_v6 = vld [vmem:[#allocation7_spill] sm:$0xff] }
 0x2c1   : > { %v3043_v47 = vpop.permute.xlu1 %3042  ;;  %5658 = vmatmul.mubr.msk.bf16.gmra.mrb[12].mxu1 %vm902_vm4, %v3298_v41  ;;  %v7987_v1 = vsel %vm3646_vm12, %v7920_v22, %v3688_v57  ;;  %v7991_v58 = vsel %vm3646_vm12, %v3688_v57, %v7960_v2 }
 0x2c2   : > { %v3309_v44 = vrot.slane %v3307_v19, 3  ;;  %v3312_v16 = vrot.slane %v3310_v45, 4  ;;  %v3698_v7 = vrot.slane %v3307_v19, 2  ;;  %v3699_v43 = vrot.slane %v3310_v45, 3  ;;  %v2947_v33 = vpop.permute.xlu0 %2946 }
 0x2c3   : > { %v3301_v9 = vrot.slane %v3299_v8, 3  ;;  %v3304_v37 = vrot.slane %v3302_v31, 4  ;;  %v3694_v5 = vrot.slane %v3299_v8, 2  ;;  %v3695_v23 = vrot.slane %v3302_v31, 3  ;;  %4213 = vrot.lane.b32.xlu1 %v4176_v35, %s6053_s8  ;;  %v8422_v31 = vld [vmem:[#allocation6_spill] sm:$0xff] }
 0x2c4   : > { %4211 = vrot.lane.b32.xlu0 %v4173_v40, %s6053_s8  ;;  %v3313_v13 = vor.u32 %v3312_v16, %v3309_v44  ;;  %v3700_v22 = vor.u32 %v3699_v43, %v3698_v7  ;;  %v3080_v60 = vsel %vm226_vm2, %v8420_v39, %v2947_v33 }
 0x2c5   : > { %v3305_v15 = vor.u32 %v3304_v37, %v3301_v9  ;;  %v3696_v49 = vor.u32 %v3695_v23, %v3694_v5  ;;  %v2949_v3 = vpop.permute.xlu1 %2948 }
 0x2c6   : > { %v3082_v46 = vsel %vm226_vm2, %v8421_v34, %v2949_v3  ;;  %v3041_v10 = vpop.permute.xlu0 %3040 }
 0x2c7   : > { %v3120_v27 = vsel %vm662_vm3, %v3082_v46, %v3043_v47  ;;  %v3118_v20 = vsel %vm662_vm3, %v3080_v60, %v3041_v10  ;;  %v3306_v24 = vsel %vm3227_vm7, %v3297_v11, %v3305_v15  ;;  %4307 = vrot.lane.b32.xlu1 %v4269_v50, %s6052_s7  ;;  %v3314_v12 = vsel %vm3227_vm7, %v3305_v15, %v3313_v13 }
 0x2c8   : > { %v3323_v55 = vshrl.u32 %v3120_v27, 16  ;;  %v3326_v28 = vshll.u32 %v3120_v27, 16  ;;  %v3315_v57 = vshrl.u32 %v3118_v20, 16  ;;  %v3318_v48 = vshll.u32 %v3118_v20, 16  ;;  %5661 = vmatprep.mubr.msk.bf16.mxu1 %vm902_vm4, %v3306_v24  ;;  %4305 = vrot.lane.b32.xlu0 %v4270_v51, %s6052_s7  ;;  %v8424_v27 = vld [vmem:[#allocation8_spill] sm:$0xff] }
 0x2c9   : > { %v3047_v52 = vpop.permute.xlu1 %3046  ;;  %5662 = vmatmul.mubr.msk.bf16.gmra.mrb[16].mxu1 %vm902_vm4, %v3314_v12  ;;  %v8010_v61 = vsel %vm3646_vm12, %v7960_v2, %v3696_v49  ;;  %v8013_v11 = vsel %vm3646_vm12, %v3696_v49, %v3700_v22 }
 0x2ca   : > { %v3325_v62 = vrot.slane %v3323_v55, 3  ;;  %v3328_v4 = vrot.slane %v3326_v28, 4  ;;  %v3706_v0 = vrot.slane %v3323_v55, 2  ;;  %v3707_v18 = vrot.slane %v3326_v28, 3  ;;  %v2951_v21 = vpop.permute.xlu0 %2950 }
 0x2cb   : > { %v3317_v35 = vrot.slane %v3315_v57, 3  ;;  %v3320_v30 = vrot.slane %v3318_v48, 4  ;;  %v3702_v29 = vrot.slane %v3315_v57, 2  ;;  %v3703_v36 = vrot.slane %v3318_v48, 3 }
 0x2cc   : > { %v3329_v38 = vor.u32 %v3328_v4, %v3325_v62  ;;  %v3708_v41 = vor.u32 %v3707_v18, %v3706_v0  ;;  %v3084_v2 = vsel %vm226_vm2, %v8422_v31, %v2951_v21  ;;  %v8425_v4 = vld [vmem:[#allocation9_spill] sm:$0xff] }
 0x2cd   : > { %v3321_v19 = vor.u32 %v3320_v30, %v3317_v35  ;;  %v3704_v45 = vor.u32 %v3703_v36, %v3702_v29  ;;  %v2953_v8 = vpop.permute.xlu1 %2952 }
 0x2ce   : > { %v3086_v47 = vsel %vm226_vm2, %v8423_v6, %v2953_v8  ;;  %v3045_v40 = vpop.permute.xlu0 %3044 }
 0x2cf   : > { %v3124_v50 = vsel %vm662_vm3, %v3086_v47, %v3047_v52  ;;  %v3122_v44 = vsel %vm662_vm3, %v3084_v2, %v3045_v40  ;;  %v3322_v16 = vsel %vm3227_vm7, %v3313_v13, %v3321_v19  ;;  %v3330_v7 = vsel %vm3227_vm7, %v3321_v19, %v3329_v38 }
 0x2d0   : > { %v3339_v43 = vshrl.u32 %v3124_v50, 16  ;;  %v3342_v33 = vshll.u32 %v3124_v50, 16  ;;  %v3331_v9 = vshrl.u32 %v3122_v44, 16  ;;  %v3334_v37 = vshll.u32 %v3122_v44, 16  ;;  %5665 = vmatprep.mubr.msk.bf16.mxu1 %vm902_vm4, %v3322_v16  ;;  %v8426_v16 = vld [vmem:[#allocation11_spill] sm:$0xff] }
 0x2d1   : > { %v3049_v5 = vpop.permute.xlu1 %3048  ;;  %5666 = vmatmul.mubr.msk.bf16.gmra.mrb[20].mxu1 %vm902_vm4, %v3330_v7  ;;  %v8026_v23 = vsel %vm3646_vm12, %v3700_v22, %v3704_v45  ;;  %v8029_v15 = vsel %vm3646_vm12, %v3704_v45, %v3708_v41 }
 0x2d2   : > { %v3341_v49 = vrot.slane %v3339_v43, 3  ;;  %v3344_v3 = vrot.slane %v3342_v33, 4  ;;  %v3714_v13 = vrot.slane %v3339_v43, 2  ;;  %v3715_v39 = vrot.slane %v3342_v33, 3  ;;  %v2955_v60 = vpop.permute.xlu0 %2954 }
 0x2d3   : > { %v3333_v34 = vrot.slane %v3331_v9, 3  ;;  %v3336_v46 = vrot.slane %v3334_v37, 4  ;;  %v3710_v10 = vrot.slane %v3331_v9, 2  ;;  %v3711_v51 = vrot.slane %v3334_v37, 3  ;;  %v8427_v37 = vld [vmem:[#allocation10_spill] sm:$0xff] }
 0x2d4   : > { %v3088_v20 = vsel %vm226_vm2, %v8424_v27, %v2955_v60  ;;  %v3345_v24 = vor.u32 %v3344_v3, %v3341_v49  ;;  %v3716_v12 = vor.u32 %v3715_v39, %v3714_v13 }
 0x2d5   : > { %v3337_v55 = vor.u32 %v3336_v46, %v3333_v34  ;;  %v3712_v22 = vor.u32 %v3711_v51, %v3710_v10  ;;  %v3126_v28 = vsel %vm662_vm3, %v3088_v20, %v3049_v5  ;;  %v3192_v57 = vpop.permute.xlu1 %3191 }
 0x2d6   : > { %v3347_v48 = vshrl.u32 %v3126_v28, 16  ;;  %v3350_v52 = vshll.u32 %v3126_v28, 16  ;;  %v3175_v62 = vpop.permute.xlu0 %3174 }
 0x2d7   : > { %v3201_v0 = vsel %vm226_vm2, %v8425_v4, %v3175_v62  ;;  %v3338_v18 = vsel %vm3227_vm7, %v3329_v38, %v3337_v55  ;;  %v3346_v21 = vsel %vm3227_vm7, %v3337_v55, %v3345_v24  ;;  %v8039_v35 = vsel %vm3646_vm12, %v3708_v41, %v3712_v22 }
 0x2d8   : > { %v3349_v30 = vrot.slane %v3347_v48, 3  ;;  %v3352_v29 = vrot.slane %v3350_v52, 4  ;;  %v3718_v36 = vrot.slane %v3347_v48, 2  ;;  %v3719_v19 = vrot.slane %v3350_v52, 3  ;;  %5669 = vmatprep.mubr.msk.bf16.mxu1 %vm902_vm4, %v3338_v18 }
 0x2d9   : > { %v3209_v45 = vsel %vm662_vm3, %v3201_v0, %v3192_v57  ;;  %v3179_v8 = vpop.permute.xlu1 %3178  ;;  %5670 = vmatmul.mubr.msk.bf16.gmra.mrb[24].mxu1 %vm902_vm4, %v3346_v21  ;;  %v8045_v31 = vsel %vm3646_vm12, %v3712_v22, %v3716_v12  ;;  %v2750_v22 = vld [vmem:[#allocation2] sm:$0xfc] }
 0x2da   : > { %v3355_v38 = vshrl.u32 %v3209_v45, 16  ;;  %v3358_v2 = vshll.u32 %v3209_v45, 16  ;;  %v3177_v6 = vpop.permute.xlu0 %3176  ;;  %v3353_v47 = vor.u32 %v3352_v29, %v3349_v30  ;;  %v8047_v41 = vor.u32 %v3719_v19, %v3718_v36 }
 0x2db   : > { %v3205_v7 = vsel %vm226_vm2, %v8426_v16, %v3179_v8  ;;  %v3203_v5 = vsel %vm226_vm2, %v8427_v37, %v3177_v6 }
 0x2dc   : > { %v3357_v40 = vrot.slane %v3355_v38, 3  ;;  %v3360_v50 = vrot.slane %v3358_v2, 4  ;;  %v3354_v44 = vsel %vm3227_vm7, %v3345_v24, %v3353_v47  ;;  %v8055_v33 = vsel %vm3646_vm12, %v3716_v12, %v8047_v41 }
 0x2dd   : > { %v3196_v43 = vpop.permute.xlu1 %3195  ;;  %5673 = vmatprep.mubr.msk.bf16.mxu1 %vm902_vm4, %v3354_v44 }
 0x2de   : > { %v3361_v9 = vor.u32 %v3360_v50, %v3357_v40  ;;  %v3213_v49 = vsel %vm662_vm3, %v3205_v7, %v3196_v43  ;;  %v3194_v3 = vpop.permute.xlu0 %3193  ;;  %v6012_v7 = vld [vmem:[%s8378_s3 + $0x68] sm:$0xff]  }
 0x2df   : > { %v3371_v13 = vshrl.u32 %v3213_v49, 16  ;;  %v3374_v39 = vshll.u32 %v3213_v49, 16  ;;  %v3211_v60 = vsel %vm662_vm3, %v3203_v5, %v3194_v3  ;;  %v6013_v5 = vld [vmem:[%s8378_s3 + $0x70] sm:$0xff]  }
 0x2e0   : > { %v3363_v34 = vshrl.u32 %v3211_v60, 16  ;;  %v3366_v46 = vshll.u32 %v3211_v60, 16  ;;  %v3362_v10 = vsel %vm3227_vm7, %v3353_v47, %v3361_v9 }
 0x2e1   : > { %v3373_v51 = vrot.slane %v3371_v13, 3  ;;  %v3376_v27 = vrot.slane %v3374_v39, 4  ;;  %v2925_v20 = vpop.permute.xlu1 %2924  ;;  %5674 = vmatmul.mubr.msk.bf16.gmra.mrb[28].mxu1 %vm902_vm4, %v3362_v10  ;;  %v6016_v39 = vld [vmem:[%s8378_s3 + $0x88] sm:$0xff]  }
 0x2e2   : > { %v3365_v24 = vrot.slane %v3363_v34, 3  ;;  %v3368_v12 = vrot.slane %v3366_v46, 4  ;;  %v2923_v55 = vpop.permute.xlu0 %2922  ;;  %v3058_v48 = vsel %vm226_vm2, %v7750_v54, %v2925_v20  ;;  %v4005_v20 = vld [vmem:[#allocation2 + $0x10] sm:$0xf0] }
 0x2e3   : > { %v3377_v28 = vor.u32 %v3376_v27, %v3373_v51  ;;  %v3056_v62 = vsel %vm226_vm2, %v2750_v22, %v2923_v55  ;;  %v6028_v55 = vld [vmem:[#allocation2 + $0x18] sm:$0xff] }
 0x2e4   : > { %v3369_v57 = vor.u32 %v3368_v12, %v3365_v24 }
 0x2e5   : > { %v3019_v52 = vpop.permute.xlu1 %3018 }
 0x2e6   : > { %v3096_v0 = vsel %vm662_vm3, %v3058_v48, %v3019_v52  ;;  %v3017_v18 = vpop.permute.xlu0 %3016  ;;  %v3370_v21 = vsel %vm3227_vm7, %v3361_v9, %v3369_v57  ;;  %v3378_v30 = vsel %vm3227_vm7, %v3369_v57, %v3377_v28 }
 0x2e7   : > { %v3654_v29 = vshrl.u32 %v3096_v0, 16  ;;  %v3657_v36 = vshll.u32 %v3096_v0, 16  ;;  %v3094_v19 = vsel %vm662_vm3, %v3056_v62, %v3017_v18  ;;  %5677 = vmatprep.mubr.msk.bf16.mxu1 %vm902_vm4, %v3370_v21 }
 0x2e8   : > { %v3647_v45 = vshrl.u32 %v3094_v19, 16  ;;  %v3650_v8 = vshll.u32 %v3094_v19, 16 }
 0x2e9   : > { %v3656_v38 = vrot.slane %v3654_v29, 2  ;;  %v3659_v54 = vrot.slane %v3657_v36, 3  ;;  %5678 = vmatmul.mubr.msk.bf16.gmra.mrb[32].mxu1 %vm902_vm4, %v3378_v30  ;;  %v2959_v43 = vpop.permute.xlu1 %2958  ;;  %v6029_v36 = vld [vmem:[#allocation2 + $0x20] sm:$0xff] }
 0x2ea   : > { %v3649_v2 = vrot.slane %v3647_v45, 2  ;;  %v3652_v6 = vrot.slane %v3650_v8, 3  ;;  %v3051_v47 = vpop.permute.xlu0 %3050  ;;  %v6030_v8 = vld [vmem:[#allocation2 + $0x28] sm:$0xff] }
 0x2eb   : > { %v3660_v40 = vor.u32 %v3659_v54, %v3656_v38 }
 0x2ec   : > { %v3653_v50 = vor.u32 %v3652_v6, %v3649_v2 }
 0x2ed   : > { %v3665_v9 = vsel %vm3646_vm12, %v3660_v40, %v7848_v14  ;;  %v3053_v49 = vpop.permute.xlu1 %3052  ;;  %v6014_v14 = vld [vmem:[%s8378_s3 + $0x78] sm:$0xff]  }
 0x2ee   : > { %v2957_v44 = vpop.permute.xlu0 %2956  ;;  %v3661_v16 = vsel %vm3646_vm12, %v3653_v50, %v3660_v40 }
 0x2ef   : > { %5693 = vmatprep.mubr.msk.bf16.mxu1 %vm902_vm4, %v3661_v16 }
 0x2f1   : > { %5694 = vmatmul.mubr.msk.bf16.vlgmr.msra.gmra.mrb[0].mxu1 %vm902_vm4, %v3665_v9 }
 0x2f2   : > { %5730 = vmatpush3.bf16.msra.mxu1 %v7965_v17  ;;  %5697 = vmatprep.mubr.msk.bf16.mxu1 %vm902_vm4, %v7870_v32  ;;  %v4178_v37 = vpop.permute.xlu0 %4177  ;;  %v6015_v32 = vld [vmem:[%s8378_s3 + $0x80] sm:$0xff]   ;;  %v4180_v17 = vpop.permute.xlu1 %4179 }
 0x2f3   : > { %5731 = vmatprep.subr.bf16.mxu1 %v6012_v7  ;;  %v4313_v22 = vsel %vm226_vm2, %v6028_v55, %v4180_v17 }
 0x2f6   : > { %5732 = vmatpush3.bf16.msra.mxu1 %v6012_v7  ;;  %v4182_v3 = vpop.permute.xlu0 %4181 }
 0x2f7   : > { %5733 = vmatprep.subr.bf16.mxu1 %v6013_v5  ;;  %v4315_v19 = vsel %vm226_vm2, %v6029_v36, %v4182_v3 }
 0x2f9   : > { %5698 = vmatmul.mubr.msk.bf16.gmra.mrb[4].mxu1 %vm902_vm4, %v7906_v53  ;;  %v4272_v53 = vpop.permute.xlu1 %4271 }
 0x2fa   : > { %5701 = vmatprep.mubr.msk.bf16.mxu1 %vm902_vm4, %v7910_v59  ;;  %5734 = vmatpush3.bf16.msra.mxu1 %v6013_v5  ;;  %v4274_v13 = vpop.permute.xlu0 %4273 }
 0x2fb   : > { %5735 = vmatprep.subr.bf16.mxu1 %v6014_v14  ;;  %v4351_v28 = vsel %vm662_vm3, %v4313_v22, %v4274_v13  ;;  %v6031_v13 = vld [vmem:[#allocation2 + $0x38] sm:$0xff] }
 0x2fc   : > { %v4407_v0 = vshrl.u32 %v4351_v28, 16  ;;  %v4410_v18 = vshll.u32 %v4351_v28, 16 }
 0x2fd   : > { %v4276_v60 = vpop.permute.xlu1 %4275 }
 0x2fe   : > { %5736 = vmatpush3.bf16.msra.mxu1 %v6014_v14  ;;  %v4184_v59 = vpop.permute.xlu0 %4183  ;;  %v4409_v45 = vrot.slane %v4407_v0, 4  ;;  %v4353_v16 = vsel %vm662_vm3, %v4315_v19, %v4276_v60 }
 0x2ff   : > { %5737 = vmatprep.subr.bf16.mxu1 %v6015_v32  ;;  %v4317_v38 = vsel %vm226_vm2, %v6030_v8, %v4184_v59 }
 0x301   : > { %5702 = vmatmul.mubr.msk.bf16.gmra.mrb[8].mxu1 %vm902_vm4, %v7950_v26  ;;  %v8107_v46 = vpop.permute.xlu1 %4185 }
 0x302   : > { %5705 = vmatprep.mubr.msk.bf16.mxu1 %vm902_vm4, %v7954_v56  ;;  %5738 = vmatpush3.bf16.msra.mxu1 %v6015_v32  ;;  %v4278_v34 = vpop.permute.xlu0 %4277  ;;  %v3090_v56 = vsel %vm226_vm2, %v8425_v4, %v2957_v44 }
 0x303   : > { %5739 = vmatprep.subr.bf16.mxu1 %v6016_v39  ;;  %v4355_v40 = vsel %vm662_vm3, %v4317_v38, %v4278_v34  ;;  %v6032_v34 = vld [vmem:[#allocation2 + $0x30] sm:$0xff] }
 0x304   : > { %v4423_v9 = vshrl.u32 %v4355_v40, 16 }
 0x305   : > { %v8115_v26 = vpop.permute.xlu1 %4279 }
 0x306   : > { %5740 = vmatpush3.bf16.msra.mxu1 %v6016_v39  ;;  %v8109_v10 = vpop.permute.xlu0 %4187  ;;  %v4425_v32 = vrot.slane %v4423_v9, 4 }
 0x307   : > { %v4321_v39 = vsel %vm226_vm2, %v6031_v13, %v8109_v10 }
 0x309   : > { %5706 = vmatmul.mubr.msk.bf16.gmra.mrb[12].mxu1 %vm902_vm4, %v7987_v1  ;;  %v8124_v51 = vpop.permute.xlu1 %4189 }
 0x30a   : > { %5709 = vmatprep.mubr.msk.bf16.mxu1 %vm902_vm4, %v7991_v58  ;;  %v8119_v1 = vpop.permute.xlu0 %4281  ;;  %v3128_v58 = vsel %vm662_vm3, %v3090_v56, %v3051_v47  ;;  %v4319_v56 = vsel %vm226_vm2, %v6032_v34, %v8107_v46  ;;  %v6038_v34 = vld [vmem:[#allocation2 + $0x60] sm:$0xff] }
 0x30b   : > { %v3725_v27 = vshll.u32 %v3128_v58, 16  ;;  %v4357_v10 = vsel %vm662_vm3, %v4319_v56, %v8115_v26 }
 0x30c   : > { %v4431_v22 = vshrl.u32 %v4357_v10, 16 }
 0x30d   : > { %v8130_v24 = vpop.permute.xlu1 %4283  ;;  %v3727_v12 = vrot.slane %v3725_v27, 3 }
 0x311   : > { %5710 = vmatmul.mubr.msk.bf16.gmra.mrb[16].mxu1 %vm902_vm4, %v8010_v61  ;;  %v3722_v61 = vshrl.u32 %v3128_v58, 16  ;;  %v4359_v58 = vsel %vm662_vm3, %v4321_v39, %v8119_v1  ;;  %v6033_v1 = vld [vmem:[#allocation2 + $0x48] sm:$0xff] }
 0x312   : > { %5713 = vmatprep.mubr.msk.bf16.mxu1 %vm902_vm4, %v8013_v11  ;;  %v8128_v11 = vpop.permute.xlu0 %4191 }
 0x313   : > { %v3724_v4 = vrot.slane %v3722_v61, 2 }
 0x315   : > { %v3728_v62 = vor.u32 %v3727_v12, %v3724_v4  ;;  %v4442_v4 = vshll.u32 %v4359_v58, 16 }
 0x316   : > { %v8142_v48 = vpop.permute.xlu0 %4285 }
 0x317   : > { %v3729_v2 = vsel %vm3646_vm12, %v8047_v41, %v3728_v62 }
 0x319   : > { %5714 = vmatmul.mubr.msk.bf16.gmra.mrb[20].mxu1 %vm902_vm4, %v8026_v23  ;;  %v4311_v23 = vsel %vm226_vm2, %v4005_v20, %v4178_v37  ;;  %v4426_v37 = vshll.u32 %v4355_v40, 16  ;;  %v4439_v20 = vshrl.u32 %v4359_v58, 16 }
 0x31a   : > { %5717 = vmatprep.mubr.msk.bf16.mxu1 %vm902_vm4, %v8029_v15  ;;  %v3092_v15 = vsel %vm226_vm2, %v7776_v42, %v2959_v43  ;;  %v4349_v52 = vsel %vm662_vm3, %v4311_v23, %v4272_v53  ;;  %v8149_v54 = vpop.permute.xlu0 %4195  ;;  %v4434_v23 = vshll.u32 %v4357_v10, 16 }
 0x31b   : > { %v3130_v57 = vsel %vm662_vm3, %v3092_v15, %v3053_v49  ;;  %v4400_v29 = vshrl.u32 %v4349_v52, 16  ;;  %v4403_v42 = vshll.u32 %v4349_v52, 16  ;;  %v4418_v49 = vshll.u32 %v4353_v16, 16 }
 0x31c   : > { %v3730_v21 = vshrl.u32 %v3130_v57, 16  ;;  %v3733_v30 = vshll.u32 %v3130_v57, 16  ;;  %v4428_v17 = vrot.slane %v4426_v37, 5  ;;  %v4441_v28 = vrot.slane %v4439_v20, 4 }
 0x31d   : > { %v4402_v50 = vrot.slane %v4400_v29, 4  ;;  %v4405_v44 = vrot.slane %v4403_v42, 5  ;;  %v4420_v60 = vrot.slane %v4418_v49, 5  ;;  %v4444_v57 = vrot.slane %v4442_v4, 5 }
 0x31e   : > { %v3732_v6 = vrot.slane %v3730_v21, 2  ;;  %v3735_v47 = vrot.slane %v3733_v30, 3  ;;  %v4290_v14 = vpop.permute.xlu0 %4289  ;;  %v4429_v27 = vor.u32 %v4428_v17, %v4425_v32  ;;  %v4325_v52 = vsel %vm226_vm2, %v6033_v1, %v8128_v11 }
 0x31f   : > { %v4406_v41 = vor.u32 %v4405_v44, %v4402_v50  ;;  %v4436_v0 = vrot.slane %v4434_v23, 5  ;;  %v4363_v30 = vsel %vm662_vm3, %v4325_v52, %v8142_v48  ;;  %v4445_v11 = vor.u32 %v4444_v57, %v4441_v28 }
 0x320   : > { %v3736_v5 = vor.u32 %v3735_v47, %v3732_v6  ;;  %v4455_v36 = vshrl.u32 %v4363_v30, 16  ;;  %v4458_v19 = vshll.u32 %v4363_v30, 16  ;;  %v6035_v47 = vld [vmem:[#allocation2 + $0x58] sm:$0xff] }
 0x321   : > { %5718 = vmatmul.mubr.msk.bf16.gmra.mrb[24].mxu1 %vm902_vm4, %v8039_v35  ;;  %v8145_v35 = vpop.permute.xlu1 %4193  ;;  %v4329_v48 = vsel %vm226_vm2, %v6035_v47, %v8149_v54 }
 0x322   : > { %5721 = vmatprep.mubr.msk.bf16.mxu1 %vm902_vm4, %v8045_v31  ;;  %v4412_v31 = vrot.slane %v4410_v18, 5  ;;  %v3737_v3 = vsel %vm3646_vm12, %v3728_v62, %v3736_v5  ;;  %v4200_v12 = vpop.permute.xlu0 %4199  ;;  %v4433_v62 = vrot.slane %v4431_v22, 4  ;;  %v6034_v18 = vld [vmem:[#allocation2 + $0x40] sm:$0xff]  ;;  %v4457_v6 = vrot.slane %v4455_v36, 4 }
 0x323   : > { %v4323_v21 = vsel %vm226_vm2, %v6034_v18, %v8124_v51  ;;  %v4460_v51 = vrot.slane %v4458_v19, 5  ;;  %v4367_v9 = vsel %vm662_vm3, %v4329_v48, %v4290_v14  ;;  %v6040_v18 = vld [vmem:[#allocation2 + $0x70] sm:$0xff]  ;;  %v6041_v48 = vld [vmem:[#allocation2 + $0x88] sm:$0xff] }
 0x324   : > { %v4413_v43 = vor.u32 %v4412_v31, %v4409_v45  ;;  %v4361_v29 = vsel %vm662_vm3, %v4323_v21, %v8130_v24  ;;  %v4437_v45 = vor.u32 %v4436_v0, %v4433_v62  ;;  %v4474_v49 = vshll.u32 %v4367_v9, 16 }
 0x325   : > { %v8158_v7 = vpop.permute.xlu1 %4287  ;;  %v4447_v31 = vshrl.u32 %v4361_v29, 16  ;;  %v4450_v8 = vshll.u32 %v4361_v29, 16  ;;  %v4461_v54 = vor.u32 %v4460_v51, %v4457_v6 }
 0x326   : > { %v4414_v53 = vsel %vm4399_vm0, %v4406_v41, %v4413_v43  ;;  %v4294_v42 = vpop.permute.xlu0 %4293  ;;  %v4446_v24 = vsel %vm4399_vm0, %v4437_v45, %v4445_v11 }
 0x327   : > { %v4449_v50 = vrot.slane %v4447_v31, 4  ;;  %v4452_v44 = vrot.slane %v4450_v8, 5 }
 0x329   : > { %5722 = vmatmul.mubr.msk.bf16.gmra.mrb[28].mxu1 %vm902_vm4, %v8055_v33  ;;  %v4415_v33 = vshrl.u32 %v4353_v16, 16  ;;  %v8169_v61 = vpop.permute.xlu1 %4197  ;;  %v6036_v16 = vld [vmem:[#allocation2 + $0x50] sm:$0xff]  ;;  %v4453_v41 = vor.u32 %v4452_v44, %v4449_v50 }
 0x32a   : > { %5725 = vmatprep.mubr.msk.bf16.mxu1 %vm902_vm4, %v3729_v2  ;;  %v4438_v2 = vsel %vm4399_vm0, %v4429_v27, %v4437_v45  ;;  %v4204_v40 = vpop.permute.xlu0 %4203  ;;  %v4331_v56 = vsel %vm226_vm2, %v6038_v34, %v8169_v61  ;;  %v6039_v61 = vld [vmem:[#allocation2 + $0x78] sm:$0xff]  ;;  %v6043_v34 = vld [vmem:[#allocation2 + $0x90] sm:$0xff] }
 0x32b   : > { %v4417_v59 = vrot.slane %v4415_v33, 4  ;;  %v4471_v33 = vshrl.u32 %v4367_v9, 16  ;;  %v4454_v13 = vsel %vm4399_vm0, %v4445_v11, %v4453_v41 }
 0x32d   : > { %v4421_v55 = vor.u32 %v4420_v60, %v4417_v59  ;;  %v4292_v15 = vpop.permute.xlu1 %4291  ;;  %v4473_v39 = vrot.slane %v4471_v33, 4  ;;  %v4462_v59 = vsel %vm4399_vm0, %v4453_v41, %v4461_v54 }
 0x32e   : > { %v4298_v17 = vpop.permute.xlu0 %4297 }
 0x32f   : > { %v4422_v46 = vsel %vm4399_vm0, %v4413_v43, %v4421_v55  ;;  %v4430_v26 = vsel %vm4399_vm0, %v4421_v55, %v4429_v27  ;;  %v4327_v43 = vsel %vm226_vm2, %v6036_v16, %v8145_v35  ;;  %v6037_v35 = vld [vmem:[#allocation2 + $0x68] sm:$0xff]  ;;  %v4369_v27 = vsel %vm662_vm3, %v4331_v56, %v4292_v15  ;;  %v6042_v16 = vld [vmem:[#allocation2 + $0x80] sm:$0xff] }
 0x330   : > { %v4365_v37 = vsel %vm662_vm3, %v4327_v43, %v8158_v7  ;;  %v4333_v14 = vsel %vm226_vm2, %v6037_v35, %v4200_v12  ;;  %v4479_v23 = vshrl.u32 %v4369_v27, 16 }
 0x331   : > { %5726 = vmatmul.mubr.msk.bf16.gmra.mrb[32].mxu1 %vm902_vm4, %v3737_v3  ;;  %v4202_v38 = vpop.permute.xlu1 %4201  ;;  %v4463_v3 = vshrl.u32 %v4365_v37, 16  ;;  %v4466_v32 = vshll.u32 %v4365_v37, 16  ;;  %v4371_v58 = vsel %vm662_vm3, %v4333_v14, %v4294_v42 }
 0x332   : > { %5741 = vmatprep.mubr.msk.bf16.mxu1 %vm902_vm4, %v4414_v53  ;;  %v4476_v53 = vrot.slane %v4474_v49, 5  ;;  %v4487_v4 = vshrl.u32 %v4371_v58, 16  ;;  %v4490_v12 = vshll.u32 %v4371_v58, 16  ;;  %v4208_v55 = vpop.permute.xlu0 %4207  ;;  %v4481_v15 = vrot.slane %v4479_v23, 4 }
 0x333   : > { %v4465_v7 = vrot.slane %v4463_v3, 4  ;;  %v4468_v60 = vrot.slane %v4466_v32, 5  ;;  %v4335_v21 = vsel %vm226_vm2, %v6040_v18, %v4202_v38  ;;  %v4341_v38 = vsel %vm226_vm2, %v6041_v48, %v4208_v55 }
 0x334   : > { %v4477_v20 = vor.u32 %v4476_v53, %v4473_v39  ;;  %v4489_v1 = vrot.slane %v4487_v4, 4  ;;  %v4492_v52 = vrot.slane %v4490_v12, 5 }
 0x335   : > { %v4296_v5 = vpop.permute.xlu1 %4295  ;;  %v4469_v22 = vor.u32 %v4468_v60, %v4465_v7 }
 0x336   : > { %v4373_v29 = vsel %vm662_vm3, %v4335_v21, %v4296_v5  ;;  %v4302_v42 = vpop.permute.xlu0 %4301  ;;  %v4493_v11 = vor.u32 %v4492_v52, %v4489_v1 }
 0x337   : > { %v4470_v57 = vsel %vm4399_vm0, %v4461_v54, %v4469_v22  ;;  %v4478_v62 = vsel %vm4399_vm0, %v4469_v22, %v4477_v20  ;;  %v4495_v31 = vshrl.u32 %v4373_v29, 16  ;;  %v4498_v8 = vshll.u32 %v4373_v29, 16 }
 0x338   : > { %v4379_v9 = vsel %vm662_vm3, %v4341_v38, %v4302_v42 }
 0x339   : > { %5742 = vmatmul.mubr.msk.bf16.vlgmr.msra.gmra.mrb[0].mxu1 %vm902_vm4, %v4422_v46  ;;  %v4206_v10 = vpop.permute.xlu1 %4205  ;;  %v4482_v46 = vshll.u32 %v4369_v27, 16  ;;  %v4497_v50 = vrot.slane %v4495_v31, 4  ;;  %v4500_v44 = vrot.slane %v4498_v8, 5  ;;  %v4519_v33 = vshrl.u32 %v4379_v9, 16 }
 0x33a   : > { %5745 = vmatprep.mubr.msk.bf16.mxu1 %vm902_vm4, %v4430_v26  ;;  %v4337_v26 = vsel %vm226_vm2, %v6039_v61, %v4204_v40  ;;  %v4212_v40 = vpop.permute.xlu0 %4211  ;;  %v4339_v43 = vsel %vm226_vm2, %v6042_v16, %v4206_v10  ;;  %v4522_v49 = vshll.u32 %v4379_v9, 16 }
 0x33b   : > { %v4484_v0 = vrot.slane %v4482_v46, 5  ;;  %v4375_v30 = vsel %vm662_vm3, %v4337_v26, %v4298_v17  ;;  %v4501_v41 = vor.u32 %v4500_v44, %v4497_v50  ;;  %v4521_v53 = vrot.slane %v4519_v33, 4 }
 0x33c   : > { %v4503_v36 = vshrl.u32 %v4375_v30, 16  ;;  %v4506_v19 = vshll.u32 %v4375_v30, 16  ;;  %v4524_v35 = vrot.slane %v4522_v49, 5  ;;  %v4345_v14 = vsel %vm226_vm2, %v7889_v25, %v4212_v40 }
 0x33d   : > { %v4300_v28 = vpop.permute.xlu1 %4299  ;;  %v4485_v45 = vor.u32 %v4484_v0, %v4481_v15  ;;  %v4502_v39 = vsel %vm4399_vm0, %v4493_v11, %v4501_v41 }
 0x33e   : > { %v4505_v51 = vrot.slane %v4503_v36, 4  ;;  %v4508_v47 = vrot.slane %v4506_v19, 5  ;;  %v4377_v37 = vsel %vm662_vm3, %v4339_v43, %v4300_v28  ;;  %v4306_v17 = vpop.permute.xlu0 %4305  ;;  %v4525_v27 = vor.u32 %v4524_v35, %v4521_v53 }
 0x33f   : > { %v4486_v6 = vsel %vm4399_vm0, %v4477_v20, %v4485_v45  ;;  %v4511_v3 = vshrl.u32 %v4377_v37, 16  ;;  %v4514_v32 = vshll.u32 %v4377_v37, 16  ;;  %v4383_v58 = vsel %vm662_vm3, %v4345_v14, %v4306_v17 }
 0x340   : > { %v4509_v54 = vor.u32 %v4508_v47, %v4505_v51  ;;  %v4535_v20 = vshrl.u32 %v4383_v58, 16  ;;  %v4538_v4 = vshll.u32 %v4383_v58, 16  ;;  %v8263_v47 = vld [vmem:[%s8379_s4] ss:$0 sm:$0xff] }
 0x341   : > { %5746 = vmatmul.mubr.msk.bf16.gmra.mrb[4].mxu1 %vm902_vm4, %v4438_v2  ;;  %v4210_v2 = vpop.permute.xlu1 %4209  ;;  %v4513_v7 = vrot.slane %v4511_v3, 4  ;;  %v4516_v60 = vrot.slane %v4514_v32, 5 }
 0x342   : > { %5749 = vmatprep.mubr.msk.bf16.mxu1 %vm902_vm4, %v4446_v24  ;;  %v4494_v24 = vsel %vm4399_vm0, %v4485_v45, %v4493_v11  ;;  %v4343_v56 = vsel %vm226_vm2, %v6043_v34, %v4210_v2  ;;  %v4540_v1 = vrot.slane %v4538_v4, 5 }
 0x343   : > { %v4517_v12 = vor.u32 %v4516_v60, %v4513_v7 }
 0x345   : > { %v4304_v5 = vpop.permute.xlu1 %4303  ;;  %v4518_v46 = vsel %vm4399_vm0, %v4509_v54, %v4517_v12  ;;  %v4526_v52 = vsel %vm4399_vm0, %v4517_v12, %v4525_v27 }
 0x346   : > { %v4381_v10 = vsel %vm662_vm3, %v4343_v56, %v4304_v5 }
 0x347   : > { %v4527_v25 = vshrl.u32 %v4381_v10, 16  ;;  %v4530_v55 = vshll.u32 %v4381_v10, 16 }
 0x349   : > { %5750 = vmatmul.mubr.msk.bf16.gmra.mrb[8].mxu1 %vm902_vm4, %v4454_v13  ;;  %v4214_v13 = vpop.permute.xlu1 %4213  ;;  %v4529_v61 = vrot.slane %v4527_v25, 4  ;;  %v4532_v26 = vrot.slane %v4530_v55, 5 }
 0x34a   : > { %5753 = vmatprep.mubr.msk.bf16.mxu1 %vm902_vm4, %v4462_v59  ;;  %v4510_v59 = vsel %vm4399_vm0, %v4501_v41, %v4509_v54  ;;  %v4347_v22 = vsel %vm226_vm2, %v7912_v63, %v4214_v13 }
 0x34b   : > { %v4533_v18 = vor.u32 %v4532_v26, %v4529_v61 }
 0x34d   : > { %v4308_v23 = vpop.permute.xlu1 %4307  ;;  %v4534_v30 = vsel %vm4399_vm0, %v4525_v27, %v4533_v18 }
 0x34e   : > { %v4385_v28 = vsel %vm662_vm3, %v4347_v22, %v4308_v23 }
 0x34f   : > { %v4546_v15 = vshll.u32 %v4385_v28, 16 }
 0x351   : > { %5754 = vmatmul.mubr.msk.bf16.gmra.mrb[12].mxu1 %vm902_vm4, %v4470_v57  ;;  %v4537_v57 = vrot.slane %v4535_v20, 4  ;;  %v4548_v21 = vrot.slane %v4546_v15, 5 }
 0x352   : > { %5757 = vmatprep.mubr.msk.bf16.mxu1 %vm902_vm4, %v4478_v62  ;;  %v4543_v62 = vshrl.u32 %v4385_v28, 16 }
 0x353   : > { %v4541_v0 = vor.u32 %v4540_v1, %v4537_v57 }
 0x354   : > { %v4545_v63 = vrot.slane %v4543_v62, 4 }
 0x355   : > { %v4542_v29 = vsel %vm4399_vm0, %v4533_v18, %v4541_v0 }
 0x356   : > { %v4549_v42 = vor.u32 %v4548_v21, %v4545_v63 }
 0x358   : > { %v4550_v11 = vsel %vm4399_vm0, %v4541_v0, %v4549_v42 }
 0x359   : > { %5758 = vmatmul.mubr.msk.bf16.gmra.mrb[16].mxu1 %vm902_vm4, %v4486_v6 }
 0x35a   : > { %5761 = vmatprep.mubr.msk.bf16.mxu1 %vm902_vm4, %v4494_v24 }
 0x361   : > { %5762 = vmatmul.mubr.msk.bf16.gmra.mrb[20].mxu1 %vm902_vm4, %v4502_v39 }
 0x362   : > { %5765 = vmatprep.mubr.msk.bf16.mxu1 %vm902_vm4, %v4510_v59 }
 0x369   : > { %5766 = vmatmul.mubr.msk.bf16.gmra.mrb[24].mxu1 %vm902_vm4, %v4518_v46 }
 0x36a   : > { %5769 = vmatprep.mubr.msk.bf16.mxu1 %vm902_vm4, %v4526_v52 }
 0x371   : > { %5770 = vmatmul.mubr.msk.bf16.gmra.mrb[28].mxu1 %vm902_vm4, %v4534_v30 }
 0x372   : > { %5773 = vmatprep.mubr.msk.bf16.mxu1 %vm902_vm4, %v4542_v29 }
 0x379   : > { %5774 = vmatmul.mubr.msk.bf16.gmra.mrb[32].mxu1 %vm902_vm4, %v4550_v11 }
 0x40c   : > { %v8244_v36 = vpop.f32.mrb[0].mxu1 }
 0x40d   : > { %v8246_v19 = vpop.f32.mrb[1].mxu1 }
 0x40e   : > { %v8248_v45 = vpop.f32.mrb[2].mxu1 }
 0x40f   : > { %v8250_v31 = vpop.f32.mrb[3].mxu1 }
 0x414   : > { %v8252_v8 = vpop.f32.mrb[4].mxu1 }
 0x415   : > { %v8254_v2 = vpop.f32.mrb[5].mxu1 }
 0x416   : > { %v8256_v6 = vpop.f32.mrb[6].mxu1 }
 0x417   : > { %v8258_v51 = vpop.f32.mrb[7].mxu1 }
 0x41c   : > { %v5751_v48 = vpop.f32.mrb[8].mxu1 }
 0x41d   : > { %v4871_v38 = vadd.f32 %v5751_v48, %v8263_v47  ;;  %v8266_v40 = vpop.f32.mrb[9].mxu1 }
 0x41e   : > { %v5752_v24 = vpop.f32.mrb[10].mxu1 }
 0x41f   : > { %v4872_v50 = vadd.f32 %v5752_v24, %v8263_v47  ;;  %4908 = vrot.lane.b32.xlu1 %v4871_v38, %s6053_s8  ;;  %v4710_v44 = vpop.f32.mrb[11].mxu1 }
 0x420   : > { %v4870_v16 = vadd.f32 %v8263_v47, %v4710_v44 }
 0x421   : > { %4910 = vrot.lane.b32.xlu0 %v4872_v50, %s6053_s8 }
 0x424   : > { %v5755_v43 = vpop.f32.mrb[12].mxu1 }
 0x425   : > { %v4875_v9 = vadd.f32 %v5755_v43, %v8263_v47  ;;  %4906 = vrot.lane.b32.xlu0 %v4870_v16, %s6053_s8  ;;  %v4723_v37 = vpop.f32.mrb[13].mxu1 }
 0x426   : > { %v5756_v5 = vpop.f32.mrb[14].mxu1  ;;  %v4873_v49 = vadd.f32 %v8263_v47, %v4723_v37 }
 0x427   : > { %v4876_v54 = vadd.f32 %v5756_v5, %v8263_v47  ;;  %4916 = vrot.lane.b32.xlu1 %v4875_v9, %s6053_s8  ;;  %v4726_v33 = vpop.f32.mrb[15].mxu1 }
 0x428   : > { %v4874_v41 = vadd.f32 %v8263_v47, %v4726_v33 }
 0x429   : > { %4918 = vrot.lane.b32.xlu0 %v4876_v54, %s6053_s8 }
 0x42b   : > { %4912 = vrot.lane.b32.xlu1 %v4873_v49, %s6053_s8 }
 0x42c   : > { %v5759_v3 = vpop.f32.mrb[16].mxu1 }
 0x42d   : > { %v4879_v32 = vadd.f32 %v5759_v3, %v8263_v47  ;;  %4914 = vrot.lane.b32.xlu0 %v4874_v41, %s6053_s8  ;;  %v4739_v17 = vpop.f32.mrb[17].mxu1 }
 0x42e   : > { %v5760_v13 = vpop.f32.mrb[18].mxu1  ;;  %v4877_v35 = vadd.f32 %v8263_v47, %v4739_v17 }
 0x42f   : > { %v4880_v39 = vadd.f32 %v5760_v13, %v8263_v47  ;;  %4942 = vrot.lane.b32.xlu1 %v4879_v32, %s6052_s7  ;;  %v4742_v53 = vpop.f32.mrb[19].mxu1  ;;  %v4861_v32 = vadd.f32 %v8263_v47, %v8246_v19  ;;  %v4864_v19 = vadd.f32 %v8248_v45, %v8263_v47 }
 0x430   : > { %v4878_v14 = vadd.f32 %v8263_v47, %v4742_v53 }
 0x431   : > { %4944 = vrot.lane.b32.xlu0 %v4880_v39, %s6052_s7 }
 0x433   : > { %4920 = vrot.lane.b32.xlu1 %v4877_v35, %s6053_s8 }
 0x434   : > { %v5763_v59 = vpop.f32.mrb[20].mxu1 }
 0x435   : > { %v4883_v7 = vadd.f32 %v5763_v59, %v8263_v47  ;;  %4922 = vrot.lane.b32.xlu0 %v4878_v14, %s6053_s8  ;;  %v4755_v60 = vpop.f32.mrb[21].mxu1  ;;  %s6055_s8 = smov 96  }
 0x436   : > { %v5764_v34 = vpop.f32.mrb[22].mxu1  ;;  %v4881_v10 = vadd.f32 %v8263_v47, %v4755_v60 }
 0x437   : > { %v4884_v56 = vadd.f32 %v5764_v34, %v8263_v47  ;;  %4950 = vrot.lane.b32.xlu1 %v4883_v7, %s6052_s7  ;;  %v4758_v58 = vpop.f32.mrb[23].mxu1  ;;  %v4865_v7 = vadd.f32 %v8263_v47, %v8254_v2  ;;  %v4863_v2 = vadd.f32 %v8244_v36, %v8263_v47 }
 0x438   : > { %v4882_v27 = vadd.f32 %v8263_v47, %v4758_v58  ;;  %v4862_v58 = vadd.f32 %v8263_v47, %v8250_v31 }
 0x439   : > { %4952 = vrot.lane.b32.xlu0 %v4884_v56, %s6052_s7 }
 0x43b   : > { %4946 = vrot.lane.b32.xlu1 %v4881_v10, %s6052_s7 }
 0x43c   : > { %v5767_v20 = vpop.f32.mrb[24].mxu1 }
 0x43d   : > { %v4887_v4 = vadd.f32 %v5767_v20, %v8263_v47  ;;  %4948 = vrot.lane.b32.xlu0 %v4882_v27, %s6052_s7  ;;  %v4771_v12 = vpop.f32.mrb[25].mxu1 }
 0x43e   : > { %v5768_v25 = vpop.f32.mrb[26].mxu1  ;;  %v4885_v23 = vadd.f32 %v8263_v47, %v4771_v12 }
 0x43f   : > { %v4888_v55 = vadd.f32 %v5768_v25, %v8263_v47  ;;  %4958 = vrot.lane.b32.xlu1 %v4887_v4, %s6052_s7  ;;  %v4774_v22 = vpop.f32.mrb[27].mxu1 }
 0x440   : > { %v4886_v46 = vadd.f32 %v8263_v47, %v4774_v22 }
 0x441   : > { %4978 = vrot.lane.b32.xlu0 %v4888_v55, %s6055_s8 }
 0x443   : > { %4954 = vrot.lane.b32.xlu1 %v4885_v23, %s6052_s7  ;;  %v4866_v23 = vadd.f32 %v8263_v47, %v8258_v51  ;;  %v4868_v51 = vadd.f32 %v8256_v6, %v8263_v47 }
 0x444   : > { %v5771_v28 = vpop.f32.mrb[28].mxu1 }
 0x445   : > { %v4891_v57 = vadd.f32 %v5771_v28, %v8263_v47  ;;  %4956 = vrot.lane.b32.xlu0 %v4886_v46, %s6052_s7  ;;  %v4787_v1 = vpop.f32.mrb[29].mxu1  ;;  %s5922_s7 = smul.u32 72, %s8429_s19 }
 0x446   : > { %v5772_v52 = vpop.f32.mrb[30].mxu1  ;;  %v4889_v62 = vadd.f32 %v8263_v47, %v4787_v1 }
 0x447   : > { %v4892_v61 = vadd.f32 %v5772_v52, %v8263_v47  ;;  %4984 = vrot.lane.b32.xlu1 %v4891_v57, %s6055_s8  ;;  %v4790_v26 = vpop.f32.mrb[31].mxu1  ;;  %s8319_s29 = scalar_lea.vmem %s8380_s5, %s5922_s7  ;;  %v4867_v57 = vadd.f32 %v8252_v8, %v8263_v47  ;;  %v4869_v8 = vadd.f32 %v8263_v47, %v8266_v40 }
 0x448   : > { %v4890_v15 = vadd.f32 %v8263_v47, %v4790_v26 }
 0x449   : > { %4986 = vrot.lane.b32.xlu0 %v4892_v61, %s6055_s8 }
 0x44b   : > { %4980 = vrot.lane.b32.xlu1 %v4889_v62, %s6055_s8 }
 0x44c   : > { %v5775_v0 = vpop.f32.mrb[32].mxu1 }
 0x44d   : > { %4982 = vrot.lane.b32.xlu0 %v4890_v15, %s6055_s8  ;;  %v4803_v18 = vpop.f32.mrb[33].mxu1  ;;  %v4895_v42 = vadd.f32 %v5775_v0, %v8263_v47 }
 0x44e   : > { %v4893_v63 = vadd.f32 %v8263_v47, %v4803_v18  ;;  %v5776_v21 = vpop.f32.mrb[34].mxu1 }
 0x44f   : > { %v4806_v30 = vpop.f32.mrb[35].mxu1  ;;  %v4896_v11 = vadd.f32 %v5776_v21, %v8263_v47 }
 0x450   : > { %v4894_v29 = vadd.f32 %v8263_v47, %v4806_v30  ;;  %4988 = vrot.lane.b32.xlu1 %v4893_v63, %s6055_s8 }
 0x452   : > { %4990 = vrot.lane.b32.xlu0 %v4894_v29, %s6055_s8 }
 0x454   : > { %4992 = vrot.lane.b32.xlu1 %v4895_v42, %s6055_s8 }
 0x456   : > { %4994 = vrot.lane.b32.xlu0 %v4896_v11, %s6055_s8 }
 0x491   : > { %v4909_v38 = vpop.permute.xlu1 %4908 }
 0x492   : > { %v5006_v4 = vsel %vm226_vm2, %v4862_v58, %v4909_v38 }
 0x493   : > { %v4911_v48 = vpop.permute.xlu0 %4910 }
 0x494   : > { %v5007_v55 = vsel %vm226_vm2, %v4863_v2, %v4911_v48 }
 0x497   : > { %v4907_v24 = vpop.permute.xlu0 %4906 }
 0x498   : > { %v5005_v13 = vsel %vm226_vm2, %v4861_v32, %v4907_v24 }
 0x499   : > { %v4917_v50 = vpop.permute.xlu1 %4916 }
 0x49a   : > { %v5010_v1 = vsel %vm226_vm2, %v4866_v23, %v4917_v50 }
 0x49b   : > { %v4919_v44 = vpop.permute.xlu0 %4918 }
 0x49c   : > { %v5011_v26 = vsel %vm226_vm2, %v4867_v57, %v4919_v44 }
 0x49d   : > { %v4913_v16 = vpop.permute.xlu1 %4912 }
 0x49e   : > { %v5008_v60 = vsel %vm226_vm2, %v4864_v19, %v4913_v16 }
 0x49f   : > { %v4915_v43 = vpop.permute.xlu0 %4914 }
 0x4a0   : > { %v5009_v10 = vsel %vm226_vm2, %v4865_v7, %v4915_v43 }
 0x4a1   : > { %v4943_v9 = vpop.permute.xlu1 %4942 }
 0x4a2   : > { %v5014_v39 = vsel %vm662_vm3, %v5005_v13, %v4943_v9 }
 0x4a3   : > { %v4945_v37 = vpop.permute.xlu0 %4944 }
 0x4a4   : > { %v5015_v25 = vsel %vm662_vm3, %v5006_v4, %v4945_v37 }
 0x4a5   : > { %v4921_v5 = vpop.permute.xlu1 %4920 }
 0x4a6   : > { %v5012_v18 = vsel %vm226_vm2, %v4868_v51, %v4921_v5 }
 0x4a7   : > { %v4923_v54 = vpop.permute.xlu0 %4922 }
 0x4a8   : > { %v5013_v30 = vsel %vm226_vm2, %v4869_v8, %v4923_v54 }
 0x4a9   : > { %v4951_v33 = vpop.permute.xlu1 %4950 }
 0x4aa   : > { %v5018_v45 = vsel %vm662_vm3, %v5009_v10, %v4951_v33 }
 0x4ab   : > { %v4953_v49 = vpop.permute.xlu0 %4952 }
 0x4ac   : > { %v5019_v52 = vsel %vm662_vm3, %v5010_v1, %v4953_v49 }
 0x4ad   : > { %v4947_v41 = vpop.permute.xlu1 %4946 }
 0x4ae   : > { %v5016_v46 = vsel %vm662_vm3, %v5007_v55, %v4947_v41 }
 0x4af   : > { %v4949_v3 = vpop.permute.xlu0 %4948 }
 0x4b0   : > { %v5017_v34 = vsel %vm662_vm3, %v5008_v60, %v4949_v3 }
 0x4b1   : > { %v4959_v17 = vpop.permute.xlu1 %4958 }
 0x4b2   : > { %v5022_v42 = vsel %vm662_vm3, %v5013_v30, %v4959_v17 }
 0x4b3   : > { %v4979_v53 = vpop.permute.xlu0 %4978 }
 0x4b4   : > { %v5023_v35 = vsel %vm902_vm4, %v5014_v39, %v4979_v53 }
 0x4b5   : > { %5032 = vst [vmem:[%s8319_s29] sm:$0xff] %v5023_v35  ;;  %v4955_v14 = vpop.permute.xlu1 %4954 }
 0x4b6   : > { %v5020_v15 = vsel %vm662_vm3, %v5011_v26, %v4955_v14 }
 0x4b7   : > { %v4957_v59 = vpop.permute.xlu0 %4956 }
 0x4b8   : > { %v5021_v21 = vsel %vm662_vm3, %v5012_v18, %v4957_v59 }
 0x4b9   : > { %v4985_v56 = vpop.permute.xlu1 %4984 }
 0x4ba   : > { %v5026_v27 = vsel %vm902_vm4, %v5017_v34, %v4985_v56 }
 0x4bb   : > { %5035 = vst [vmem:[%s8319_s29 + $0x18] sm:$0xff] %v5026_v27  ;;  %v4987_v20 = vpop.permute.xlu0 %4986 }
 0x4bc   : > { %v5027_v12 = vsel %vm902_vm4, %v5018_v45, %v4987_v20 }
 0x4bd   : > { %5036 = vst [vmem:[%s8319_s29 + $0x20] sm:$0xff] %v5027_v12  ;;  %v4981_v31 = vpop.permute.xlu1 %4980 }
 0x4be   : > { %v5024_v22 = vsel %vm902_vm4, %v5015_v25, %v4981_v31 }
 0x4bf   : > { %5033 = vst [vmem:[%s8319_s29 + $0x8] sm:$0xff] %v5024_v22  ;;  %v4983_v36 = vpop.permute.xlu0 %4982 }
 0x4c0   : > { %v5025_v28 = vsel %vm902_vm4, %v5016_v46, %v4983_v36 }
 0x4c1   : > { %5034 = vst [vmem:[%s8319_s29 + $0x10] sm:$0xff] %v5025_v28 }
 0x4c2   : > { %v4989_v61 = vpop.permute.xlu1 %4988 }
 0x4c3   : > { %v5028_v62 = vsel %vm902_vm4, %v5019_v52, %v4989_v61 }
 0x4c4   : > { %5037 = vst [vmem:[%s8319_s29 + $0x28] sm:$0xff] %v5028_v62  ;;  %v4991_v0 = vpop.permute.xlu0 %4990 }
 0x4c5   : > { %v5029_v63 = vsel %vm902_vm4, %v5020_v15, %v4991_v0 }
 0x4c6   : > { %5038 = vst [vmem:[%s8319_s29 + $0x30] sm:$0xff] %v5029_v63  ;;  %v4993_v6 = vpop.permute.xlu1 %4992 }
 0x4c7   : > { %v5030_v29 = vsel %vm902_vm4, %v5021_v21, %v4993_v6 }
 0x4c8   : > { %5039 = vst [vmem:[%s8319_s29 + $0x38] sm:$0xff] %v5030_v29  ;;  %v4995_v11 = vpop.permute.xlu0 %4994 }
 0x4c9   : > { %v5031_v48 = vsel %vm902_vm4, %v5022_v42, %v4995_v11 }
 0x4ca   : > { %5040 = vst [vmem:[%s8319_s29 + $0x40] sm:$0xff] %v5031_v48 }
 0x4cb PF: > { %s15_s18 = sadd.s32 1, %s6050_s18  }
 0x4cc   : > { %p12_p4 = scmp.ge.s32.totalorder %s15_s18, 4  }
 0x4ce   :  { %14 = sbr.rel (!%p12_p4) target bundleno = 1 (0x1), region = 74 }

</bundles_post_ra>
